<compile_context>
chip_gen: v7x
topology: tpu7x:2x2x1
jax: 0.10.0
libtpu: 0.0.40
codegen_flags: <defaults>
</compile_context>

<pallas_src>
import jax
import jax.numpy as jnp
from jax import lax
from jax.experimental import pallas as pl
from jax.experimental.pallas import tpu as pltpu

# ----- model dimensions (faithful to the module where they matter) -----------
VOCAB   = 100      # synthetic vocab (module default 20000)
D_IN    = 64       # embedding dim (module default 300; small here)
H       = 64       # hidden_dim -> biLSTM output = 128 = transformer d_model
D_MODEL = 2 * H    # 128, hard-coded in LSTM3SegAtt
D_FF    = 2048     # nn.TransformerEncoderLayer default dim_feedforward
MLP_H   = 64       # mlp_hidden_dim
N_CLS   = 3
LN_EPS  = 1e-5
B_TILE  = 8        # batch tile: multiple of the 8-row f32 sublane tile

WEIGHT_NAMES = ('wih', 'bih', 'whh', 'wvo', 'bvo', 'ln1_w', 'ln1_b',
                'w1', 'b1', 'w2', 'b2', 'ln2_w', 'ln2_b',
                'wbot', 'bbot', 'wtop', 'btop')


# ========================= fused forward kernel ==============================
def lstm3segatt_kernel(maxlen_ref,                       # scalar prefetch (SMEM)
                       x_ref, mask_ref,
                       wih_ref, bih_ref, whh_ref,
                       wvo_ref, bvo_ref,
                       ln1_w_ref, ln1_b_ref,
                       w1_ref, b1_ref, w2_ref, b2_ref,
                       ln2_w_ref, ln2_b_ref,
                       wbot_ref, bbot_ref, wtop_ref, btop_ref,
                       out_ref,
                       gx_ref, lstm_ref):
    # layouts (per batch tile):
    #   x_ref    (T, B, D_IN) f32   time-major embeddings
    #   mask_ref (T, B, 1)    f32   1.0 where t < length, else 0.0
    #   wih_ref  (D_IN, 8H)   bf16  [fwd | bwd] input weights, gate order i,f,o,g
    #   bih_ref  (1, 8H)      f32   combined b_ih + b_hh for both directions
    #   whh_ref  (2H, 8H)     bf16  block-diagonal [fwd | bwd] recurrent weights
    #   out_ref  (B, 3)       f32
    T, B, Din = x_ref.shape
    Hd = whh_ref.shape[0] // 2
    Dm = 2 * Hd

    # real max length of this batch tile -> bounds the serial recurrence
    n_steps = maxlen_ref[pl.program_id(0)]

    # rows past n_steps must be zero (pad_packed_sequence semantics) and the
    # scratch persists across grid iterations -> re-init per tile.
    lstm_ref[...] = jnp.zeros_like(lstm_ref)

    whh = whh_ref[...]                                   # bf16 (2H, 8H)

    # ---- hoisted input projection: one MXU matmul for all steps, both dirs ---
    xf = x_ref[...].reshape(T * B, Din).astype(jnp.bfloat16)
    g_all = (jnp.dot(xf, wih_ref[...], preferred_element_type=jnp.float32)
             + bih_ref[...])                             # (T*B, 8H) f32
    gx_ref[...] = g_all.reshape(T, B, 8 * Hd)            # single scratch, no split

    def cell(gates, c):
        # gate order i, f, o, g -> one contiguous sigmoid + one tanh (f32 on VPU/EUP)
        sig = jax.nn.sigmoid(gates[:, :3 * Hd])
        i_g = sig[:, :Hd]
        f_g = sig[:, Hd:2 * Hd]
        o_g = sig[:, 2 * Hd:]
        g_g = jnp.tanh(gates[:, 3 * Hd:])
        c_new = f_g * c + i_g * g_g
        return o_g * jnp.tanh(c_new), c_new

    z = jnp.zeros((B, Hd), jnp.float32)

    # ---- fused fwd/bwd recurrence (packed-sequence semantics) ----------------
    def body(k, carry):
        h_f, c_f, h_b, c_b = carry
        t_b = n_steps - 1 - k

        # single fused recurrent matmul: (B,2H)@(2H,8H) block-diag, bf16 -> f32 acc
        h_cat = jnp.concatenate([h_f, h_b], axis=-1).astype(jnp.bfloat16)
        rec = jnp.dot(h_cat, whh, preferred_element_type=jnp.float32)   # (B, 8H)

        # forward direction, step k
        gates_f = gx_ref[k, :, :4 * Hd] + rec[:, :4 * Hd]
        h_fn, c_fn = cell(gates_f, c_f)
        m_f = mask_ref[k]                          # (B, 1)
        h_f = jnp.where(m_f > 0, h_fn, h_f)        # freeze state past length
        c_f = jnp.where(m_f > 0, c_fn, c_f)
        lstm_ref[k, :, :Hd] = h_f * m_f            # pad_packed_sequence zeros

        # backward direction, step n_steps-1-k (starts at t = len_i - 1 per sample)
        gates_b = gx_ref[t_b, :, 4 * Hd:] + rec[:, 4 * Hd:]
        h_bn, c_bn = cell(gates_b, c_b)
        m_b = mask_ref[t_b]
        h_b = jnp.where(m_b > 0, h_bn, h_b)
        c_b = jnp.where(m_b > 0, c_bn, c_b)
        lstm_ref[t_b, :, Hd:] = h_b * m_b
        return h_f, c_f, h_b, c_b

    lax.fori_loop(0, n_steps, body, (z, z, z, z))

    # ---- transformer layer + masked max pool + classifier MLP ----------------
    xtok = lstm_ref[...].reshape(T * B, Dm)               # (T*B, 128), no concat

    # seq_len == 1 attention collapses to out_proj(v_proj(x)); wv/wo folded offline.
    attn = (jnp.dot(xtok, wvo_ref[...], preferred_element_type=jnp.float32)
            + bvo_ref[...])

    def layer_norm(y, w, b):
        mu = jnp.mean(y, axis=-1, keepdims=True)
        var = jnp.mean((y - mu) ** 2, axis=-1, keepdims=True)
        return (y - mu) * lax.rsqrt(var + LN_EPS) * w + b

    x1 = layer_norm(xtok + attn, ln1_w_ref[...], ln1_b_ref[...])

    # TODO(synk): chunk this FFN over token slabs at realistic T*B (VMEM pressure).
    ff = (jnp.dot(x1.astype(jnp.bfloat16), w1_ref[...],
                  preferred_element_type=jnp.float32) + b1_ref[...])
    ff = jnp.maximum(ff, 0.0)
    ff = (jnp.dot(ff.astype(jnp.bfloat16), w2_ref[...],
                  preferred_element_type=jnp.float32) + b2_ref[...])
    x2 = layer_norm(x1 + ff, ln2_w_ref[...], ln2_b_ref[...])

    # masked max over valid tokens per sample (torch.max(dim=0) over L_i rows);
    # zero-length samples (batch padding) pool to 0 instead of -inf/NaN.
    mask_rows = mask_ref[...].reshape(T * B, 1)
    masked = jnp.where(mask_rows > 0, x2, -jnp.inf)
    pooled = jnp.max(masked.reshape(T, B, Dm), axis=0)    # (B, 128)
    has_tok = jnp.max(mask_ref[...], axis=0)              # (B, 1)
    pooled = jnp.where(has_tok > 0, pooled, 0.0)

    hid = jnp.maximum(
        jnp.dot(pooled, wbot_ref[...], preferred_element_type=jnp.float32)
        + bbot_ref[...], 0.0)
    out_ref[...] = (jnp.dot(hid, wtop_ref[...], preferred_element_type=jnp.float32)
                    + btop_ref[...])


# ============================== pallas wrapper ===============================
def _const_map(ndim):
    zeros = (0,) * ndim
    return lambda i, ml: zeros


def lstm3segatt_pallas(x_tm, mask_tb1, max_len, params, *, b_tile=B_TILE):
    T, B_pad, Din = x_tm.shape
    num_tiles = B_pad // b_tile
    weights = [params[n] for n in WEIGHT_NAMES]
    w_specs = [pl.BlockSpec(tuple(w.shape), _const_map(w.ndim)) for w in weights]

    # advisory cost estimate (helps XLA schedule around the fused call)
    tok = T * b_tile
    flops = num_tiles * (
        2 * tok * Din * 8 * H              # hoisted input projection
        + 2 * tok * D_MODEL * 8 * H        # recurrence (upper bound: T steps)
        + 2 * tok * D_MODEL * D_MODEL      # folded v/out projection
        + 4 * tok * D_MODEL * D_FF         # FFN
        + 2 * b_tile * (D_MODEL * MLP_H + MLP_H * N_CLS))
    transc = num_tiles * tok * 10 * H      # sigmoid/tanh, both directions
    bytes_acc = (x_tm.size * 4 + mask_tb1.size * 4 + B_pad * N_CLS * 4
                 + sum(int(w.size) * w.dtype.itemsize for w in weights))

    return pl.pallas_call(
        lstm3segatt_kernel,
        out_shape=jax.ShapeDtypeStruct((B_pad, N_CLS), jnp.float32),
        grid_spec=pltpu.PrefetchScalarGridSpec(
            num_scalar_prefetch=1,
            grid=(num_tiles,),
            in_specs=[pl.BlockSpec((T, b_tile, Din), lambda i, ml: (0, i, 0)),
                      pl.BlockSpec((T, b_tile, 1), lambda i, ml: (0, i, 0))]
                     + w_specs,
            out_specs=pl.BlockSpec((b_tile, N_CLS), lambda i, ml: (i, 0)),
            scratch_shapes=[
                pltpu.VMEM((T, b_tile, 8 * H), jnp.float32),   # fused gate pre-acts
                pltpu.VMEM((T, b_tile, 2 * H), jnp.float32),   # biLSTM outputs
            ]),
        compiler_params=pltpu.CompilerParams(
            dimension_semantics=("parallel",),                 # v7x 2-TC sharding
            vmem_limit_bytes=48 * 1024 * 1024),
        cost_estimate=pl.CostEstimate(flops=int(flops),
                                      transcendentals=int(transc),
                                      bytes_accessed=int(bytes_acc)),
    )(max_len, x_tm, mask_tb1, *weights)


# =============================== parameters ==================================
def init_params(key):
    ks = jax.random.split(key, 24)

    def u(k, shape, scale=0.1):
        return jax.random.uniform(k, shape, jnp.float32, -1.0, 1.0) * scale

    p = {}
    p['embedding'] = u(ks[0], (VOCAB, D_IN), 0.5)

    # BiLSTM: PyTorch weight_ih (4H, D), weight_hh (4H, H), gate order (i,f,g,o).
    # Repack to gate order (i,f,o,g), transpose for x @ W, fold b_ih + b_hh,
    # concat fwd|bwd input weights, and build a block-diagonal (2H, 8H) bf16
    # recurrent weight so one per-step matmul drives both directions.
    perm = jnp.concatenate([jnp.arange(0, 2 * H),
                            jnp.arange(3 * H, 4 * H),
                            jnp.arange(2 * H, 3 * H)])

    def pack_dir(k_wih, k_whh, k_bih, k_bhh):
        wih = u(k_wih, (4 * H, D_IN))
        whh = u(k_whh, (4 * H, H))
        bih = u(k_bih, (4 * H,))
        bhh = u(k_bhh, (4 * H,))
        return (wih[perm].T,                       # (D_IN, 4H)
                whh[perm].T,                       # (H, 4H)
                (bih + bhh)[perm].reshape(1, 4 * H))

    wih_f, whh_f, b_f = pack_dir(ks[1], ks[2], ks[3], ks[4])
    wih_b, whh_b, b_b = pack_dir(ks[5], ks[6], ks[7], ks[8])
    p['wih'] = jnp.concatenate([wih_f, wih_b], axis=1).astype(jnp.bfloat16)  # (D_IN, 8H)
    p['bih'] = jnp.concatenate([b_f, b_b], axis=1)                           # (1, 8H)
    whh_blk = jnp.zeros((2 * H, 8 * H), jnp.float32)
    whh_blk = whh_blk.at[:H, :4 * H].set(whh_f)
    whh_blk = whh_blk.at[H:, 4 * H:].set(whh_b)
    p['whh'] = whh_blk.astype(jnp.bfloat16)                                  # (2H, 8H)

    # TransformerEncoderLayer (d_model=128, nhead=8, d_ff=2048, post-norm).
    # Only the V slice of in_proj matters for a length-1 sequence; fold it with
    # out_proj offline: attn = x @ (Wv^T Wo^T) + (bv Wo^T + bo).
    in_proj_w = u(ks[9], (3 * D_MODEL, D_MODEL))     # PyTorch in_proj_weight
    in_proj_b = u(ks[10], (3 * D_MODEL,))
    wv = in_proj_w[2 * D_MODEL:, :]                  # (128, 128), torch (out, in)
    bv = in_proj_b[2 * D_MODEL:]
    wo = u(ks[11], (D_MODEL, D_MODEL))
    bo = u(ks[12], (D_MODEL,))
    p['wvo'] = wv.T @ wo.T                                           # (128, 128)
    p['bvo'] = bv.reshape(1, D_MODEL) @ wo.T + bo.reshape(1, D_MODEL)
    p['ln1_w'] = jnp.ones((1, D_MODEL), jnp.float32)
    p['ln1_b'] = jnp.zeros((1, D_MODEL), jnp.float32)
    p['w1'] = u(ks[13], (D_FF, D_MODEL)).T.astype(jnp.bfloat16)      # (128, 2048)
    p['b1'] = u(ks[14], (1, D_FF))
    p['w2'] = u(ks[15], (D_MODEL, D_FF)).T.astype(jnp.bfloat16)      # (2048, 128)
    p['b2'] = u(ks[16], (1, D_MODEL))
    p['ln2_w'] = jnp.ones((1, D_MODEL), jnp.float32)
    p['ln2_b'] = jnp.zeros((1, D_MODEL), jnp.float32)

    # classifier MLP
    p['wbot'] = u(ks[17], (MLP_H, D_MODEL)).T        # (128, 64)
    p['bbot'] = u(ks[18], (1, MLP_H))
    p['wtop'] = u(ks[19], (N_CLS, MLP_H)).T          # (64, 3)
    p['btop'] = u(ks[20], (1, N_CLS))
    return p


# ================================ forward ====================================
def lstm3segatt_forward(params, token_ids, lengths, *, b_tile=B_TILE):
    """token_ids: (B, T) int32 padded with 0; lengths: (B,) int32."""
    B, T = token_ids.shape
    # pad batch to a multiple of the tile (8 = f32 sublane) -> clean MXU M dim,
    # no sub-tile scratch padding; padded samples get length 0 and are sliced off.
    B_pad = ((B + b_tile - 1) // b_tile) * b_tile
    pad = B_pad - B
    token_ids_p = jnp.pad(token_ids, ((0, pad), (0, 0)))
    lengths_p = jnp.pad(lengths, (0, pad))

    emb = params['embedding'][token_ids_p]                     # (B_pad, T, D_IN)
    x_tm = jnp.transpose(emb, (1, 0, 2))                       # (T, B_pad, D_IN)

    valid_tb = (jnp.arange(T)[:, None] < lengths_p[None, :]).astype(jnp.float32)
    mask_tb1 = valid_tb[:, :, None]                            # (T, B_pad, 1)

    num_tiles = B_pad // b_tile
    # per-tile real max length -> scalar-prefetched loop bound for the recurrence
    max_len = jnp.max(lengths_p.reshape(num_tiles, b_tile), axis=1).astype(jnp.int32)

    logits = lstm3segatt_pallas(x_tm, mask_tb1, max_len, params, b_tile=b_tile)
    return logits[:B]                                          # (B, 3)


# =================================== main ====================================
if __name__ == "__main__":
    key = jax.random.PRNGKey(0)
    k_param, k_data = jax.random.split(key)
    params = init_params(k_param)

    B, T = 2, 8
    lengths = jnp.array([8, 6], dtype=jnp.int32)               # variable lengths
    token_ids = jax.random.randint(k_data, (B, T), 0, VOCAB, dtype=jnp.int32)
    # pad_sequence pads with 0 ([PAD]) beyond each sample's length
    token_ids = jnp.where(jnp.arange(T)[None, :] < lengths[:, None], token_ids, 0)

    logits = jax.jit(lstm3segatt_forward)(params, token_ids, lengths)
    logits = jax.block_until_ready(logits)
    assert logits.shape == (B, N_CLS) and logits.dtype == jnp.float32
    assert bool(jnp.all(jnp.isfinite(logits)))
    print("KERNEL_OK")
</pallas_src>

<mosaic_0001>
module attributes {stable_mosaic.version = 11 : i64} {
  func.func @lstm3segatt_kernel(%arg0: i32, %arg1: memref<1xi32, #tpu.memory_space<smem>>, %arg2: memref<8x8x64xf32, #tpu.memory_space<vmem>>, %arg3: memref<8x8x1xf32, #tpu.memory_space<vmem>>, %arg4: memref<64x512xbf16, #tpu.memory_space<vmem>>, %arg5: memref<1x512xf32, #tpu.memory_space<vmem>>, %arg6: memref<128x512xbf16, #tpu.memory_space<vmem>>, %arg7: memref<128x128xf32, #tpu.memory_space<vmem>>, %arg8: memref<1x128xf32, #tpu.memory_space<vmem>>, %arg9: memref<1x128xf32, #tpu.memory_space<vmem>>, %arg10: memref<1x128xf32, #tpu.memory_space<vmem>>, %arg11: memref<128x2048xbf16, #tpu.memory_space<vmem>>, %arg12: memref<1x2048xf32, #tpu.memory_space<vmem>>, %arg13: memref<2048x128xbf16, #tpu.memory_space<vmem>>, %arg14: memref<1x128xf32, #tpu.memory_space<vmem>>, %arg15: memref<1x128xf32, #tpu.memory_space<vmem>>, %arg16: memref<1x128xf32, #tpu.memory_space<vmem>>, %arg17: memref<128x64xf32, #tpu.memory_space<vmem>>, %arg18: memref<1x64xf32, #tpu.memory_space<vmem>>, %arg19: memref<64x3xf32, #tpu.memory_space<vmem>>, %arg20: memref<1x3xf32, #tpu.memory_space<vmem>>, %arg21: memref<8x3xf32, #tpu.memory_space<vmem>>, %arg22: memref<8x8x512xf32, #tpu.memory_space<vmem>>, %arg23: memref<8x8x128xf32, #tpu.memory_space<vmem>>) attributes {dimension_semantics = [#tpu.dimension_semantics<parallel>], iteration_bounds = array<i64: 1>, scalar_prefetch = 1 : i64, scratch_operands = 2 : i64, tpu.core_type = #tpu.core_type<tc>, window_params = [{transform_indices = @transform_0, window_bounds = array<i64: 8, 8, 64>}, {transform_indices = @transform_1, window_bounds = array<i64: 8, 8, 1>}, {pipeline_mode = #tpu.pipeline_mode<synchronous>, transform_indices = @transform_2, window_bounds = array<i64: 64, 512>}, {pipeline_mode = #tpu.pipeline_mode<synchronous>, transform_indices = @transform_3, window_bounds = array<i64: 1, 512>}, {pipeline_mode = #tpu.pipeline_mode<synchronous>, transform_indices = @transform_4, window_bounds = array<i64: 128, 512>}, {pipeline_mode = #tpu.pipeline_mode<synchronous>, transform_indices = @transform_5, window_bounds = array<i64: 128, 128>}, {pipeline_mode = #tpu.pipeline_mode<synchronous>, transform_indices = @transform_6, window_bounds = array<i64: 1, 128>}, {pipeline_mode = #tpu.pipeline_mode<synchronous>, transform_indices = @transform_7, window_bounds = array<i64: 1, 128>}, {pipeline_mode = #tpu.pipeline_mode<synchronous>, transform_indices = @transform_8, window_bounds = array<i64: 1, 128>}, {pipeline_mode = #tpu.pipeline_mode<synchronous>, transform_indices = @transform_9, window_bounds = array<i64: 128, 2048>}, {pipeline_mode = #tpu.pipeline_mode<synchronous>, transform_indices = @transform_10, window_bounds = array<i64: 1, 2048>}, {pipeline_mode = #tpu.pipeline_mode<synchronous>, transform_indices = @transform_11, window_bounds = array<i64: 2048, 128>}, {pipeline_mode = #tpu.pipeline_mode<synchronous>, transform_indices = @transform_12, window_bounds = array<i64: 1, 128>}, {pipeline_mode = #tpu.pipeline_mode<synchronous>, transform_indices = @transform_13, window_bounds = array<i64: 1, 128>}, {pipeline_mode = #tpu.pipeline_mode<synchronous>, transform_indices = @transform_14, window_bounds = array<i64: 1, 128>}, {pipeline_mode = #tpu.pipeline_mode<synchronous>, transform_indices = @transform_15, window_bounds = array<i64: 128, 64>}, {pipeline_mode = #tpu.pipeline_mode<synchronous>, transform_indices = @transform_16, window_bounds = array<i64: 1, 64>}, {pipeline_mode = #tpu.pipeline_mode<synchronous>, transform_indices = @transform_17, window_bounds = array<i64: 64, 3>}, {pipeline_mode = #tpu.pipeline_mode<synchronous>, transform_indices = @transform_18, window_bounds = array<i64: 1, 3>}, {transform_indices = @transform_19, window_bounds = array<i64: 8, 3>}]} {
    %0 = arith.index_cast %arg0 : i32 to index
    %1 = memref.load %arg1[%0] : memref<1xi32, #tpu.memory_space<smem>>
    %cst = arith.constant 0.000000e+00 : f32
    %2 = vector.broadcast %cst : f32 to vector<8x8x128xf32>
    %c0 = arith.constant 0 : index
    %c0_0 = arith.constant 0 : index
    %c0_1 = arith.constant 0 : index
    %3 = vector.load %arg23[%c0, %c0_0, %c0_1] : memref<8x8x128xf32, #tpu.memory_space<vmem>>, vector<8x8x128xf32>
    tpu.vector_store %arg23[%c0, %c0_0, %c0_1], %2 {strides = array<i32>} : memref<8x8x128xf32, #tpu.memory_space<vmem>>, vector<8x8x128xf32>,
    %c0_2 = arith.constant 0 : index
    %c0_3 = arith.constant 0 : index
    %4 = vector.load %arg6[%c0_2, %c0_3] : memref<128x512xbf16, #tpu.memory_space<vmem>>, vector<128x512xbf16>
    %c0_4 = arith.constant 0 : index
    %c0_5 = arith.constant 0 : index
    %c0_6 = arith.constant 0 : index
    %5 = vector.load %arg2[%c0_4, %c0_5, %c0_6] : memref<8x8x64xf32, #tpu.memory_space<vmem>>, vector<8x8x64xf32>
    %6 = vector.shape_cast %5 : vector<8x8x64xf32> to vector<64x64xf32>
    %7 = arith.truncf %6 : vector<64x64xf32> to vector<64x64xbf16>
    %c0_7 = arith.constant 0 : index
    %c0_8 = arith.constant 0 : index
    %8 = vector.load %arg4[%c0_7, %c0_8] : memref<64x512xbf16, #tpu.memory_space<vmem>>, vector<64x512xbf16>
    %cst_9 = arith.constant dense<0.000000e+00> : vector<64x512xf32>
    %9 = tpu.matmul %7, %8, %cst_9 {dimension_numbers = #tpu.dot_dimension_numbers<[1], [0], [0], [1], [0, 0, 1, 1], [], []>} : vector<64x64xbf16>, vector<64x512xbf16>, vector<64x512xf32> -> vector<64x512xf32>
    %c0_10 = arith.constant 0 : index
    %c0_11 = arith.constant 0 : index
    %10 = vector.load %arg5[%c0_10, %c0_11] : memref<1x512xf32, #tpu.memory_space<vmem>>, vector<1x512xf32>
    %11 = vector.broadcast %10 : vector<1x512xf32> to vector<64x512xf32>
    %12 = arith.addf %9, %11 : vector<64x512xf32>
    %13 = vector.shape_cast %12 : vector<64x512xf32> to vector<8x8x512xf32>
    %c0_12 = arith.constant 0 : index
    %c0_13 = arith.constant 0 : index
    %c0_14 = arith.constant 0 : index
    %14 = vector.load %arg22[%c0_12, %c0_13, %c0_14] : memref<8x8x512xf32, #tpu.memory_space<vmem>>, vector<8x8x512xf32>
    tpu.vector_store %arg22[%c0_12, %c0_13, %c0_14], %13 {strides = array<i32>} : memref<8x8x512xf32, #tpu.memory_space<vmem>>, vector<8x8x512xf32>,
    %cst_15 = arith.constant 0.000000e+00 : f32
    %15 = vector.broadcast %cst_15 : f32 to vector<8x64xf32>
    %c0_i32 = arith.constant 0 : i32
    %16 = arith.subi %1, %c0_i32 : i32
    %17 = arith.addi %c0_i32, %16 : i32
    %c1_i32 = arith.constant 1 : i32
    %18:4 = scf.for %arg24 = %c0_i32 to %17 step %c1_i32 iter_args(%arg25 = %15, %arg26 = %15, %arg27 = %15, %arg28 = %15) -> (vector<8x64xf32>, vector<8x64xf32>, vector<8x64xf32>, vector<8x64xf32>)  : i32 {
      %c1_i32_78 = arith.constant 1 : i32
      %121 = arith.subi %1, %c1_i32_78 : i32
      %122 = arith.subi %121, %arg24 : i32
      %123 = tpu.concatenate %arg25, %arg27 in 1 : vector<8x64xf32>, vector<8x64xf32> -> vector<8x128xf32>
      %124 = arith.truncf %123 : vector<8x128xf32> to vector<8x128xbf16>
      %cst_79 = arith.constant dense<0.000000e+00> : vector<8x512xf32>
      %125 = tpu.matmul %124, %4, %cst_79 {dimension_numbers = #tpu.dot_dimension_numbers<[1], [0], [0], [1], [0, 0, 1, 1], [], []>} : vector<8x128xbf16>, vector<128x512xbf16>, vector<8x512xf32> -> vector<8x512xf32>
      %126 = arith.index_cast %arg24 : i32 to index
      %c0_80 = arith.constant 0 : index
      %c0_81 = arith.constant 0 : index
      %127 = vector.load %arg22[%126, %c0_80, %c0_81] : memref<8x8x512xf32, #tpu.memory_space<vmem>>, vector<1x8x256xf32>
      %128 = vector.shape_cast %127 : vector<1x8x256xf32> to vector<8x256xf32>
      %129 = vector.extract_strided_slice %125 {offsets = [0, 0], sizes = [8, 256], strides = [1, 1]} : vector<8x512xf32> to vector<8x256xf32>
      %130 = arith.addf %128, %129 : vector<8x256xf32>
      %131 = vector.extract_strided_slice %130 {offsets = [0, 0], sizes = [8, 192], strides = [1, 1]} : vector<8x256xf32> to vector<8x192xf32>
      %132 = arith.negf %131 : vector<8x192xf32>
      %133 = math.exp %132 : vector<8x192xf32>
      %cst_82 = arith.constant 1.000000e+00 : f32
      %134 = vector.broadcast %cst_82 : f32 to vector<8x192xf32>
      %135 = arith.addf %134, %133 : vector<8x192xf32>
      %136 = arith.divf %134, %135 : vector<8x192xf32>
      %137 = vector.extract_strided_slice %136 {offsets = [0, 0], sizes = [8, 64], strides = [1, 1]} : vector<8x192xf32> to vector<8x64xf32>
      %138 = vector.extract_strided_slice %136 {offsets = [0, 64], sizes = [8, 64], strides = [1, 1]} : vector<8x192xf32> to vector<8x64xf32>
      %139 = vector.extract_strided_slice %136 {offsets = [0, 128], sizes = [8, 64], strides = [1, 1]} : vector<8x192xf32> to vector<8x64xf32>
      %140 = vector.extract_strided_slice %130 {offsets = [0, 192], sizes = [8, 64], strides = [1, 1]} : vector<8x256xf32> to vector<8x64xf32>
      %141 = math.tanh %140 : vector<8x64xf32>
      %142 = arith.mulf %138, %arg26 : vector<8x64xf32>
      %143 = arith.mulf %137, %141 : vector<8x64xf32>
      %144 = arith.addf %142, %143 : vector<8x64xf32>
      %145 = math.tanh %144 : vector<8x64xf32>
      %146 = arith.mulf %139, %145 : vector<8x64xf32>
      %147 = arith.index_cast %arg24 : i32 to index
      %c0_83 = arith.constant 0 : index
      %c0_84 = arith.constant 0 : index
      %148 = vector.load %arg3[%147, %c0_83, %c0_84] : memref<8x8x1xf32, #tpu.memory_space<vmem>>, vector<1x8x1xf32>
      %149 = vector.shape_cast %148 : vector<1x8x1xf32> to vector<8x1xf32>
      %cst_85 = arith.constant 0.000000e+00 : f32
      %150 = vector.broadcast %cst_85 : f32 to vector<8x1xf32>
      %151 = arith.cmpf ogt, %149, %150 : vector<8x1xf32>
      %152 = vector.shape_cast %151 : vector<8x1xi1> to vector<8x1xi1>
      %153 = vector.broadcast %152 : vector<8x1xi1> to vector<8x64xi1>
      %154 = arith.select %153, %146, %arg25 : vector<8x64xi1>, vector<8x64xf32>
      %cst_86 = arith.constant 0.000000e+00 : f32
      %155 = vector.broadcast %cst_86 : f32 to vector<8x1xf32>
      %156 = arith.cmpf ogt, %149, %155 : vector<8x1xf32>
      %157 = vector.shape_cast %156 : vector<8x1xi1> to vector<8x1xi1>
      %158 = vector.broadcast %157 : vector<8x1xi1> to vector<8x64xi1>
      %159 = arith.select %158, %144, %arg26 : vector<8x64xi1>, vector<8x64xf32>
      %160 = vector.broadcast %149 : vector<8x1xf32> to vector<8x64xf32>
      %161 = arith.mulf %154, %160 : vector<8x64xf32>
      %162 = arith.index_cast %arg24 : i32 to index
      %c0_87 = arith.constant 0 : index
      %c0_88 = arith.constant 0 : index
      %163 = vector.load %arg23[%162, %c0_87, %c0_88] : memref<8x8x128xf32, #tpu.memory_space<vmem>>, vector<1x8x64xf32>
      %164 = vector.shape_cast %163 : vector<1x8x64xf32> to vector<8x64xf32>
      %165 = vector.shape_cast %161 : vector<8x64xf32> to vector<1x8x64xf32>
      tpu.vector_store %arg23[%162, %c0_87, %c0_88], %165 {strides = array<i32>} : memref<8x8x128xf32, #tpu.memory_space<vmem>>, vector<1x8x64xf32>,
      %166 = arith.index_cast %122 : i32 to index
      %c0_89 = arith.constant 0 : index
      %c256 = arith.constant 256 : index
      %167 = vector.load %arg22[%166, %c0_89, %c256] : memref<8x8x512xf32, #tpu.memory_space<vmem>>, vector<1x8x256xf32>
      %168 = vector.shape_cast %167 : vector<1x8x256xf32> to vector<8x256xf32>
      %169 = vector.extract_strided_slice %125 {offsets = [0, 256], sizes = [8, 256], strides = [1, 1]} : vector<8x512xf32> to vector<8x256xf32>
      %170 = arith.addf %168, %169 : vector<8x256xf32>
      %171 = vector.extract_strided_slice %170 {offsets = [0, 0], sizes = [8, 192], strides = [1, 1]} : vector<8x256xf32> to vector<8x192xf32>
      %172 = arith.negf %171 : vector<8x192xf32>
      %173 = math.exp %172 : vector<8x192xf32>
      %cst_90 = arith.constant 1.000000e+00 : f32
      %174 = vector.broadcast %cst_90 : f32 to vector<8x192xf32>
      %175 = arith.addf %174, %173 : vector<8x192xf32>
      %176 = arith.divf %174, %175 : vector<8x192xf32>
      %177 = vector.extract_strided_slice %176 {offsets = [0, 0], sizes = [8, 64], strides = [1, 1]} : vector<8x192xf32> to vector<8x64xf32>
      %178 = vector.extract_strided_slice %176 {offsets = [0, 64], sizes = [8, 64], strides = [1, 1]} : vector<8x192xf32> to vector<8x64xf32>
      %179 = vector.extract_strided_slice %176 {offsets = [0, 128], sizes = [8, 64], strides = [1, 1]} : vector<8x192xf32> to vector<8x64xf32>
      %180 = vector.extract_strided_slice %170 {offsets = [0, 192], sizes = [8, 64], strides = [1, 1]} : vector<8x256xf32> to vector<8x64xf32>
      %181 = math.tanh %180 : vector<8x64xf32>
      %182 = arith.mulf %178, %arg28 : vector<8x64xf32>
      %183 = arith.mulf %177, %181 : vector<8x64xf32>
      %184 = arith.addf %182, %183 : vector<8x64xf32>
      %185 = math.tanh %184 : vector<8x64xf32>
      %186 = arith.mulf %179, %185 : vector<8x64xf32>
      %187 = arith.index_cast %122 : i32 to index
      %c0_91 = arith.constant 0 : index
      %c0_92 = arith.constant 0 : index
      %188 = vector.load %arg3[%187, %c0_91, %c0_92] : memref<8x8x1xf32, #tpu.memory_space<vmem>>, vector<1x8x1xf32>
      %189 = vector.shape_cast %188 : vector<1x8x1xf32> to vector<8x1xf32>
      %cst_93 = arith.constant 0.000000e+00 : f32
      %190 = vector.broadcast %cst_93 : f32 to vector<8x1xf32>
      %191 = arith.cmpf ogt, %189, %190 : vector<8x1xf32>
      %192 = vector.shape_cast %191 : vector<8x1xi1> to vector<8x1xi1>
      %193 = vector.broadcast %192 : vector<8x1xi1> to vector<8x64xi1>
      %194 = arith.select %193, %186, %arg27 : vector<8x64xi1>, vector<8x64xf32>
      %cst_94 = arith.constant 0.000000e+00 : f32
      %195 = vector.broadcast %cst_94 : f32 to vector<8x1xf32>
      %196 = arith.cmpf ogt, %189, %195 : vector<8x1xf32>
      %197 = vector.shape_cast %196 : vector<8x1xi1> to vector<8x1xi1>
      %198 = vector.broadcast %197 : vector<8x1xi1> to vector<8x64xi1>
      %199 = arith.select %198, %184, %arg28 : vector<8x64xi1>, vector<8x64xf32>
      %200 = vector.broadcast %189 : vector<8x1xf32> to vector<8x64xf32>
      %201 = arith.mulf %194, %200 : vector<8x64xf32>
      %202 = arith.index_cast %122 : i32 to index
      %c0_95 = arith.constant 0 : index
      %c64 = arith.constant 64 : index
      %203 = vector.load %arg23[%202, %c0_95, %c64] : memref<8x8x128xf32, #tpu.memory_space<vmem>>, vector<1x8x64xf32>
      %204 = vector.shape_cast %203 : vector<1x8x64xf32> to vector<8x64xf32>
      %205 = vector.shape_cast %201 : vector<8x64xf32> to vector<1x8x64xf32>
      tpu.vector_store %arg23[%202, %c0_95, %c64], %205 {strides = array<i32>} : memref<8x8x128xf32, #tpu.memory_space<vmem>>, vector<1x8x64xf32>,
      scf.yield %154, %159, %194, %199 : vector<8x64xf32>, vector<8x64xf32>, vector<8x64xf32>, vector<8x64xf32>
    }
    %c0_16 = arith.constant 0 : index
    %c0_17 = arith.constant 0 : index
    %c0_18 = arith.constant 0 : index
    %19 = vector.load %arg23[%c0_16, %c0_17, %c0_18] : memref<8x8x128xf32, #tpu.memory_space<vmem>>, vector<8x8x128xf32>
    %20 = vector.shape_cast %19 : vector<8x8x128xf32> to vector<64x128xf32>
    %c0_19 = arith.constant 0 : index
    %c0_20 = arith.constant 0 : index
    %21 = vector.load %arg7[%c0_19, %c0_20] : memref<128x128xf32, #tpu.memory_space<vmem>>, vector<128x128xf32>
    %cst_21 = arith.constant dense<0.000000e+00> : vector<64x128xf32>
    %22 = tpu.matmul %20, %21, %cst_21 {dimension_numbers = #tpu.dot_dimension_numbers<[1], [0], [0], [1], [0, 0, 1, 1], [], []>} : vector<64x128xf32>, vector<128x128xf32>, vector<64x128xf32> -> vector<64x128xf32>
    %c0_22 = arith.constant 0 : index
    %c0_23 = arith.constant 0 : index
    %23 = vector.load %arg8[%c0_22, %c0_23] : memref<1x128xf32, #tpu.memory_space<vmem>>, vector<1x128xf32>
    %24 = vector.broadcast %23 : vector<1x128xf32> to vector<64x128xf32>
    %25 = arith.addf %22, %24 : vector<64x128xf32>
    %26 = arith.addf %20, %25 : vector<64x128xf32>
    %c0_24 = arith.constant 0 : index
    %c0_25 = arith.constant 0 : index
    %27 = vector.load %arg9[%c0_24, %c0_25] : memref<1x128xf32, #tpu.memory_space<vmem>>, vector<1x128xf32>
    %c0_26 = arith.constant 0 : index
    %c0_27 = arith.constant 0 : index
    %28 = vector.load %arg10[%c0_26, %c0_27] : memref<1x128xf32, #tpu.memory_space<vmem>>, vector<1x128xf32>
    %cst_28 = arith.constant dense<0.000000e+00> : vector<64xf32>
    %29 = vector.multi_reduction <add>, %26, %cst_28 [1] : vector<64x128xf32> to vector<64xf32>
    %30 = vector.shape_cast %29 : vector<64xf32> to vector<64x1xf32>
    %cst_29 = arith.constant 1.280000e+02 : f32
    %31 = vector.broadcast %cst_29 : f32 to vector<64x1xf32>
    %32 = arith.divf %30, %31 : vector<64x1xf32>
    %33 = vector.broadcast %32 : vector<64x1xf32> to vector<64x128xf32>
    %34 = arith.subf %26, %33 : vector<64x128xf32>
    %35 = arith.mulf %34, %34 : vector<64x128xf32>
    %cst_30 = arith.constant dense<0.000000e+00> : vector<64xf32>
    %36 = vector.multi_reduction <add>, %35, %cst_30 [1] : vector<64x128xf32> to vector<64xf32>
    %37 = vector.shape_cast %36 : vector<64xf32> to vector<64x1xf32>
    %cst_31 = arith.constant 1.280000e+02 : f32
    %38 = vector.broadcast %cst_31 : f32 to vector<64x1xf32>
    %39 = arith.divf %37, %38 : vector<64x1xf32>
    %40 = vector.broadcast %32 : vector<64x1xf32> to vector<64x128xf32>
    %41 = arith.subf %26, %40 : vector<64x128xf32>
    %cst_32 = arith.constant 9.99999974E-6 : f32
    %42 = vector.broadcast %cst_32 : f32 to vector<64x1xf32>
    %43 = arith.addf %39, %42 : vector<64x1xf32>
    %44 = math.rsqrt %43 : vector<64x1xf32>
    %45 = vector.broadcast %44 : vector<64x1xf32> to vector<64x128xf32>
    %46 = arith.mulf %41, %45 : vector<64x128xf32>
    %47 = vector.broadcast %27 : vector<1x128xf32> to vector<64x128xf32>
    %48 = arith.mulf %46, %47 : vector<64x128xf32>
    %49 = vector.broadcast %28 : vector<1x128xf32> to vector<64x128xf32>
    %50 = arith.addf %48, %49 : vector<64x128xf32>
    %51 = arith.truncf %50 : vector<64x128xf32> to vector<64x128xbf16>
    %c0_33 = arith.constant 0 : index
    %c0_34 = arith.constant 0 : index
    %52 = vector.load %arg11[%c0_33, %c0_34] : memref<128x2048xbf16, #tpu.memory_space<vmem>>, vector<128x2048xbf16>
    %cst_35 = arith.constant dense<0.000000e+00> : vector<64x2048xf32>
    %53 = tpu.matmul %51, %52, %cst_35 {dimension_numbers = #tpu.dot_dimension_numbers<[1], [0], [0], [1], [0, 0, 1, 1], [], []>} : vector<64x128xbf16>, vector<128x2048xbf16>, vector<64x2048xf32> -> vector<64x2048xf32>
    %c0_36 = arith.constant 0 : index
    %c0_37 = arith.constant 0 : index
    %54 = vector.load %arg12[%c0_36, %c0_37] : memref<1x2048xf32, #tpu.memory_space<vmem>>, vector<1x2048xf32>
    %55 = vector.broadcast %54 : vector<1x2048xf32> to vector<64x2048xf32>
    %56 = arith.addf %53, %55 : vector<64x2048xf32>
    %cst_38 = arith.constant 0.000000e+00 : f32
    %57 = vector.broadcast %cst_38 : f32 to vector<64x2048xf32>
    %58 = arith.maximumf %56, %57 : vector<64x2048xf32>
    %59 = arith.truncf %58 : vector<64x2048xf32> to vector<64x2048xbf16>
    %c0_39 = arith.constant 0 : index
    %c0_40 = arith.constant 0 : index
    %60 = vector.load %arg13[%c0_39, %c0_40] : memref<2048x128xbf16, #tpu.memory_space<vmem>>, vector<2048x128xbf16>
    %cst_41 = arith.constant dense<0.000000e+00> : vector<64x128xf32>
    %61 = tpu.matmul %59, %60, %cst_41 {dimension_numbers = #tpu.dot_dimension_numbers<[1], [0], [0], [1], [0, 0, 1, 1], [], []>} : vector<64x2048xbf16>, vector<2048x128xbf16>, vector<64x128xf32> -> vector<64x128xf32>
    %c0_42 = arith.constant 0 : index
    %c0_43 = arith.constant 0 : index
    %62 = vector.load %arg14[%c0_42, %c0_43] : memref<1x128xf32, #tpu.memory_space<vmem>>, vector<1x128xf32>
    %63 = vector.broadcast %62 : vector<1x128xf32> to vector<64x128xf32>
    %64 = arith.addf %61, %63 : vector<64x128xf32>
    %65 = arith.addf %50, %64 : vector<64x128xf32>
    %c0_44 = arith.constant 0 : index
    %c0_45 = arith.constant 0 : index
    %66 = vector.load %arg15[%c0_44, %c0_45] : memref<1x128xf32, #tpu.memory_space<vmem>>, vector<1x128xf32>
    %c0_46 = arith.constant 0 : index
    %c0_47 = arith.constant 0 : index
    %67 = vector.load %arg16[%c0_46, %c0_47] : memref<1x128xf32, #tpu.memory_space<vmem>>, vector<1x128xf32>
    %cst_48 = arith.constant dense<0.000000e+00> : vector<64xf32>
    %68 = vector.multi_reduction <add>, %65, %cst_48 [1] : vector<64x128xf32> to vector<64xf32>
    %69 = vector.shape_cast %68 : vector<64xf32> to vector<64x1xf32>
    %cst_49 = arith.constant 1.280000e+02 : f32
    %70 = vector.broadcast %cst_49 : f32 to vector<64x1xf32>
    %71 = arith.divf %69, %70 : vector<64x1xf32>
    %72 = vector.broadcast %71 : vector<64x1xf32> to vector<64x128xf32>
    %73 = arith.subf %65, %72 : vector<64x128xf32>
    %74 = arith.mulf %73, %73 : vector<64x128xf32>
    %cst_50 = arith.constant dense<0.000000e+00> : vector<64xf32>
    %75 = vector.multi_reduction <add>, %74, %cst_50 [1] : vector<64x128xf32> to vector<64xf32>
    %76 = vector.shape_cast %75 : vector<64xf32> to vector<64x1xf32>
    %cst_51 = arith.constant 1.280000e+02 : f32
    %77 = vector.broadcast %cst_51 : f32 to vector<64x1xf32>
    %78 = arith.divf %76, %77 : vector<64x1xf32>
    %79 = vector.broadcast %71 : vector<64x1xf32> to vector<64x128xf32>
    %80 = arith.subf %65, %79 : vector<64x128xf32>
    %cst_52 = arith.constant 9.99999974E-6 : f32
    %81 = vector.broadcast %cst_52 : f32 to vector<64x1xf32>
    %82 = arith.addf %78, %81 : vector<64x1xf32>
    %83 = math.rsqrt %82 : vector<64x1xf32>
    %84 = vector.broadcast %83 : vector<64x1xf32> to vector<64x128xf32>
    %85 = arith.mulf %80, %84 : vector<64x128xf32>
    %86 = vector.broadcast %66 : vector<1x128xf32> to vector<64x128xf32>
    %87 = arith.mulf %85, %86 : vector<64x128xf32>
    %88 = vector.broadcast %67 : vector<1x128xf32> to vector<64x128xf32>
    %89 = arith.addf %87, %88 : vector<64x128xf32>
    %c0_53 = arith.constant 0 : index
    %c0_54 = arith.constant 0 : index
    %c0_55 = arith.constant 0 : index
    %90 = vector.load %arg3[%c0_53, %c0_54, %c0_55] : memref<8x8x1xf32, #tpu.memory_space<vmem>>, vector<8x8x1xf32>
    %91 = vector.shape_cast %90 : vector<8x8x1xf32> to vector<64x1xf32>
    %cst_56 = arith.constant 0.000000e+00 : f32
    %92 = vector.broadcast %cst_56 : f32 to vector<64x1xf32>
    %93 = arith.cmpf ogt, %91, %92 : vector<64x1xf32>
    %cst_57 = arith.constant 0xFF800000 : f32
    %94 = vector.shape_cast %93 : vector<64x1xi1> to vector<64x1xi1>
    %95 = vector.broadcast %94 : vector<64x1xi1> to vector<64x128xi1>
    %96 = vector.broadcast %cst_57 : f32 to vector<64x128xf32>
    %97 = arith.select %95, %89, %96 : vector<64x128xi1>, vector<64x128xf32>
    %98 = vector.shape_cast %97 : vector<64x128xf32> to vector<8x8x128xf32>
    %cst_58 = arith.constant dense<0xFF800000> : vector<8x128xf32>
    %99 = vector.multi_reduction <maximumf>, %98, %cst_58 [0] : vector<8x8x128xf32> to vector<8x128xf32>
    %c0_59 = arith.constant 0 : index
    %c0_60 = arith.constant 0 : index
    %c0_61 = arith.constant 0 : index
    %100 = vector.load %arg3[%c0_59, %c0_60, %c0_61] : memref<8x8x1xf32, #tpu.memory_space<vmem>>, vector<8x8x1xf32>
    %cst_62 = arith.constant dense<0xFF800000> : vector<8x1xf32>
    %101 = vector.multi_reduction <maximumf>, %100, %cst_62 [0] : vector<8x8x1xf32> to vector<8x1xf32>
    %cst_63 = arith.constant 0.000000e+00 : f32
    %102 = vector.broadcast %cst_63 : f32 to vector<8x1xf32>
    %103 = arith.cmpf ogt, %101, %102 : vector<8x1xf32>
    %cst_64 = arith.constant 0.000000e+00 : f32
    %104 = vector.shape_cast %103 : vector<8x1xi1> to vector<8x1xi1>
    %105 = vector.broadcast %104 : vector<8x1xi1> to vector<8x128xi1>
    %106 = vector.broadcast %cst_64 : f32 to vector<8x128xf32>
    %107 = arith.select %105, %99, %106 : vector<8x128xi1>, vector<8x128xf32>
    %c0_65 = arith.constant 0 : index
    %c0_66 = arith.constant 0 : index
    %108 = vector.load %arg17[%c0_65, %c0_66] : memref<128x64xf32, #tpu.memory_space<vmem>>, vector<128x64xf32>
    %cst_67 = arith.constant dense<0.000000e+00> : vector<8x64xf32>
    %109 = tpu.matmul %107, %108, %cst_67 {dimension_numbers = #tpu.dot_dimension_numbers<[1], [0], [0], [1], [0, 0, 1, 1], [], []>} : vector<8x128xf32>, vector<128x64xf32>, vector<8x64xf32> -> vector<8x64xf32>
    %c0_68 = arith.constant 0 : index
    %c0_69 = arith.constant 0 : index
    %110 = vector.load %arg18[%c0_68, %c0_69] : memref<1x64xf32, #tpu.memory_space<vmem>>, vector<1x64xf32>
    %111 = vector.broadcast %110 : vector<1x64xf32> to vector<8x64xf32>
    %112 = arith.addf %109, %111 : vector<8x64xf32>
    %cst_70 = arith.constant 0.000000e+00 : f32
    %113 = vector.broadcast %cst_70 : f32 to vector<8x64xf32>
    %114 = arith.maximumf %112, %113 : vector<8x64xf32>
    %c0_71 = arith.constant 0 : index
    %c0_72 = arith.constant 0 : index
    %115 = vector.load %arg19[%c0_71, %c0_72] : memref<64x3xf32, #tpu.memory_space<vmem>>, vector<64x3xf32>
    %cst_73 = arith.constant dense<0.000000e+00> : vector<8x3xf32>
    %116 = tpu.matmul %114, %115, %cst_73 {dimension_numbers = #tpu.dot_dimension_numbers<[1], [0], [0], [1], [0, 0, 1, 1], [], []>} : vector<8x64xf32>, vector<64x3xf32>, vector<8x3xf32> -> vector<8x3xf32>
    %c0_74 = arith.constant 0 : index
    %c0_75 = arith.constant 0 : index
    %117 = vector.load %arg20[%c0_74, %c0_75] : memref<1x3xf32, #tpu.memory_space<vmem>>, vector<1x3xf32>
    %118 = vector.broadcast %117 : vector<1x3xf32> to vector<8x3xf32>
    %119 = arith.addf %116, %118 : vector<8x3xf32>
    %c0_76 = arith.constant 0 : index
    %c0_77 = arith.constant 0 : index
    %120 = vector.load %arg21[%c0_76, %c0_77] : memref<8x3xf32, #tpu.memory_space<vmem>>, vector<8x3xf32>
    tpu.vector_store %arg21[%c0_76, %c0_77], %119 {strides = array<i32>} : memref<8x3xf32, #tpu.memory_space<vmem>>, vector<8x3xf32>,
    return
  }
  func.func @transform_0(%arg0: i32, %arg1: memref<1xi32, #tpu.memory_space<smem>>) -> (i32, i32, i32) {
    %c0_i32 = arith.constant 0 : i32
    %c0_i32_0 = arith.constant 0 : i32
    %c0_i32_1 = arith.constant 0 : i32
    return %c0_i32, %arg0, %c0_i32_0 : i32, i32, i32
  }
  func.func @transform_1(%arg0: i32, %arg1: memref<1xi32, #tpu.memory_space<smem>>) -> (i32, i32, i32) {
    %c0_i32 = arith.constant 0 : i32
    %c0_i32_0 = arith.constant 0 : i32
    %c0_i32_1 = arith.constant 0 : i32
    return %c0_i32, %arg0, %c0_i32_0 : i32, i32, i32
  }
  func.func @transform_2(%arg0: i32, %arg1: memref<1xi32, #tpu.memory_space<smem>>) -> (i32, i32) {
    %c0_i32 = arith.constant 0 : i32
    %c0_i32_0 = arith.constant 0 : i32
    %c0_i32_1 = arith.constant 0 : i32
    return %c0_i32, %c0_i32_0 : i32, i32
  }
  func.func @transform_3(%arg0: i32, %arg1: memref<1xi32, #tpu.memory_space<smem>>) -> (i32, i32) {
    %c0_i32 = arith.constant 0 : i32
    %c0_i32_0 = arith.constant 0 : i32
    %c0_i32_1 = arith.constant 0 : i32
    return %c0_i32, %c0_i32_0 : i32, i32
  }
  func.func @transform_4(%arg0: i32, %arg1: memref<1xi32, #tpu.memory_space<smem>>) -> (i32, i32) {
    %c0_i32 = arith.constant 0 : i32
    %c0_i32_0 = arith.constant 0 : i32
    %c0_i32_1 = arith.constant 0 : i32
    return %c0_i32, %c0_i32_0 : i32, i32
  }
  func.func @transform_5(%arg0: i32, %arg1: memref<1xi32, #tpu.memory_space<smem>>) -> (i32, i32) {
    %c0_i32 = arith.constant 0 : i32
    %c0_i32_0 = arith.constant 0 : i32
    %c0_i32_1 = arith.constant 0 : i32
    return %c0_i32, %c0_i32_0 : i32, i32
  }
  func.func @transform_6(%arg0: i32, %arg1: memref<1xi32, #tpu.memory_space<smem>>) -> (i32, i32) {
    %c0_i32 = arith.constant 0 : i32
    %c0_i32_0 = arith.constant 0 : i32
    %c0_i32_1 = arith.constant 0 : i32
    return %c0_i32, %c0_i32_0 : i32, i32
  }
  func.func @transform_7(%arg0: i32, %arg1: memref<1xi32, #tpu.memory_space<smem>>) -> (i32, i32) {
    %c0_i32 = arith.constant 0 : i32
    %c0_i32_0 = arith.constant 0 : i32
    %c0_i32_1 = arith.constant 0 : i32
    return %c0_i32, %c0_i32_0 : i32, i32
  }
  func.func @transform_8(%arg0: i32, %arg1: memref<1xi32, #tpu.memory_space<smem>>) -> (i32, i32) {
    %c0_i32 = arith.constant 0 : i32
    %c0_i32_0 = arith.constant 0 : i32
    %c0_i32_1 = arith.constant 0 : i32
    return %c0_i32, %c0_i32_0 : i32, i32
  }
  func.func @transform_9(%arg0: i32, %arg1: memref<1xi32, #tpu.memory_space<smem>>) -> (i32, i32) {
    %c0_i32 = arith.constant 0 : i32
    %c0_i32_0 = arith.constant 0 : i32
    %c0_i32_1 = arith.constant 0 : i32
    return %c0_i32, %c0_i32_0 : i32, i32
  }
  func.func @transform_10(%arg0: i32, %arg1: memref<1xi32, #tpu.memory_space<smem>>) -> (i32, i32) {
    %c0_i32 = arith.constant 0 : i32
    %c0_i32_0 = arith.constant 0 : i32
    %c0_i32_1 = arith.constant 0 : i32
    return %c0_i32, %c0_i32_0 : i32, i32
  }
  func.func @transform_11(%arg0: i32, %arg1: memref<1xi32, #tpu.memory_space<smem>>) -> (i32, i32) {
    %c0_i32 = arith.constant 0 : i32
    %c0_i32_0 = arith.constant 0 : i32
    %c0_i32_1 = arith.constant 0 : i32
    return %c0_i32, %c0_i32_0 : i32, i32
  }
  func.func @transform_12(%arg0: i32, %arg1: memref<1xi32, #tpu.memory_space<smem>>) -> (i32, i32) {
    %c0_i32 = arith.constant 0 : i32
    %c0_i32_0 = arith.constant 0 : i32
    %c0_i32_1 = arith.constant 0 : i32
    return %c0_i32, %c0_i32_0 : i32, i32
  }
  func.func @transform_13(%arg0: i32, %arg1: memref<1xi32, #tpu.memory_space<smem>>) -> (i32, i32) {
    %c0_i32 = arith.constant 0 : i32
    %c0_i32_0 = arith.constant 0 : i32
    %c0_i32_1 = arith.constant 0 : i32
    return %c0_i32, %c0_i32_0 : i32, i32
  }
  func.func @transform_14(%arg0: i32, %arg1: memref<1xi32, #tpu.memory_space<smem>>) -> (i32, i32) {
    %c0_i32 = arith.constant 0 : i32
    %c0_i32_0 = arith.constant 0 : i32
    %c0_i32_1 = arith.constant 0 : i32
    return %c0_i32, %c0_i32_0 : i32, i32
  }
  func.func @transform_15(%arg0: i32, %arg1: memref<1xi32, #tpu.memory_space<smem>>) -> (i32, i32) {
    %c0_i32 = arith.constant 0 : i32
    %c0_i32_0 = arith.constant 0 : i32
    %c0_i32_1 = arith.constant 0 : i32
    return %c0_i32, %c0_i32_0 : i32, i32
  }
  func.func @transform_16(%arg0: i32, %arg1: memref<1xi32, #tpu.memory_space<smem>>) -> (i32, i32) {
    %c0_i32 = arith.constant 0 : i32
    %c0_i32_0 = arith.constant 0 : i32
    %c0_i32_1 = arith.constant 0 : i32
    return %c0_i32, %c0_i32_0 : i32, i32
  }
  func.func @transform_17(%arg0: i32, %arg1: memref<1xi32, #tpu.memory_space<smem>>) -> (i32, i32) {
    %c0_i32 = arith.constant 0 : i32
    %c0_i32_0 = arith.constant 0 : i32
    %c0_i32_1 = arith.constant 0 : i32
    return %c0_i32, %c0_i32_0 : i32, i32
  }
  func.func @transform_18(%arg0: i32, %arg1: memref<1xi32, #tpu.memory_space<smem>>) -> (i32, i32) {
    %c0_i32 = arith.constant 0 : i32
    %c0_i32_0 = arith.constant 0 : i32
    %c0_i32_1 = arith.constant 0 : i32
    return %c0_i32, %c0_i32_0 : i32, i32
  }
  func.func @transform_19(%arg0: i32, %arg1: memref<1xi32, #tpu.memory_space<smem>>) -> (i32, i32) {
    %c0_i32 = arith.constant 0 : i32
    %c0_i32_0 = arith.constant 0 : i32
    return %arg0, %c0_i32 : i32, i32
  }
}

</mosaic_0001>

<bundles_post_ra>
// kernel: lstm3segatt_forward.1
= control target key start
LH: loop header
LB: loop body
LE: loop exit
PB: predicated region body
PF: predicated region fallthrough
CT: control target
= control target key end

     0   :  { %s7754_s0 = inlined_call_operand.<no memory space> [shape: s32[1], index: 0, kind: input, shape index: {}]   ;;  %s7755_s1 = inlined_call_operand.vmem [shape: f32[8,8,64], index: 1, kind: input, shape index: {}]   ;;  %s7756_s2 = inlined_call_operand.vmem [shape: f32[8,8,1], index: 2, kind: input, shape index: {}]   ;;  %s7757_s3 = inlined_call_operand.hbm [shape: bf16[64,512], index: 3, kind: input, shape index: {}]   ;;  %s7758_s4 = inlined_call_operand.vmem [shape: f32[1,512], index: 4, kind: input, shape index: {}]   ;;  %s7759_s5 = inlined_call_operand.vmem [shape: bf16[128,512], index: 5, kind: input, shape index: {}]   ;;  %s7760_s6 = inlined_call_operand.hbm [shape: f32[128,128], index: 6, kind: input, shape index: {}]   ;;  %s7761_s7 = inlined_call_operand.vmem [shape: f32[1,128], index: 7, kind: input, shape index: {}]   ;;  %s7762_s8 = inlined_call_operand.vmem [shape: f32[1,128], index: 8, kind: input, shape index: {}]   ;;  %s7763_s9 = inlined_call_operand.vmem [shape: f32[1,128], index: 9, kind: input, shape index: {}]   ;;  %s7764_s10 = inlined_call_operand.vmem [shape: bf16[128,2048], index: 10, kind: input, shape index: {}]   ;;  %s7765_s11 = inlined_call_operand.hbm [shape: f32[1,2048], index: 11, kind: input, shape index: {}]   ;;  %s7766_s12 = inlined_call_operand.hbm [shape: bf16[2048,128], index: 12, kind: input, shape index: {}]   ;;  %s7767_s13 = inlined_call_operand.vmem [shape: f32[1,128], index: 13, kind: input, shape index: {}]   ;;  %s7768_s14 = inlined_call_operand.vmem [shape: f32[1,128], index: 14, kind: input, shape index: {}]   ;;  %s7769_s15 = inlined_call_operand.vmem [shape: f32[1,128], index: 15, kind: input, shape index: {}]   ;;  %s7770_s16 = inlined_call_operand.vmem [shape: f32[128,64], index: 16, kind: input, shape index: {}]   ;;  %s7771_s17 = inlined_call_operand.vmem [shape: f32[1,64], index: 17, kind: input, shape index: {}]   ;;  %s7772_s18 = inlined_call_operand.vmem [shape: f32[64,3], index: 18, kind: input, shape index: {}]   ;;  %s7773_s19 = inlined_call_operand.hbm [shape: f32[1,3], index: 19, kind: input, shape index: {}]   ;;  %s7774_s20 = inlined_call_operand.vmem [shape: f32[8,3], index: 20, kind: output, shape index: {}]  }
   0x1   :  { %7780 = sst [smem:[#allocation17_spill]] %s7754_s0 }
   0x2   :  { %7781 = sst [smem:[#allocation18_spill]] %s7755_s1 }
   0x3   :  { %7782 = sst [smem:[#allocation19_spill]] %s7756_s2 }
   0x4   :  { %7783 = sst [smem:[#allocation20_spill]] %s7757_s3 }
   0x5   :  { %7784 = sst [smem:[#allocation21_spill]] %s7758_s4 }
   0x6   :  { %26 = vsyncpa [#allocation7], 0 }
   0x7   :  { %27 = vsyncpa [#allocation9], 0 }
   0x8   :  { %28 = vsyncpa [#allocation12], 0  ;;  %s6051_s1 = smov [#allocation8]   ;;  %s5895_s2 = scalar_lea.hbm %s7760_s6, 2048 }
   0x9   :  { %s54_s22 = sshll.u32 %s6051_s1, 4  ;;  %p5896_p0 = scmp.ne.s32.totalorder %s7760_s6, %s5895_s2  ;;  %s55_s22 = int_to_ptr.vmem [resolvable:$true] %s54_s22 }
   0xa   :  { %p5899_p1 = scmp.lt.u32.totalorder %s5895_s2, %s7760_s6 }
   0xc   :  { %p5901_p2 = pnand %p5899_p1, %p5896_p0 }
   0xe   :  { %5904 = shalt.err (!%p5901_p2)
}
   0xf   :  { %s5905_s28 = scalar_lea.vmem %s55_s22, 2048  ;;  %p5910_p4 = scmp.lt.s32.totalorder %s55_s22, %s55_s22 }
  0x10   :  { %p5906_p3 = scmp.ne.s32.totalorder %s55_s22, %s5905_s28  ;;  %p5911_p5 = scmp.lt.s32.totalorder %s5905_s28, %s5905_s28 }
  0x12   :  { %p5912_p6 = por %p5911_p5, %p5910_p4 }
  0x14   :  { %p5913_p7 = pnand %p5912_p6, %p5906_p3 }
  0x16   :  { %5916 = shalt.err (!%p5913_p7)
}
  0x17   :  { %s6052_s4 = smov 128   ;;  %s6053_s29 = smov 8  }
  0x18   :  { %60 = dma.hbm_to_vmem [thread:$0]  %s7760_s6, 2048, %s55_s22, [#allocation9], %s6052_s4, %s6052_s4, %s6053_s29  }
  0x19   :  { %s6054_s21 = smov [#allocation11]   ;;  %s5917_s2 = scalar_lea.hbm %s7766_s12, 16384 }
  0x1a   :  { %s84_s1 = sshll.u32 %s6054_s21, 4  ;;  %p5918_p8 = scmp.ne.s32.totalorder %s7766_s12, %s5917_s2  ;;  %s85_s1 = int_to_ptr.vmem [resolvable:$true] %s84_s1 }
  0x1b   :  { %p5921_p9 = scmp.lt.u32.totalorder %s5917_s2, %s7766_s12 }
  0x1d   :  { %p5923_p10 = pnand %p5921_p9, %p5918_p8 }
  0x1f   :  { %5926 = shalt.err (!%p5923_p10)
}
  0x20   :  { %s5927_s28 = scalar_lea.vmem %s85_s1, 16384  ;;  %p5932_p12 = scmp.lt.s32.totalorder %s85_s1, %s85_s1 }
  0x21   :  { %p5928_p11 = scmp.ne.s32.totalorder %s85_s1, %s5927_s28  ;;  %p5933_p13 = scmp.lt.s32.totalorder %s5927_s28, %s5927_s28 }
  0x23   :  { %p5934_p0 = por %p5933_p13, %p5932_p12 }
  0x25   :  { %p5935_p1 = pnand %p5934_p0, %p5928_p11 }
  0x27   :  { %5938 = shalt.err (!%p5935_p1)
}
  0x28   :  { %s6055_s6 = smov 64   ;;  %s6056_s22 = smov 4  }
  0x29   :  { %90 = dma.hbm_to_vmem [thread:$0]  %s7766_s12, 16384, %s85_s1, [#allocation12], %s6055_s6, %s6055_s6, %s6056_s22  }
  0x2a   :  { %s6057_s30 = smov [#allocation6]   ;;  %s7785_s24 = sld [smem:[#allocation20_spill]] }
  0x2b   :  { %s38_s0 = sshll.u32 %s6057_s30, 4  ;;  %s39_s0 = int_to_ptr.vmem [resolvable:$true] %s38_s0 }
  0x30   :  { %s5939_s2 = scalar_lea.hbm %s7785_s24, 2048 }
  0x31   :  { %p5940_p2 = scmp.ne.s32.totalorder %s7785_s24, %s5939_s2  ;;  %p5943_p3 = scmp.lt.u32.totalorder %s5939_s2, %s7785_s24 }
  0x33   :  { %p5945_p4 = pnand %p5943_p3, %p5940_p2 }
  0x35   :  { %5948 = shalt.err (!%p5945_p4)
}
  0x36   :  { %s5949_s28 = scalar_lea.vmem %s39_s0, 2048  ;;  %p5954_p6 = scmp.lt.s32.totalorder %s39_s0, %s39_s0 }
  0x37   :  { %p5950_p5 = scmp.ne.s32.totalorder %s39_s0, %s5949_s28  ;;  %p5955_p7 = scmp.lt.s32.totalorder %s5949_s28, %s5949_s28 }
  0x39   :  { %p5956_p8 = por %p5955_p7, %p5954_p6 }
  0x3b   :  { %p5957_p9 = pnand %p5956_p8, %p5950_p5 }
  0x3d   :  { %5960 = shalt.err (!%p5957_p9)
}
  0x3e   :  { %s6058_s12 = smov 256   ;;  %s6059_s1 = smov 16  }
  0x3f   :  { %44 = dma.hbm_to_vmem [thread:$0]  %s7785_s24, 2048, %s39_s0, [#allocation7], %s6058_s12, %s6058_s12, %s6059_s1  }
  0x40   :  { %s6060_s4 = smov [#allocation10]   ;;  %s6061_s30 = smov [#allocation13]  }
  0x41   :  { %s75_s29 = sshll.u32 %s6060_s4, 4  ;;  %s109_s21 = sshll.u32 %s6061_s30, 4  ;;  %s76_s29 = int_to_ptr.vmem [resolvable:$true] %s75_s29  ;;  %s110_s21 = int_to_ptr.vmem [resolvable:$true] %s109_s21 }
  0x42   :  { %s5961_s25 = scalar_lea.hbm %s7765_s11, 256 }
  0x43   :  { %p5962_p10 = scmp.ne.s32.totalorder %s7765_s11, %s5961_s25  ;;  %p5965_p11 = scmp.lt.u32.totalorder %s5961_s25, %s7765_s11 }
  0x45   :  { %p5967_p12 = pnand %p5965_p11, %p5962_p10 }
  0x47   :  { %5970 = shalt.err (!%p5967_p12)
}
  0x48   :  { %s5971_s0 = scalar_lea.vmem %s76_s29, 256  ;;  %p5976_p0 = scmp.lt.s32.totalorder %s76_s29, %s76_s29 }
  0x49   :  { %p5972_p13 = scmp.ne.s32.totalorder %s76_s29, %s5971_s0  ;;  %p5977_p1 = scmp.lt.s32.totalorder %s5971_s0, %s5971_s0 }
  0x4b   :  { %p5978_p2 = por %p5977_p1, %p5976_p0 }
  0x4d   :  { %p5979_p3 = pnand %p5978_p2, %p5972_p13 }
  0x4f   :  { %5982 = shalt.err (!%p5979_p3)
}
  0x50   :  { %78 = dma.hbm_to_vmem [thread:$0]  %s7765_s11, 256, %s76_s29, [#allocation9]  }
  0x51   :  { %s5983_s22 = scalar_lea.hbm %s7773_s19, 16 }
  0x52   :  { %p5984_p4 = scmp.ne.s32.totalorder %s7773_s19, %s5983_s22  ;;  %p5987_p5 = scmp.lt.u32.totalorder %s5983_s22, %s7773_s19 }
  0x54   :  { %p5989_p6 = pnand %p5987_p5, %p5984_p4 }
  0x56   :  { %5992 = shalt.err (!%p5989_p6)
}
  0x57   :  { %s5993_s25 = scalar_lea.vmem %s110_s21, 16  ;;  %s5997_s3 = scalar_lea.vmem %s110_s21, 32 }
  0x58   :  { %p5994_p7 = scmp.ne.s32.totalorder %s110_s21, %s5993_s25  ;;  %p5998_p8 = scmp.lt.s32.totalorder %s110_s21, %s110_s21 }
  0x59   :  { %p5999_p9 = scmp.lt.s32.totalorder %s5997_s3, %s5993_s25 }
  0x5b   :  { %p6000_p10 = por %p5999_p9, %p5998_p8 }
  0x5d   :  { %p6001_p11 = pnand %p6000_p10, %p5994_p7 }
  0x5f   :  { %6004 = shalt.err (!%p6001_p11)
}
  0x60   :  { %112 = dma.hbm_to_vmem [thread:$0]  %s7773_s19, 16, %s110_s21, [#allocation12]  }
  0x61   :  { %6025 = dma.done.wait [#allocation7], 2048  }
  0x62   :  { %6026 = vsyncadd [#allocation7], 4294965248 }
  0x63   :  { %6027 = dma.done.wait [#allocation9], 2304  }
  0x64   :  { %6028 = vsyncadd [#allocation9], 4294964992 }
  0x65   :  { %6029 = dma.done.wait [#allocation12], 16400  }
  0x66   :  { %6030 = vsyncadd [#allocation12], 4294950896  ;;  %v6062_v0 = vmov 0.0   ;;  %v6063_v1 = vmov 0   ;;  %v6246_v2 = vld [vmem:[%s7759_s5] sm:$0xff]  ;;  %v6251_v3 = vld [vmem:[%s7759_s5 + $0x8] sm:$0xff]  ;;  %v200_v62 = vlaneseq }
  0x67   :  { %130 = vst [vmem:[#allocation3] sm:$0xff] %v6062_v0  ;;  %131 = vst [vmem:[#allocation3 + $0x8] sm:$0xff] %v6062_v0  ;;  %345 = vmatprep.mubr.bf16.mxu0 %v6063_v1  ;;  %418 = vmatprep.mubr.bf16.mxu1 %v6063_v1  ;;  %v6256_v4 = vld [vmem:[%s7759_s5 + $0x10] sm:$0xff]  ;;  %v6261_v5 = vld [vmem:[%s7759_s5 + $0x18] sm:$0xff]  ;;  %s7786_s1 = sld [smem:[#allocation18_spill]]  ;;  %vm300_vm0 = vcmask 523264  }
  0x68   :  { %132 = vst [vmem:[#allocation3 + $0x10] sm:$0xff] %v6062_v0  ;;  %133 = vst [vmem:[#allocation3 + $0x18] sm:$0xff] %v6062_v0  ;;  %v6266_v6 = vld [vmem:[%s7759_s5 + $0x20] sm:$0xff]  ;;  %v6271_v7 = vld [vmem:[%s7759_s5 + $0x28] sm:$0xff]  ;;  %v6441_v63 = vshrl.u32 %v200_v62, 7  ;;  %s7787_s24 = sld [smem:[#allocation21_spill]] }
  0x69   :  { %134 = vst [vmem:[#allocation3 + $0x20] sm:$0xff] %v6062_v0  ;;  %135 = vst [vmem:[#allocation3 + $0x28] sm:$0xff] %v6062_v0  ;;  %v6276_v8 = vld [vmem:[%s7759_s5 + $0x30] sm:$0xff]  ;;  %v6281_v9 = vld [vmem:[%s7759_s5 + $0x38] sm:$0xff] }
  0x6a   :  { %136 = vst [vmem:[#allocation3 + $0x30] sm:$0xff] %v6062_v0  ;;  %137 = vst [vmem:[#allocation3 + $0x38] sm:$0xff] %v6062_v0  ;;  %v6286_v10 = vld [vmem:[%s7759_s5 + $0x40] sm:$0xff]  ;;  %v6291_v11 = vld [vmem:[%s7759_s5 + $0x48] sm:$0xff] }
  0x6b   :  { %v6296_v12 = vld [vmem:[%s7759_s5 + $0x50] sm:$0xff]  ;;  %v6301_v13 = vld [vmem:[%s7759_s5 + $0x58] sm:$0xff]  ;;  %v6306_v14 = vld [vmem:[%s7759_s5 + $0x60] sm:$0xff] }
  0x6c   :  { %v6311_v15 = vld [vmem:[%s7759_s5 + $0x68] sm:$0xff]  ;;  %v6316_v16 = vld [vmem:[%s7759_s5 + $0x70] sm:$0xff]  ;;  %v6321_v17 = vld [vmem:[%s7759_s5 + $0x78] sm:$0xff] }
  0x6d   :  { %v6326_v18 = vld [vmem:[%s7759_s5 + $0x80] sm:$0xff]  ;;  %v6331_v19 = vld [vmem:[%s7759_s5 + $0x88] sm:$0xff]  ;;  %v6336_v20 = vld [vmem:[%s7759_s5 + $0x90] sm:$0xff] }
  0x6e   :  { %v6341_v21 = vld [vmem:[%s7759_s5 + $0x98] sm:$0xff]  ;;  %v6346_v22 = vld [vmem:[%s7759_s5 + $0xa0] sm:$0xff]  ;;  %v6351_v23 = vld [vmem:[%s7759_s5 + $0xa8] sm:$0xff] }
  0x6f   :  { %v6356_v24 = vld [vmem:[%s7759_s5 + $0xb0] sm:$0xff]  ;;  %v6361_v25 = vld [vmem:[%s7759_s5 + $0xb8] sm:$0xff]  ;;  %v6366_v26 = vld [vmem:[%s7759_s5 + $0xc0] sm:$0xff] }
  0x70   :  { %v6371_v27 = vld [vmem:[%s7759_s5 + $0xc8] sm:$0xff]  ;;  %v6376_v28 = vld [vmem:[%s7759_s5 + $0xd0] sm:$0xff]  ;;  %v6381_v29 = vld [vmem:[%s7759_s5 + $0xd8] sm:$0xff] }
  0x71   :  { %v6386_v30 = vld [vmem:[%s7759_s5 + $0xe0] sm:$0xff]  ;;  %v6391_v31 = vld [vmem:[%s7759_s5 + $0xe8] sm:$0xff]  ;;  %v6396_v32 = vld [vmem:[%s7759_s5 + $0xf0] sm:$0xff] }
  0x72   :  { %v6401_v33 = vld [vmem:[%s7759_s5 + $0xf8] sm:$0xff]  ;;  %v5683_v34 = vld [vmem:[#allocation6 + $0x4] ss:$16 sps:$4 sm:$0xff]   ;;  %v5687_v36 = vld [vmem:[#allocation6] ss:$16 sps:$4 sm:$0xff]  }
  0x73   :  { %v5685_v35 = vld [vmem:[#allocation6 + $0xc] ss:$16 sps:$4 sm:$0xff]   ;;  %313 = vmatprep.subr.bf16.mxu0 %v5683_v34  ;;  %v5688_v37 = vld [vmem:[#allocation6 + $0x8] ss:$16 sps:$4 sm:$0xff]   ;;  %v5689_v38 = vld [vmem:[#allocation6 + $0x24] ss:$16 sps:$4 sm:$0xff]  }
  0x74   :  { %386 = vmatprep.subr.bf16.mxu1 %v5685_v35  ;;  %314 = vmatpush1.bf16.msra.mxu0 %v5687_v36  ;;  %v5691_v39 = vld [vmem:[#allocation6 + $0x2c] ss:$16 sps:$4 sm:$0xff]   ;;  %v5693_v40 = vld [vmem:[#allocation6 + $0x20] ss:$16 sps:$4 sm:$0xff]   ;;  %v5694_v41 = vld [vmem:[#allocation6 + $0x28] ss:$16 sps:$4 sm:$0xff]  }
  0x75   :  { %387 = vmatpush1.bf16.msra.mxu1 %v5688_v37  ;;  %315 = vmatprep.subr.bf16.mxu0 %v5689_v38  ;;  %v5695_v42 = vld [vmem:[#allocation6 + $0x44] ss:$16 sps:$4 sm:$0xff]   ;;  %v5697_v43 = vld [vmem:[#allocation6 + $0x4c] ss:$16 sps:$4 sm:$0xff]   ;;  %v5699_v44 = vld [vmem:[#allocation6 + $0x40] ss:$16 sps:$4 sm:$0xff]  }
  0x76   :  { %388 = vmatprep.subr.bf16.mxu1 %v5691_v39  ;;  %v5700_v45 = vld [vmem:[#allocation6 + $0x48] ss:$16 sps:$4 sm:$0xff]   ;;  %v5701_v46 = vld [vmem:[#allocation6 + $0x64] ss:$16 sps:$4 sm:$0xff]   ;;  %v5703_v47 = vld [vmem:[#allocation6 + $0x6c] ss:$16 sps:$4 sm:$0xff]  }
  0x77   :  { %v5705_v48 = vld [vmem:[#allocation6 + $0x60] ss:$16 sps:$4 sm:$0xff]   ;;  %v171_v50 = vld [vmem:[%s7786_s1 + $0x8] sm:$0xff]  ;;  %v173_v54 = vld [vmem:[%s7786_s1 + $0x18] sm:$0xff]  ;;  %v6444_v34 = vsub.s32 0, %v6441_v63  ;;  %v6450_v36 = vsub.s32 2, %v6441_v63 }
  0x78   :  { %316 = vmatpush1.bf16.msra.mxu0 %v5693_v40  ;;  %v170_v49 = vld [vmem:[%s7786_s1] sm:$0xff]  ;;  %v5706_v51 = vld [vmem:[#allocation6 + $0x68] ss:$16 sps:$4 sm:$0xff]   ;;  %v172_v53 = vld [vmem:[%s7786_s1 + $0x10] sm:$0xff]  ;;  %v6453_v37 = vsub.s32 1, %v6441_v63  ;;  %v6456_v38 = vsub.s32 3, %v6441_v63 }
  0x79   :  { %389 = vmatpush1.bf16.msra.mxu1 %v5694_v41  ;;  %317 = vmatprep.subr.bf16.mxu0 %v5695_v42  ;;  %v178_v52 = vpack.c.bf16 %v171_v50, %v170_v49  ;;  %v179_v55 = vpack.c.bf16 %v173_v54, %v172_v53  ;;  %v174_v56 = vld [vmem:[%s7786_s1 + $0x20] sm:$0xff]  ;;  %v175_v57 = vld [vmem:[%s7786_s1 + $0x28] sm:$0xff]  ;;  %v176_v59 = vld [vmem:[%s7786_s1 + $0x30] sm:$0xff] }
  0x7a   :  { %390 = vmatprep.subr.bf16.mxu1 %v5697_v43  ;;  %v180_v58 = vpack.c.bf16 %v175_v57, %v174_v56  ;;  %v177_v60 = vld [vmem:[%s7786_s1 + $0x38] sm:$0xff]  ;;  %v198_v35 = vld [vmem:[%s7787_s24] sm:$0xf]  ;;  %s7788_s1 = sld [smem:[#allocation17_spill]] }
  0x7b   :  { %v181_v61 = vpack.c.bf16 %v177_v60, %v176_v59  ;;  %v6459_v39 = vrot.slane %v198_v35, %v6444_v34  ;;  %v6462_v40 = vrot.slane %v198_v35, %v6450_v36  ;;  %v6465_v41 = vrot.slane %v198_v35, %v6453_v37 }
  0x7c   :  { %318 = vmatpush1.bf16.msra.mxu0 %v5699_v44  ;;  %v6468_v42 = vrot.slane %v198_v35, %v6456_v38 }
  0x7d   :  { %391 = vmatpush1.bf16.msra.mxu1 %v5700_v45  ;;  %319 = vmatprep.subr.bf16.mxu0 %v5701_v46 }
  0x7e   :  { %392 = vmatprep.subr.bf16.mxu1 %v5703_v47 }
  0x80   :  { %320 = vmatpush1.bf16.msra.mxu0 %v5705_v48  ;;  %p4778_p12 = scmp.le.s32.totalorder %s7788_s1, 0 }
  0x81   :  { %393 = vmatpush1.bf16.msra.mxu1 %v5706_v51  ;;  %s6513_s6 = smov (!%p4778_p12), 0  }
  0x83   :  { %4770 = vmatmul.mubr.msk.bf16.vlgmr.msra.gmra.mrb[0].mxu0 %vm300_vm0, %v178_v52 }
  0x84   :  { %4774 = vmatmul.mubr.msk.bf16.vlgmr.msra.gmra.mrb[0].mxu1 %vm300_vm0, %v178_v52  ;;  %355 = vmatprep.mubr.bf16.mxu0 %v6063_v1 }
  0x85   :  { %428 = vmatprep.mubr.bf16.mxu1 %v6063_v1 }
  0x8b   :  { %4771 = vmatmul.mubr.msk.bf16.gmra.mrb[4].mxu0 %vm300_vm0, %v179_v55 }
  0x8c   :  { %4775 = vmatmul.mubr.msk.bf16.gmra.mrb[4].mxu1 %vm300_vm0, %v179_v55  ;;  %365 = vmatprep.mubr.bf16.mxu0 %v6063_v1 }
  0x8d   :  { %438 = vmatprep.mubr.bf16.mxu1 %v6063_v1 }
  0x93   :  { %4772 = vmatmul.mubr.msk.bf16.gmra.mrb[8].mxu0 %vm300_vm0, %v180_v58 }
  0x94   :  { %4776 = vmatmul.mubr.msk.bf16.gmra.mrb[8].mxu1 %vm300_vm0, %v180_v58  ;;  %375 = vmatprep.mubr.bf16.mxu0 %v6063_v1 }
  0x95   :  { %448 = vmatprep.mubr.bf16.mxu1 %v6063_v1 }
  0x9b   :  { %4773 = vmatmul.mubr.msk.bf16.gmra.mrb[12].mxu0 %vm300_vm0, %v181_v61 }
  0x9c   :  { %4777 = vmatmul.mubr.msk.bf16.gmra.mrb[12].mxu1 %vm300_vm0, %v181_v61 }
 0x156   :  { %v347_v43 = vpop.f32.mrb[0].mxu0 }
 0x157   :  { %v348_v44 = vadd.f32 %v347_v43, %v6459_v39  ;;  %v420_v45 = vpop.f32.mrb[0].mxu1  ;;  %v349_v46 = vpop.f32.mrb[1].mxu0 }
 0x158   :  { %v421_v47 = vadd.f32 %v420_v45, %v6462_v40  ;;  %v350_v48 = vadd.f32 %v349_v46, %v6465_v41  ;;  %v422_v49 = vpop.f32.mrb[1].mxu1  ;;  %v351_v50 = vpop.f32.mrb[2].mxu0 }
 0x159   :  { %459 = vst [vmem:[#allocation2] sm:$0xff] %v348_v44  ;;  %v423_v51 = vadd.f32 %v422_v49, %v6468_v42  ;;  %v352_v52 = vadd.f32 %v351_v50, %v6459_v39  ;;  %v424_v53 = vpop.f32.mrb[2].mxu1  ;;  %v353_v54 = vpop.f32.mrb[3].mxu0 }
 0x15a   :  { %461 = vst [vmem:[#allocation2 + $0x10] sm:$0xff] %v421_v47  ;;  %460 = vst [vmem:[#allocation2 + $0x8] sm:$0xff] %v350_v48  ;;  %v425_v55 = vadd.f32 %v424_v53, %v6462_v40  ;;  %v354_v56 = vadd.f32 %v353_v54, %v6465_v41  ;;  %v426_v57 = vpop.f32.mrb[3].mxu1 }
 0x15b   :  { %462 = vst [vmem:[#allocation2 + $0x18] sm:$0xff] %v423_v51  ;;  %463 = vst [vmem:[#allocation2 + $0x20] sm:$0xff] %v352_v52  ;;  %v427_v58 = vadd.f32 %v426_v57, %v6468_v42 }
 0x15c   :  { %465 = vst [vmem:[#allocation2 + $0x30] sm:$0xff] %v425_v55  ;;  %464 = vst [vmem:[#allocation2 + $0x28] sm:$0xff] %v354_v56 }
 0x15d   :  { %466 = vst [vmem:[#allocation2 + $0x38] sm:$0xff] %v427_v58 }
 0x15e   :  { %v357_v59 = vpop.f32.mrb[4].mxu0 }
 0x15f   :  { %v358_v60 = vadd.f32 %v357_v59, %v6459_v39  ;;  %v430_v61 = vpop.f32.mrb[4].mxu1  ;;  %v359_v62 = vpop.f32.mrb[5].mxu0 }
 0x160   :  { %v431_v35 = vadd.f32 %v430_v61, %v6462_v40  ;;  %v360_v43 = vadd.f32 %v359_v62, %v6465_v41  ;;  %v432_v44 = vpop.f32.mrb[5].mxu1  ;;  %v361_v45 = vpop.f32.mrb[6].mxu0 }
 0x161   :  { %467 = vst [vmem:[#allocation2 + $0x40] sm:$0xff] %v358_v60  ;;  %v433_v46 = vadd.f32 %v432_v44, %v6468_v42  ;;  %v362_v47 = vadd.f32 %v361_v45, %v6459_v39  ;;  %v434_v48 = vpop.f32.mrb[6].mxu1  ;;  %v363_v49 = vpop.f32.mrb[7].mxu0 }
 0x162   :  { %469 = vst [vmem:[#allocation2 + $0x50] sm:$0xff] %v431_v35  ;;  %468 = vst [vmem:[#allocation2 + $0x48] sm:$0xff] %v360_v43  ;;  %v435_v50 = vadd.f32 %v434_v48, %v6462_v40  ;;  %v364_v51 = vadd.f32 %v363_v49, %v6465_v41  ;;  %v436_v52 = vpop.f32.mrb[7].mxu1 }
 0x163   :  { %470 = vst [vmem:[#allocation2 + $0x58] sm:$0xff] %v433_v46  ;;  %471 = vst [vmem:[#allocation2 + $0x60] sm:$0xff] %v362_v47  ;;  %v437_v53 = vadd.f32 %v436_v52, %v6468_v42 }
 0x164   :  { %473 = vst [vmem:[#allocation2 + $0x70] sm:$0xff] %v435_v50  ;;  %472 = vst [vmem:[#allocation2 + $0x68] sm:$0xff] %v364_v51 }
 0x165   :  { %474 = vst [vmem:[#allocation2 + $0x78] sm:$0xff] %v437_v53 }
 0x166   :  { %v367_v54 = vpop.f32.mrb[8].mxu0 }
 0x167   :  { %v368_v55 = vadd.f32 %v367_v54, %v6459_v39  ;;  %v440_v56 = vpop.f32.mrb[8].mxu1  ;;  %v369_v57 = vpop.f32.mrb[9].mxu0 }
 0x168   :  { %v441_v58 = vadd.f32 %v440_v56, %v6462_v40  ;;  %v370_v59 = vadd.f32 %v369_v57, %v6465_v41  ;;  %v442_v60 = vpop.f32.mrb[9].mxu1  ;;  %v371_v61 = vpop.f32.mrb[10].mxu0 }
 0x169   :  { %475 = vst [vmem:[#allocation2 + $0x80] sm:$0xff] %v368_v55  ;;  %v443_v62 = vadd.f32 %v442_v60, %v6468_v42  ;;  %v372_v35 = vadd.f32 %v371_v61, %v6459_v39  ;;  %v444_v43 = vpop.f32.mrb[10].mxu1  ;;  %v373_v44 = vpop.f32.mrb[11].mxu0 }
 0x16a   :  { %477 = vst [vmem:[#allocation2 + $0x90] sm:$0xff] %v441_v58  ;;  %476 = vst [vmem:[#allocation2 + $0x88] sm:$0xff] %v370_v59  ;;  %v445_v45 = vadd.f32 %v444_v43, %v6462_v40  ;;  %v374_v46 = vadd.f32 %v373_v44, %v6465_v41  ;;  %v446_v47 = vpop.f32.mrb[11].mxu1  ;;  %v6507_v44 = vmov (!%p4778_p12), 0.0  }
 0x16b   :  { %478 = vst [vmem:[#allocation2 + $0x98] sm:$0xff] %v443_v62  ;;  %479 = vst [vmem:[#allocation2 + $0xa0] sm:$0xff] %v372_v35  ;;  %v447_v48 = vadd.f32 %v446_v47, %v6468_v42 }
 0x16c   :  { %481 = vst [vmem:[#allocation2 + $0xb0] sm:$0xff] %v445_v45  ;;  %480 = vst [vmem:[#allocation2 + $0xa8] sm:$0xff] %v374_v46 }
 0x16d   :  { %482 = vst [vmem:[#allocation2 + $0xb8] sm:$0xff] %v447_v48 }
 0x16e   :  { %v377_v49 = vpop.f32.mrb[12].mxu0 }
 0x16f   :  { %v378_v50 = vadd.f32 %v377_v49, %v6459_v39  ;;  %v450_v51 = vpop.f32.mrb[12].mxu1  ;;  %v379_v52 = vpop.f32.mrb[13].mxu0  ;;  %4743 = sbr.rel (%p4778_p12) target bundleno = 1201 (0x4b1), region = 123 }
 0x170   :  { %v451_v53 = vadd.f32 %v450_v51, %v6462_v40  ;;  %v380_v54 = vadd.f32 %v379_v52, %v6465_v41  ;;  %v452_v55 = vpop.f32.mrb[13].mxu1  ;;  %v381_v56 = vpop.f32.mrb[14].mxu0 }
 0x171   :  { %483 = vst [vmem:[#allocation2 + $0xc0] sm:$0xff] %v378_v50  ;;  %v453_v57 = vadd.f32 %v452_v55, %v6468_v42  ;;  %v382_v58 = vadd.f32 %v381_v56, %v6459_v39  ;;  %v454_v59 = vpop.f32.mrb[14].mxu1  ;;  %v383_v60 = vpop.f32.mrb[15].mxu0  ;;  %v6505_v39 = vmov (!%p4778_p12), 0.0  }
 0x172   :  { %485 = vst [vmem:[#allocation2 + $0xd0] sm:$0xff] %v451_v53  ;;  %484 = vst [vmem:[#allocation2 + $0xc8] sm:$0xff] %v380_v54  ;;  %v455_v61 = vadd.f32 %v454_v59, %v6462_v40  ;;  %v384_v62 = vadd.f32 %v383_v60, %v6465_v41  ;;  %v456_v35 = vpop.f32.mrb[15].mxu1  ;;  %v6509_v40 = vmov (!%p4778_p12), 0.0   ;;  %v6511_v41 = vmov (!%p4778_p12), 0.0  }
 0x173   :  { %486 = vst [vmem:[#allocation2 + $0xd8] sm:$0xff] %v453_v57  ;;  %487 = vst [vmem:[#allocation2 + $0xe0] sm:$0xff] %v382_v58  ;;  %v457_v43 = vadd.f32 %v456_v35, %v6468_v42 }
 0x174   :  { %489 = vst [vmem:[#allocation2 + $0xf0] sm:$0xff] %v455_v61  ;;  %488 = vst [vmem:[#allocation2 + $0xe8] sm:$0xff] %v384_v62 }
 0x175   :  { %490 = vst [vmem:[#allocation2 + $0xf8] sm:$0xff] %v457_v43 }
 0x176 LB: > { %v4781_v42 = vcombine.high %v6246_v2, %v6256_v4  ;;  %v4783_v45 = vcombine.high %v6251_v3, %v6261_v5  ;;  %v4780_v46 = vcombine.low %v6246_v2, %v6256_v4  ;;  %v4782_v47 = vcombine.low %v6251_v3, %v6261_v5  ;;  %s6064_s22 = smov 64   ;;  %s7789_s23 = sld [smem:[#allocation17_spill]]  ;;  %s6049_s6 = sphi %s6513_s6, %s494_s6   ;;  %v6045_v41 = vphi %v6511_v41, %v797_v41   ;;  %v6041_v40 = vphi %v6509_v40, %v798_v40   ;;  %v6037_v44 = vphi %v6507_v44, %v853_v44   ;;  %v6033_v39 = vphi %v6505_v39, %v854_v39  }
 0x177   : > { %v4785_v48 = vcombine.high %v6266_v6, %v6276_v8  ;;  %v4787_v49 = vcombine.high %v6271_v7, %v6281_v9  ;;  %504 = vrot.lane.b32.xlu0 %v6037_v44, %s6064_s22  ;;  %v4784_v50 = vcombine.low %v6266_v6, %v6276_v8  ;;  %v4786_v51 = vcombine.low %v6271_v7, %v6281_v9  ;;  %s5088_s3 = sshll.u32 %s6049_s6, 5  ;;  %s7790_s28 = sld [smem:[#allocation19_spill]] }
 0x178   : > { %669 = vmatprep.subr.bf16.mxu0 %v4781_v42  ;;  %710 = vmatprep.subr.bf16.mxu1 %v4783_v45  ;;  %v4789_v52 = vcombine.high %v6286_v10, %v6296_v12  ;;  %v4791_v53 = vcombine.high %v6291_v11, %v6301_v13  ;;  %v6065_v54 = vmov 0   ;;  %v4788_v55 = vcombine.low %v6286_v10, %v6296_v12  ;;  %s753_s29 = scalar_lea.vmem [#allocation2], %s5088_s3  ;;  %s4816_s24 = sshll.u32 %s6049_s6, 3 }
 0x179   : > { %670 = vmatpush1.bf16.msra.mxu0 %v4780_v46  ;;  %711 = vmatpush1.bf16.msra.mxu1 %v4782_v47  ;;  %v4790_v56 = vcombine.low %v6291_v11, %v6301_v13  ;;  %v4793_v57 = vcombine.high %v6306_v14, %v6316_v16  ;;  %v4795_v58 = vcombine.high %v6311_v15, %v6321_v17  ;;  %s805_s4 = scalar_lea.vmem [#allocation3], %s4816_s24  ;;  %vm866_vm5 = vcmask 1048064  }
 0x17a   : > { %671 = vmatprep.subr.bf16.mxu0 %v4785_v48  ;;  %712 = vmatprep.subr.bf16.mxu1 %v4787_v49  ;;  %v4792_v59 = vcombine.low %v6306_v14, %v6316_v16  ;;  %v4794_v60 = vcombine.low %v6311_v15, %v6321_v17  ;;  %v4797_v61 = vcombine.high %v6326_v18, %v6336_v20 }
 0x17b   : > { %701 = vmatprep.mubr.bf16.mxu0 %v6065_v54  ;;  %742 = vmatprep.mubr.bf16.mxu1 %v6065_v54  ;;  %v4799_v62 = vcombine.high %v6331_v19, %v6341_v21  ;;  %v4796_v35 = vcombine.low %v6326_v18, %v6336_v20  ;;  %v4798_v43 = vcombine.low %v6331_v19, %v6341_v21 }
 0x17c   : > { %5707 = vset.pattern.permute.xlu1 %v6065_v54  ;;  %5708 = vset.pattern.permute.xlu0 %v6065_v54  ;;  %v4801_v42 = vcombine.high %v6346_v22, %v6356_v24  ;;  %v4803_v45 = vcombine.high %v6351_v23, %v6361_v25  ;;  %v4800_v46 = vcombine.low %v6346_v22, %v6356_v24  ;;  %s4779_s2 = sadd.s32 4294967295, %s7789_s23 }
 0x17d   : > { %672 = vmatpush1.bf16.msra.mxu0 %v4784_v50  ;;  %713 = vmatpush1.bf16.msra.mxu1 %v4786_v51  ;;  %v4802_v47 = vcombine.low %v6351_v23, %v6361_v25  ;;  %v4805_v48 = vcombine.high %v6366_v26, %v6376_v28  ;;  %v4807_v49 = vcombine.high %v6371_v27, %v6381_v29  ;;  %s6606_s25 = ssub.s32 %s4779_s2, %s6049_s6  ;;  %s789_s1 = scalar_lea.vmem %s7790_s28, %s4816_s24 }
 0x17e   : > { %673 = vmatprep.subr.bf16.mxu0 %v4789_v52  ;;  %714 = vmatprep.subr.bf16.mxu1 %v4791_v53  ;;  %v4804_v50 = vcombine.low %v6366_v26, %v6376_v28  ;;  %v4806_v51 = vcombine.low %v6371_v27, %v6381_v29  ;;  %v4809_v52 = vcombine.high %v6386_v30, %v6396_v32  ;;  %s5089_s11 = sshll.u32 %s6606_s25, 5  ;;  %s4821_s21 = sshll.u32 %s6606_s25, 3 }
 0x17f   : > { %v4811_v53 = vcombine.high %v6391_v31, %v6401_v33  ;;  %s809_s19 = scalar_lea.vmem [#allocation2], %s5089_s11  ;;  %s845_s0 = scalar_lea.vmem %s7790_s28, %s4821_s21 }
 0x180   : > { %s494_s6 = sadd.s32 1, %s6049_s6  }
 0x181   : > { %674 = vmatpush1.bf16.msra.mxu0 %v4788_v55  ;;  %715 = vmatpush1.bf16.msra.mxu1 %v4790_v56  ;;  %v4808_v55 = vcombine.low %v6386_v30, %v6396_v32  ;;  %v4810_v56 = vcombine.low %v6391_v31, %v6401_v33  ;;  %p493_p13 = scmp.ge.s32.totalorder %s494_s6, %s7789_s23 }
 0x182   : > { %675 = vmatprep.subr.bf16.mxu0 %v4793_v57  ;;  %716 = vmatprep.subr.bf16.mxu1 %v4795_v58 }
 0x185   : > { %676 = vmatpush1.bf16.msra.mxu0 %v4792_v59  ;;  %717 = vmatpush1.bf16.msra.mxu1 %v4794_v60  ;;  %v754_v60 = vld [vmem:[%s753_s29] sm:$0xff] }
 0x186   : > { %677 = vmatprep.subr.bf16.mxu0 %v4797_v61  ;;  %718 = vmatprep.subr.bf16.mxu1 %v4799_v62  ;;  %v810_v61 = vld [vmem:[%s809_s19 + $0x10] sm:$0xff]  ;;  %v755_v62 = vld [vmem:[%s753_s29 + $0x8] sm:$0xff] }
 0x189   : > { %678 = vmatpush1.bf16.msra.mxu0 %v4796_v35  ;;  %719 = vmatpush1.bf16.msra.mxu1 %v4798_v43 }
 0x18a   : > { %679 = vmatprep.subr.bf16.mxu0 %v4801_v42  ;;  %720 = vmatprep.subr.bf16.mxu1 %v4803_v45 }
 0x18d   : > { %680 = vmatpush1.bf16.msra.mxu0 %v4800_v46  ;;  %721 = vmatpush1.bf16.msra.mxu1 %v4802_v47 }
 0x18e   : > { %681 = vmatprep.subr.bf16.mxu0 %v4805_v48  ;;  %722 = vmatprep.subr.bf16.mxu1 %v4807_v49  ;;  %v811_v49 = vld [vmem:[%s809_s19 + $0x18] sm:$0xff] }
 0x191   : > { %682 = vmatpush1.bf16.msra.mxu0 %v4804_v50  ;;  %723 = vmatpush1.bf16.msra.mxu1 %v4806_v51 }
 0x192   : > { %683 = vmatprep.subr.bf16.mxu0 %v4809_v52  ;;  %724 = vmatprep.subr.bf16.mxu1 %v4811_v53 }
 0x195   : > { %684 = vmatpush1.bf16.msra.mxu0 %v4808_v55  ;;  %725 = vmatpush1.bf16.msra.mxu1 %v4810_v56 }
 0x1e9   : > { %v505_v57 = vpop.permute.xlu0 %504 }
 0x1ea   : > { %v507_v58 = vsel %vm300_vm0, %v6045_v41, %v505_v57 }
 0x1eb   : > { %v508_v59 = vpack.c.bf16 %v507_v58, %v507_v58 }
 0x1ed   : > { %702 = vmatmul.mubr.bf16.vlgmr.msra.gmra.mrb[0].mxu0 %v508_v59  ;;  %743 = vmatmul.mubr.bf16.vlgmr.msra.gmra.mrb[0].mxu1 %v508_v59 }
 0x2c0   : > { %v703_v35 = vpop.f32.mrb[0].mxu0  ;;  %v744_v43 = vpop.f32.mrb[0].mxu1 }
 0x2c1   : > { %v756_v42 = vadd.f32 %v754_v60, %v703_v35  ;;  %v812_v45 = vadd.f32 %v810_v61, %v744_v43  ;;  %v705_v46 = vpop.f32.mrb[1].mxu0  ;;  %v746_v47 = vpop.f32.mrb[1].mxu1 }
 0x2c2   : > { %v6610_v48 = vadd.f32 %v755_v62, %v705_v46  ;;  %v707_v50 = vpop.f32.mrb[2].mxu0  ;;  %v748_v51 = vpop.f32.mrb[2].mxu1  ;;  %v813_v55 = vadd.f32 %v811_v49, %v746_v47 }
 0x2c3   : > { %v708_v52 = vpop.f32.mrb[3].mxu0  ;;  %v749_v53 = vpop.f32.mrb[3].mxu1  ;;  %v4814_v58 = vmul.f32 -1.442695, %v756_v42  ;;  %v4819_v59 = vmul.f32 -1.442695, %v812_v45 }
 0x2c4   : > { %5709 = vtanh.f32 %v6610_v48  ;;  %v846_v42 = vld [vmem:[%s845_s0] sm:$0xff] }
 0x2c5   : > { %5711 = vtanh.f32 %v813_v55  ;;  %vm847_vm1 = vcmp.gt.f32.partialorder %v846_v42, 0.0  ;;  %v790_v51 = vld [vmem:[%s789_s1] sm:$0xff] }
 0x2c6   : > { %5713 = vpow2.f32 %v4814_v58  ;;  %v848_v52 = vsel %vm847_vm1, 1, %v6065_v54  ;;  %vm791_vm2 = vcmp.gt.f32.partialorder %v790_v51, 0.0 }
 0x2c7   : > { %5715 = vpow2.f32 %v4819_v59 }
 0x2ce   : > { %v5710_v56 = vpop.eup %5709 }
 0x2cf   : > { %773 = vrot.lane.b32.xlu1 %v5710_v56, %s6064_s22  ;;  %v5712_v57 = vpop.eup %5711 }
 0x2d0   : > { %829 = vrot.lane.b32.xlu0 %v5712_v57, %s6064_s22  ;;  %v5714_v60 = vpop.eup %5713 }
 0x2d1   : > { %v764_v61 = vadd.f32 1.0, %v5714_v60  ;;  %v5716_v62 = vpop.eup %5715 }
 0x2d2   : > { %v820_v35 = vadd.f32 1.0, %v5716_v62  ;;  %v792_v62 = vsel %vm791_vm2, 1, %v6065_v54 }
 0x2d3   : > { %5717 = vrcp.f32 %v764_v61 }
 0x2d4   : > { %5719 = vrcp.f32 %v820_v35 }
 0x2dd   : > { %v5718_v43 = vpop.eup %5717 }
 0x2de   : > { %v5720_v45 = vpop.eup %5719  ;;  %v771_v59 = vmul.f32 %v6041_v40, %v5718_v43 }
 0x2df   : > { %v827_v53 = vmul.f32 %v6033_v39, %v5720_v45 }
 0x341   : > { %v774_v46 = vpop.permute.xlu1 %773 }
 0x342   : > { %v776_v47 = vmul.f32 %v5718_v43, %v774_v46  ;;  %v830_v49 = vpop.permute.xlu0 %829 }
 0x343   : > { %v832_v50 = vmul.f32 %v5720_v45, %v830_v49  ;;  %v4815_v45 = vmul.f32 -1.442695, %v6610_v48 }
 0x344   : > { %778 = vrot.lane.b32.xlu0 %v776_v47, %s6064_s22  ;;  %v4820_v47 = vmul.f32 -1.442695, %v813_v55 }
 0x345   : > { %834 = vrot.lane.b32.xlu1 %v832_v50, %s6064_s22 }
 0x348   : > { %857 = vperm.xlu0 %5708, %v846_v42  }
 0x349   : > { %850 = vperm.xlu1 %5707, %v848_v52  }
 0x34c   : > { %801 = vperm.xlu0 %5708, %v790_v51  }
 0x3b6   : > { %v779_v58 = vpop.permute.xlu0 %778 }
 0x3b7   : > { %v835_v56 = vpop.permute.xlu1 %834  ;;  %v781_v60 = vadd.f32 %v779_v58, %v771_v59 }
 0x3b8   : > { %v837_v57 = vadd.f32 %v835_v56, %v827_v53 }
 0x3ba   : > { %5721 = vtanh.f32 %v837_v57 }
 0x3bb   : > { %5723 = vtanh.f32 %v781_v60 }
 0x3bc   : > { %5725 = vpow2.f32 %v4820_v47 }
 0x3c4   : > { %v5722_v61 = vpop.eup %5721 }
 0x3c5   : > { %840 = vrot.lane.b32.xlu1 %v5722_v61, %s6064_s22  ;;  %v5724_v46 = vpop.eup %5723 }
 0x3c6   : > { %v5726_v43 = vpop.eup %5725 }
 0x3c7   : > { %v821_v42 = vadd.f32 1.0, %v5726_v43  ;;  %v858_v51 = vpop.permute.xlu0 %857 }
 0x3c8   : > { %v851_v35 = vpop.permute.xlu1 %850 }
 0x3c9   : > { %vm852_vm3 = vcmp.eq.s32.totalorder %v851_v35, 1  ;;  %794 = vperm.xlu1 %5707, %v792_v62   ;;  %5727 = vrcp.f32 %v821_v42 }
 0x3ca   : > { %v854_v39 = vsel %vm852_vm3, %v837_v57, %v6033_v39   ;;  %5729 = vpow2.f32 %v4815_v45 }
 0x3cb   : > { %v802_v59 = vpop.permute.xlu0 %801 }
 0x3cd   : > { %784 = vrot.lane.b32.xlu1 %v5724_v46, %s6064_s22 }
 0x3d3   : > { %v5728_v49 = vpop.eup %5727 }
 0x3d4   : > { %v5730_v52 = vpop.eup %5729 }
 0x3d5   : > { %v765_v55 = vadd.f32 1.0, %v5730_v52 }
 0x3d7   : > { %5731 = vrcp.f32 %v765_v55 }
 0x3e1   : > { %v5732_v48 = vpop.eup %5731 }
 0x437   : > { %v841_v50 = vpop.permute.xlu1 %840 }
 0x438   : > { %v843_v54 = vmul.f32 %v5728_v49, %v841_v50 }
 0x43a   : > { %v853_v44 = vsel %vm852_vm3, %v843_v54, %v6037_v44  }
 0x43b   : > { %v860_v53 = vmul.f32 %v858_v51, %v853_v44 }
 0x43d   : > { %862 = vrot.lane.b32.xlu0 %v860_v53, %s6064_s22  ;;  %s865_s22 = scalar_lea.vmem [#allocation3], %s4821_s21 }
 0x448   : > { %v795_v56 = vpop.permute.xlu1 %794 }
 0x449   : > { %vm796_vm4 = vcmp.eq.s32.totalorder %v795_v56, 1 }
 0x44a   : > { %v798_v40 = vsel %vm796_vm4, %v781_v60, %v6041_v40  }
 0x44c   : > { %v785_v57 = vpop.permute.xlu1 %784 }
 0x44d   : > { %v787_v58 = vmul.f32 %v5732_v48, %v785_v57 }
 0x44f   : > { %v797_v41 = vsel %vm796_vm4, %v787_v58, %v6045_v41  }
 0x450   : > { %v804_v61 = vmul.f32 %v802_v59, %v797_v41 }
 0x452   : > { %806 = vst.msk [vmem:[%s805_s4] sm:$0xff] %vm300_vm0, %v804_v61 }
 0x4aa   :  { %496 = sbr.rel (!%p493_p13) target bundleno = 374 (0x176), region = 129 }
 0x4af   : > { %v863_v62 = vpop.permute.xlu0 %862 }
 0x4b0   : > { %867 = vst.msk [vmem:[%s865_s22] sm:$0xff] %vm866_vm5, %v863_v62 }
 0x4b1 PF:  { %v876_v60 = vld [vmem:[#allocation8] sm:$0xff]  ;;  %v877_v35 = vld [vmem:[#allocation8 + $0x8] sm:$0xff]  ;;  %v878_v46 = vld [vmem:[#allocation8 + $0x10] sm:$0xff]  ;;  %2019 = vmatprep.mubr.bf16.mxu1 %v6063_v1  ;;  %5734 = vset.pattern.permute.xlu1 %v6063_v1  ;;  %vm4511_vm6 = vcmask 7168   ;;  %s7791_s1 = sld [smem:[#allocation19_spill]]  ;;  %vm6067_vm1 = vmmov 0  }
 0x4b2   :  { %v5558_v47 = vpack.c.bf16 %v877_v35, %v876_v60  ;;  %v879_v43 = vld [vmem:[#allocation8 + $0x18] sm:$0xff]  ;;  %5733 = vset.pattern.permute.xlu0 %v6063_v1  ;;  %v880_v45 = vld [vmem:[#allocation8 + $0x20] sm:$0xff]  ;;  %v881_v49 = vld [vmem:[#allocation8 + $0x28] sm:$0xff] }
 0x4b3   :  { %v5562_v42 = vpack.c.bf16 %v879_v43, %v878_v46  ;;  %v5566_v41 = vpack.c.bf16 %v881_v49, %v880_v45  ;;  %v882_v2 = vld [vmem:[#allocation8 + $0x30] sm:$0xff]  ;;  %v883_v3 = vld [vmem:[#allocation8 + $0x38] sm:$0xff]  ;;  %v884_v4 = vld [vmem:[#allocation8 + $0x40] sm:$0xff] }
 0x4b4   :  { %5559 = vmatprep.subr.bf16.mxu0 %v5558_v47  ;;  %v885_v5 = vld [vmem:[#allocation8 + $0x48] sm:$0xff]  ;;  %v5570_v6 = vpack.c.bf16 %v883_v3, %v882_v2  ;;  %v886_v7 = vld [vmem:[#allocation8 + $0x50] sm:$0xff]  ;;  %v887_v8 = vld [vmem:[#allocation8 + $0x58] sm:$0xff] }
 0x4b5   :  { %5561 = vmatpush3.bf16.msra.mxu0 %v5558_v47  ;;  %v5574_v9 = vpack.c.bf16 %v885_v5, %v884_v4  ;;  %v888_v10 = vld [vmem:[#allocation8 + $0x60] sm:$0xff]  ;;  %v889_v11 = vld [vmem:[#allocation8 + $0x68] sm:$0xff]  ;;  %v5578_v12 = vpack.c.bf16 %v887_v8, %v886_v7  ;;  %v890_v13 = vld [vmem:[#allocation8 + $0x70] sm:$0xff] }
 0x4b6   :  { %5563 = vmatprep.subr.bf16.mxu0 %v5562_v42  ;;  %v891_v14 = vld [vmem:[#allocation8 + $0x78] sm:$0xff]  ;;  %v5582_v15 = vpack.c.bf16 %v889_v11, %v888_v10  ;;  %v4822_v24 = vld [vmem:[%s7761_s7] ss:$0 sm:$0xff]  ;;  %v1136_v46 = vld [vmem:[%s7764_s10 + $0x8] sm:$0xff] }
 0x4b7   :  { %v868_v50 = vld [vmem:[#allocation3] sm:$0xff]  ;;  %v5586_v16 = vpack.c.bf16 %v891_v14, %v890_v13  ;;  %v869_v17 = vld [vmem:[#allocation3 + $0x8] sm:$0xff]  ;;  %v870_v18 = vld [vmem:[#allocation3 + $0x10] sm:$0xff] }
 0x4b8   :  { %5492 = vmatprep.mubr.f32.mxu0 %v868_v50  ;;  %v871_v19 = vld [vmem:[#allocation3 + $0x18] sm:$0xff]  ;;  %v872_v20 = vld [vmem:[#allocation3 + $0x20] sm:$0xff]  ;;  %v873_v21 = vld [vmem:[#allocation3 + $0x28] sm:$0xff] }
 0x4b9   :  { %5565 = vmatpush3.bf16.msra.mxu0 %v5562_v42  ;;  %v874_v22 = vld [vmem:[#allocation3 + $0x30] sm:$0xff]  ;;  %v875_v23 = vld [vmem:[#allocation3 + $0x38] sm:$0xff]  ;;  %v1135_v60 = vld [vmem:[%s7764_s10] sm:$0xff] }
 0x4ba   :  { %5567 = vmatprep.subr.bf16.mxu0 %v5566_v41  ;;  %v1143_v35 = vld [vmem:[%s7764_s10 + $0x40] sm:$0xff]  ;;  %v1144_v42 = vld [vmem:[%s7764_s10 + $0x48] sm:$0xff] }
 0x4bb   :  { %v4826_v47 = vcombine.high %v1135_v60, %v1143_v35  ;;  %v4825_v43 = vcombine.low %v1135_v60, %v1143_v35  ;;  %v1151_v45 = vld [vmem:[%s7764_s10 + $0x80] sm:$0xff]  ;;  %v1152_v3 = vld [vmem:[%s7764_s10 + $0x88] sm:$0xff] }
 0x4bc   :  { %v1159_v49 = vld [vmem:[%s7764_s10 + $0xc0] sm:$0xff]  ;;  %v1160_v4 = vld [vmem:[%s7764_s10 + $0xc8] sm:$0xff] }
 0x4bd   :  { %5569 = vmatpush3.bf16.msra.mxu0 %v5566_v41  ;;  %v4827_v41 = vcombine.low %v1136_v46, %v1144_v42  ;;  %v4842_v2 = vcombine.high %v1151_v45, %v1159_v49  ;;  %1987 = vmatprep.subr.bf16.mxu1 %v4826_v47  ;;  %v4844_v5 = vcombine.high %v1152_v3, %v1160_v4  ;;  %v1191_v60 = vld [vmem:[%s7764_s10 + $0x1c0] sm:$0xff]  ;;  %v1184_v35 = vld [vmem:[%s7764_s10 + $0x188] sm:$0xff] }
 0x4be   :  { %5571 = vmatprep.subr.bf16.mxu0 %v5570_v6  ;;  %1988 = vmatpush1.bf16.msra.mxu1 %v4825_v43  ;;  %v4843_v7 = vcombine.low %v1152_v3, %v1160_v4  ;;  %v1192_v47 = vld [vmem:[%s7764_s10 + $0x1c8] sm:$0xff] }
 0x4bf   :  { %1989 = vmatprep.subr.bf16.mxu1 %v4842_v2  ;;  %v1208_v3 = vld [vmem:[%s7764_s10 + $0x248] sm:$0xff] }
 0x4c1   :  { %5573 = vmatpush3.bf16.msra.mxu0 %v5570_v6  ;;  %v4841_v6 = vcombine.low %v1151_v45, %v1159_v49  ;;  %v4876_v45 = vcombine.high %v1184_v35, %v1192_v47  ;;  %v1199_v49 = vld [vmem:[%s7764_s10 + $0x200] sm:$0xff] }
 0x4c2   :  { %5575 = vmatprep.subr.bf16.mxu0 %v5574_v9 }
 0x4c3   :  { %1990 = vmatpush1.bf16.msra.mxu1 %v4841_v6 }
 0x4c5   :  { %5577 = vmatpush3.bf16.msra.mxu0 %v5574_v9 }
 0x4c6   :  { %5579 = vmatprep.subr.bf16.mxu0 %v5578_v12 }
 0x4c9   :  { %5581 = vmatpush3.bf16.msra.mxu0 %v5578_v12 }
 0x4ca   :  { %5583 = vmatprep.subr.bf16.mxu0 %v5582_v15 }
 0x4cd   :  { %5585 = vmatpush3.bf16.msra.mxu0 %v5582_v15 }
 0x4ce   :  { %5587 = vmatprep.subr.bf16.mxu0 %v5586_v16 }
 0x4d1   :  { %5589 = vmatpush3.bf16.msra.mxu0 %v5586_v16 }
 0x4d4   :  { %5493 = vmatmul.mubr.f32.vlgmr.msra.gmra.mrb[0].mxu0 %v869_v17 }
 0x4d5   :  { %5495 = vmatprep.mubr.f32.mxu0 %v870_v18 }
 0x4d8   :  { %5496 = vmatmul.mubr.f32.gmra.mrb[2].mxu0 %v871_v19 }
 0x4d9   :  { %5498 = vmatprep.mubr.f32.mxu0 %v872_v20 }
 0x4dc   :  { %5499 = vmatmul.mubr.f32.gmra.mrb[4].mxu0 %v873_v21 }
 0x4dd   :  { %5501 = vmatprep.mubr.f32.mxu0 %v874_v22 }
 0x4e0   :  { %5502 = vmatmul.mubr.f32.gmra.mrb[6].mxu0 %v875_v23 }
 0x4e1   :  { %2092 = vmatprep.mubr.bf16.mxu0 %v6063_v1 }
 0x5a7   :  { %v5494_v25 = vpop.f32.mrb[0].mxu0 }
 0x5a8   :  { %v965_v26 = vpop.f32.mrb[1].mxu0  ;;  %v971_v28 = vadd.f32 %v5494_v25, %v4822_v24 }
 0x5a9   :  { %v966_v27 = vadd.f32 %v4822_v24, %v965_v26 }
 0x5aa   :  { %v1005_v40 = vadd.f32 %v971_v28, %v869_v17 }
 0x5ab   :  { %v5497_v29 = vpop.f32.mrb[2].mxu0  ;;  %v1004_v30 = vadd.f32 %v966_v27, %v868_v50  ;;  %v4828_v50 = vcombine.high %v1136_v46, %v1144_v42  ;;  %v4875_v42 = vcombine.low %v1184_v35, %v1192_v47 }
 0x5ac   :  { %v975_v31 = vpop.f32.mrb[3].mxu0  ;;  %v981_v32 = vadd.f32 %v5497_v29, %v4822_v24 }
 0x5ad   :  { %v976_v33 = vadd.f32 %v4822_v24, %v975_v31  ;;  %1014 = vadd.xlane.f32.xlu0 %v1004_v30  ;;  %2060 = vmatprep.subr.bf16.mxu0 %v4828_v50  ;;  %v1200_v50 = vld [vmem:[%s7764_s10 + $0x208] sm:$0xff] }
 0x5ae   :  { %v1007_v53 = vadd.f32 %v981_v32, %v871_v19  ;;  %2061 = vmatpush1.bf16.msra.mxu0 %v4827_v41  ;;  %v1207_v41 = vld [vmem:[%s7764_s10 + $0x240] sm:$0xff]  ;;  %v4892_v6 = vcombine.high %v1200_v50, %v1208_v3 }
 0x5af   :  { %v5500_v39 = vpop.f32.mrb[4].mxu0  ;;  %v1006_v44 = vadd.f32 %v976_v33, %v870_v18  ;;  %2062 = vmatprep.subr.bf16.mxu0 %v4844_v5  ;;  %v4890_v2 = vcombine.high %v1199_v49, %v1207_v41  ;;  %v4889_v4 = vcombine.low %v1199_v49, %v1207_v41  ;;  %v4891_v5 = vcombine.low %v1200_v50, %v1208_v3 }
 0x5b0   :  { %v985_v54 = vpop.f32.mrb[5].mxu0  ;;  %v991_v51 = vadd.f32 %v5500_v39, %v4822_v24 }
 0x5b1   :  { %v986_v52 = vadd.f32 %v4822_v24, %v985_v54  ;;  %1018 = vadd.xlane.f32.xlu1 %v1006_v44  ;;  %1016 = vadd.xlane.f32.xlu0 %v1005_v40 }
 0x5b2   :  { %v1009_v59 = vadd.f32 %v991_v51, %v873_v21  ;;  %2063 = vmatpush1.bf16.msra.mxu0 %v4843_v7  ;;  %v1215_v7 = vld [vmem:[%s7764_s10 + $0x280] sm:$0xff] }
 0x5b3   :  { %v5503_v55 = vpop.f32.mrb[6].mxu0  ;;  %v1008_v56 = vadd.f32 %v986_v52, %v872_v20 }
 0x5b4   :  { %v995_v48 = vpop.f32.mrb[7].mxu0  ;;  %v1001_v57 = vadd.f32 %v5503_v55, %v4822_v24  ;;  %v1175_v55 = vld [vmem:[%s7764_s10 + $0x140] sm:$0xff] }
 0x5b5   :  { %v996_v58 = vadd.f32 %v4822_v24, %v995_v48  ;;  %1020 = vadd.xlane.f32.xlu1 %v1007_v53  ;;  %1022 = vadd.xlane.f32.xlu0 %v1008_v56 }
 0x5b6   :  { %v1011_v62 = vadd.f32 %v1001_v57, %v875_v23  ;;  %v1176_v57 = vld [vmem:[%s7764_s10 + $0x148] sm:$0xff] }
 0x5b7   :  { %v1010_v61 = vadd.f32 %v996_v58, %v874_v22 }
 0x5b9   :  { %1024 = vadd.xlane.f32.xlu1 %v1009_v59  ;;  %1026 = vadd.xlane.f32.xlu0 %v1010_v61 }
 0x5bd   :  { %1028 = vadd.xlane.f32.xlu1 %v1011_v62 }
 0x63a   :  { %v1015_v8 = vpop.xlane.xlu0 %1014 }
 0x63b   :  { %v1031_v9 = vmul.f32 0.0078125, %v1015_v8  ;;  %v1223_v8 = vld [vmem:[%s7764_s10 + $0x2c0] sm:$0xff] }
 0x63d   :  { %v6693_v10 = vsub.f32 %v1004_v30, %v1031_v9  ;;  %v1216_v9 = vld [vmem:[%s7764_s10 + $0x288] sm:$0xff] }
 0x63e   :  { %v1019_v11 = vpop.xlane.xlu1 %1018  ;;  %v1017_v12 = vpop.xlane.xlu0 %1016 }
 0x63f   :  { %v1033_v13 = vmul.f32 0.0078125, %v1019_v11  ;;  %v1032_v14 = vmul.f32 0.0078125, %v1017_v12  ;;  %v1047_v15 = vmul.f32 %v6693_v10, %v6693_v10  ;;  %v4906_v11 = vcombine.high %v1215_v7, %v1223_v8  ;;  %v1224_v12 = vld [vmem:[%s7764_s10 + $0x2c8] sm:$0xff] }
 0x641   :  { %v6697_v16 = vsub.f32 %v1006_v44, %v1033_v13  ;;  %v6699_v17 = vsub.f32 %v1005_v40, %v1032_v14  ;;  %1055 = vadd.xlane.f32.xlu0 %v1047_v15  ;;  %v4905_v13 = vcombine.low %v1215_v7, %v1223_v8  ;;  %v4907_v14 = vcombine.low %v1216_v9, %v1224_v12 }
 0x642   :  { %v1021_v18 = vpop.xlane.xlu1 %1020  ;;  %v1023_v19 = vpop.xlane.xlu0 %1022  ;;  %v4908_v15 = vcombine.high %v1216_v9, %v1224_v12 }
 0x643   :  { %v1034_v20 = vmul.f32 0.0078125, %v1021_v18  ;;  %v1035_v21 = vmul.f32 0.0078125, %v1023_v19  ;;  %v1049_v22 = vmul.f32 %v6697_v16, %v6697_v16  ;;  %v1048_v23 = vmul.f32 %v6699_v17, %v6699_v17  ;;  %v1231_v18 = vld [vmem:[%s7764_s10 + $0x300] sm:$0xff] }
 0x644   :  { %v1239_v19 = vld [vmem:[%s7764_s10 + $0x340] sm:$0xff] }
 0x645   :  { %v6705_v24 = vsub.f32 %v1007_v53, %v1034_v20  ;;  %v6707_v25 = vsub.f32 %v1008_v56, %v1035_v21  ;;  %1059 = vadd.xlane.f32.xlu0 %v1049_v22  ;;  %1057 = vadd.xlane.f32.xlu1 %v1048_v23  ;;  %v1167_v53 = vld [vmem:[%s7764_s10 + $0x100] sm:$0xff]  ;;  %v1168_v56 = vld [vmem:[%s7764_s10 + $0x108] sm:$0xff]  ;;  %v4922_v21 = vcombine.high %v1231_v18, %v1239_v19 }
 0x646   :  { %v1025_v26 = vpop.xlane.xlu1 %1024  ;;  %v1027_v27 = vpop.xlane.xlu0 %1026  ;;  %v4858_v48 = vcombine.high %v1167_v53, %v1175_v55  ;;  %v4857_v58 = vcombine.low %v1167_v53, %v1175_v55  ;;  %v1232_v20 = vld [vmem:[%s7764_s10 + $0x308] sm:$0xff]  ;;  %v4921_v23 = vcombine.low %v1231_v18, %v1239_v19  ;;  %v6805_v53 = vld [vmem:[%s7764_s10 + $0x50] sm:$0xff]  ;;  %v6810_v55 = vld [vmem:[%s7764_s10 + $0x18] sm:$0xff] }
 0x647   :  { %v1036_v28 = vmul.f32 0.0078125, %v1025_v26  ;;  %v1037_v29 = vmul.f32 0.0078125, %v1027_v27  ;;  %v1050_v30 = vmul.f32 %v6705_v24, %v6705_v24  ;;  %v1051_v31 = vmul.f32 %v6707_v25, %v6707_v25  ;;  %v1240_v22 = vld [vmem:[%s7764_s10 + $0x348] sm:$0xff] }
 0x648   :  { %1991 = vmatprep.subr.bf16.mxu1 %v4858_v48  ;;  %v4923_v26 = vcombine.low %v1232_v20, %v1240_v22  ;;  %v4924_v27 = vcombine.high %v1232_v20, %v1240_v22  ;;  %v6817_v48 = vld [vmem:[%s7764_s10 + $0x58] sm:$0xff] }
 0x649   :  { %v6713_v32 = vsub.f32 %v1009_v59, %v1036_v28  ;;  %v6715_v33 = vsub.f32 %v1010_v61, %v1037_v29  ;;  %1061 = vadd.xlane.f32.xlu1 %v1050_v30  ;;  %1063 = vadd.xlane.f32.xlu0 %v1051_v31  ;;  %v4859_v59 = vcombine.low %v1168_v56, %v1176_v57  ;;  %v1247_v28 = vld [vmem:[%s7764_s10 + $0x380] sm:$0xff]  ;;  %v1248_v30 = vld [vmem:[%s7764_s10 + $0x388] sm:$0xff] }
 0x64a   :  { %v1029_v39 = vpop.xlane.xlu1 %1028  ;;  %v4860_v61 = vcombine.high %v1168_v56, %v1176_v57  ;;  %1992 = vmatpush1.bf16.msra.mxu1 %v4857_v58  ;;  %v1255_v29 = vld [vmem:[%s7764_s10 + $0x3c0] sm:$0xff]  ;;  %v4831_v58 = vcombine.low %v6810_v55, %v6817_v48 }
 0x64b   :  { %v1038_v44 = vmul.f32 0.0078125, %v1029_v39  ;;  %v1052_v40 = vmul.f32 %v6713_v32, %v6713_v32  ;;  %v1053_v54 = vmul.f32 %v6715_v33, %v6715_v33  ;;  %v4938_v31 = vcombine.high %v1247_v28, %v1255_v29  ;;  %v1256_v39 = vld [vmem:[%s7764_s10 + $0x3c8] sm:$0xff] }
 0x64c   :  { %2064 = vmatprep.subr.bf16.mxu0 %v4860_v61 }
 0x64d   :  { %v6721_v51 = vsub.f32 %v1011_v62, %v1038_v44  ;;  %1065 = vadd.xlane.f32.xlu1 %v1052_v40  ;;  %1067 = vadd.xlane.f32.xlu0 %v1053_v54  ;;  %v1183_v62 = vld [vmem:[%s7764_s10 + $0x180] sm:$0xff]  ;;  %v4937_v44 = vcombine.low %v1247_v28, %v1255_v29  ;;  %v4939_v40 = vcombine.low %v1248_v30, %v1256_v39  ;;  %v1161_v29 = vld [vmem:[%s7764_s10 + $0xd0] sm:$0xff] }
 0x64e   :  { %2065 = vmatpush1.bf16.msra.mxu0 %v4859_v59  ;;  %v4874_v46 = vcombine.high %v1183_v62, %v1191_v60  ;;  %v4873_v43 = vcombine.low %v1183_v62, %v1191_v60  ;;  %v4940_v54 = vcombine.high %v1248_v30, %v1256_v39  ;;  %v4832_v59 = vcombine.high %v6810_v55, %v6817_v48  ;;  %v1162_v30 = vld [vmem:[%s7764_s10 + $0xd8] sm:$0xff] }
 0x64f   :  { %v1054_v52 = vmul.f32 %v6721_v51, %v6721_v51  ;;  %2066 = vmatprep.subr.bf16.mxu0 %v4876_v45  ;;  %v1186_v55 = vld [vmem:[%s7764_s10 + $0x198] sm:$0xff] }
 0x650   :  { %1993 = vmatprep.subr.bf16.mxu1 %v4874_v46 }
 0x651   :  { %1069 = vadd.xlane.f32.xlu1 %v1054_v52  ;;  %1994 = vmatpush1.bf16.msra.mxu1 %v4873_v43  ;;  %v6800_v52 = vld [vmem:[%s7764_s10 + $0x10] sm:$0xff] }
 0x652   :  { %2067 = vmatpush1.bf16.msra.mxu0 %v4875_v42  ;;  %1995 = vmatprep.subr.bf16.mxu1 %v4890_v2  ;;  %v4830_v56 = vcombine.high %v6800_v52, %v6805_v53  ;;  %v4829_v57 = vcombine.low %v6800_v52, %v6805_v53  ;;  %v1185_v52 = vld [vmem:[%s7764_s10 + $0x190] sm:$0xff] }
 0x653   :  { %2068 = vmatprep.subr.bf16.mxu0 %v4892_v6  ;;  %v1193_v53 = vld [vmem:[%s7764_s10 + $0x1d0] sm:$0xff] }
 0x655   :  { %1996 = vmatpush1.bf16.msra.mxu1 %v4889_v4 }
 0x656   :  { %2069 = vmatpush1.bf16.msra.mxu0 %v4891_v5  ;;  %1997 = vmatprep.subr.bf16.mxu1 %v4906_v11 }
 0x657   :  { %2070 = vmatprep.subr.bf16.mxu0 %v4908_v15 }
 0x659   :  { %1998 = vmatpush1.bf16.msra.mxu1 %v4905_v13  ;;  %v6829_v13 = vld [vmem:[%s7762_s8] ss:$0 sm:$0xff] }
 0x65a   :  { %2071 = vmatpush1.bf16.msra.mxu0 %v4907_v14  ;;  %1999 = vmatprep.subr.bf16.mxu1 %v4922_v21 }
 0x65b   :  { %2072 = vmatprep.subr.bf16.mxu0 %v4924_v27 }
 0x65d   :  { %2000 = vmatpush1.bf16.msra.mxu1 %v4921_v23 }
 0x65e   :  { %2073 = vmatpush1.bf16.msra.mxu0 %v4923_v26  ;;  %2001 = vmatprep.subr.bf16.mxu1 %v4938_v31  ;;  %v1153_v26 = vld [vmem:[%s7764_s10 + $0x90] sm:$0xff] }
 0x65f   :  { %2074 = vmatprep.subr.bf16.mxu0 %v4940_v54 }
 0x661   :  { %2002 = vmatpush1.bf16.msra.mxu1 %v4937_v44 }
 0x662   :  { %2075 = vmatpush1.bf16.msra.mxu0 %v4939_v40  ;;  %2133 = vmatprep.subr.bf16.mxu1 %v4830_v56 }
 0x663   :  { %2206 = vmatprep.subr.bf16.mxu0 %v4832_v59  ;;  %v4846_v59 = vcombine.high %v1153_v26, %v1161_v29 }
 0x6ce   :  { %v1056_v61 = vpop.xlane.xlu0 %1055 }
 0x6cf   :  { %v1071_v62 = vmul.f32 0.0078125, %v1056_v61 }
 0x6d1   :  { %v1079_v60 = vadd.f32 1e-05, %v1071_v62  ;;  %v1169_v62 = vld [vmem:[%s7764_s10 + $0x110] sm:$0xff] }
 0x6d2   :  { %v1058_v35 = vpop.xlane.xlu1 %1057  ;;  %v1060_v46 = vpop.xlane.xlu0 %1059 }
 0x6d3   :  { %5863 = vrsqrt.f32 %v1079_v60  ;;  %v1072_v47 = vmul.f32 0.0078125, %v1058_v35  ;;  %v1073_v43 = vmul.f32 0.0078125, %v1060_v46  ;;  %v1177_v60 = vld [vmem:[%s7764_s10 + $0x150] sm:$0xff]  ;;  %v1178_v35 = vld [vmem:[%s7764_s10 + $0x158] sm:$0xff] }
 0x6d5   :  { %v1080_v42 = vadd.f32 1e-05, %v1072_v47  ;;  %v1081_v45 = vadd.f32 1e-05, %v1073_v43  ;;  %v4845_v43 = vcombine.low %v1153_v26, %v1161_v29  ;;  %v1225_v26 = vld [vmem:[%s7764_s10 + $0x2d0] sm:$0xff] }
 0x6d6   :  { %v1062_v49 = vpop.xlane.xlu1 %1061  ;;  %v1064_v41 = vpop.xlane.xlu0 %1063 }
 0x6d7   :  { %5865 = vrsqrt.f32 %v1080_v42  ;;  %v1074_v50 = vmul.f32 0.0078125, %v1062_v49  ;;  %v1075_v3 = vmul.f32 0.0078125, %v1064_v41 }
 0x6d8   :  { %5867 = vrsqrt.f32 %v1081_v45  ;;  %v4862_v45 = vcombine.high %v1169_v62, %v1177_v60 }
 0x6d9   :  { %v1082_v2 = vadd.f32 1e-05, %v1074_v50  ;;  %v1083_v7 = vadd.f32 1e-05, %v1075_v3  ;;  %v4878_v3 = vcombine.high %v1185_v52, %v1193_v53 }
 0x6da   :  { %v1066_v4 = vpop.xlane.xlu1 %1065  ;;  %v1068_v11 = vpop.xlane.xlu0 %1067 }
 0x6db   :  { %5869 = vrsqrt.f32 %v1082_v2  ;;  %v1076_v5 = vmul.f32 0.0078125, %v1066_v4  ;;  %v1077_v18 = vmul.f32 0.0078125, %v1068_v11  ;;  %v1210_v11 = vld [vmem:[%s7764_s10 + $0x258] sm:$0xff] }
 0x6dd   :  { %v5864_v6 = vpop.eup %5863  ;;  %v1084_v8 = vadd.f32 1e-05, %v1076_v5  ;;  %v1085_v28 = vadd.f32 1e-05, %v1077_v18 }
 0x6de   :  { %v1095_v9 = vmul.f32 %v5864_v6, %v6693_v10  ;;  %v1070_v12 = vpop.xlane.xlu1 %1069  ;;  %v6836_v10 = vld [vmem:[%s7763_s9] ss:$0 sm:$0xff] }
 0x6df   :  { %5871 = vrsqrt.f32 %v1084_v8  ;;  %v1078_v14 = vmul.f32 0.0078125, %v1070_v12 }
 0x6e0   :  { %5873 = vrsqrt.f32 %v1083_v7  ;;  %v1109_v19 = vmul.f32 %v6829_v13, %v1095_v9  ;;  %v1201_v7 = vld [vmem:[%s7764_s10 + $0x210] sm:$0xff]  ;;  %v1202_v9 = vld [vmem:[%s7764_s10 + $0x218] sm:$0xff] }
 0x6e1   :  { %v5866_v15 = vpop.eup %5865  ;;  %v1086_v22 = vadd.f32 1e-05, %v1078_v14 }
 0x6e2   :  { %v1096_v20 = vmul.f32 %v5866_v15, %v6699_v17  ;;  %v5868_v21 = vpop.eup %5867  ;;  %v1154_v17 = vld [vmem:[%s7764_s10 + $0x98] sm:$0xff]  ;;  %v6852_v31 = vadd.f32 %v6836_v10, %v1109_v19  ;;  %v4877_v15 = vcombine.low %v1185_v52, %v1193_v53 }
 0x6e3   :  { %v1097_v44 = vmul.f32 %v5868_v21, %v6697_v16  ;;  %5875 = vrsqrt.f32 %v1086_v22  ;;  %v4848_v61 = vcombine.high %v1154_v17, %v1162_v30  ;;  %v4847_v42 = vcombine.low %v1154_v17, %v1162_v30 }
 0x6e4   :  { %v1110_v23 = vmul.f32 %v6829_v13, %v1096_v20  ;;  %5877 = vrsqrt.f32 %v1085_v28  ;;  %v4896_v22 = vcombine.high %v1202_v9, %v1210_v11  ;;  %v4895_v30 = vcombine.low %v1202_v9, %v1210_v11  ;;  %v1163_v9 = vld [vmem:[%s7764_s10 + $0xe0] sm:$0xff]  ;;  %v1156_v11 = vld [vmem:[%s7764_s10 + $0xa8] sm:$0xff] }
 0x6e5   :  { %v5870_v27 = vpop.eup %5869  ;;  %v1111_v46 = vmul.f32 %v6829_v13, %v1097_v44 }
 0x6e6   :  { %v6855_v39 = vadd.f32 %v6836_v10, %v1110_v23  ;;  %v1098_v40 = vmul.f32 %v5870_v27, %v6705_v24  ;;  %v1170_v24 = vld [vmem:[%s7764_s10 + $0x118] sm:$0xff]  ;;  %v1217_v23 = vld [vmem:[%s7764_s10 + $0x290] sm:$0xff] }
 0x6e7   :  { %v4864_v50 = vcombine.high %v1170_v24, %v1178_v35  ;;  %v6904_v48 = vadd.f32 %v6836_v10, %v1111_v46  ;;  %v4863_v2 = vcombine.low %v1170_v24, %v1178_v35  ;;  %v1218_v27 = vld [vmem:[%s7764_s10 + $0x298] sm:$0xff]  ;;  %v4910_v44 = vcombine.high %v1217_v23, %v1225_v26 }
 0x6e8   :  { %v6861_v54 = vpack.c.bf16 %v6855_v39, %v6852_v31  ;;  %v1112_v56 = vmul.f32 %v6829_v13, %v1098_v40  ;;  %v4909_v24 = vcombine.low %v1217_v23, %v1225_v26  ;;  %v1172_v23 = vld [vmem:[%s7764_s10 + $0x128] sm:$0xff] }
 0x6e9   :  { %v5872_v16 = vpop.eup %5871  ;;  %v1180_v26 = vld [vmem:[%s7764_s10 + $0x168] sm:$0xff] }
 0x6ea   :  { %2020 = vmatmul.mubr.bf16.vlgmr.msra.gmra.mrb[0].mxu1 %v6861_v54  ;;  %2093 = vmatmul.mubr.bf16.vlgmr.msra.gmra.mrb[8].mxu0 %v6861_v54  ;;  %v5874_v47 = vpop.eup %5873  ;;  %v6886_v49 = vadd.f32 %v6836_v10, %v1112_v56  ;;  %v1100_v41 = vmul.f32 %v5872_v16, %v6713_v32  ;;  %v1194_v32 = vld [vmem:[%s7764_s10 + $0x1d8] sm:$0xff] }
 0x6eb   :  { %2134 = vmatpush1.bf16.msra.mxu1 %v4829_v57  ;;  %2207 = vmatpush1.bf16.msra.mxu0 %v4831_v58  ;;  %v1099_v57 = vmul.f32 %v5874_v47, %v6707_v25  ;;  %v4861_v58 = vcombine.low %v1169_v62, %v1177_v60  ;;  %v4880_v6 = vcombine.high %v1186_v55, %v1194_v32  ;;  %v1209_v25 = vld [vmem:[%s7764_s10 + $0x250] sm:$0xff]  ;;  %v1234_v62 = vld [vmem:[%s7764_s10 + $0x318] sm:$0xff] }
 0x6ec   :  { %2135 = vmatprep.subr.bf16.mxu1 %v4846_v59  ;;  %2208 = vmatprep.subr.bf16.mxu0 %v4848_v61  ;;  %v6909_v4 = vpack.c.bf16 %v6886_v49, %v6904_v48  ;;  %v1114_v5 = vmul.f32 %v6829_v13, %v1100_v41  ;;  %v4879_v18 = vcombine.low %v1186_v55, %v1194_v32  ;;  %v1233_v61 = vld [vmem:[%s7764_s10 + $0x310] sm:$0xff]  ;;  %v1242_v60 = vld [vmem:[%s7764_s10 + $0x358] sm:$0xff] }
 0x6ed   :  { %2029 = vmatprep.mubr.bf16.mxu1 %v6063_v1  ;;  %2102 = vmatprep.mubr.bf16.mxu0 %v6063_v1  ;;  %v5876_v8 = vpop.eup %5875  ;;  %v1113_v12 = vmul.f32 %v6829_v13, %v1099_v57  ;;  %v4894_v19 = vcombine.high %v1201_v7, %v1209_v25  ;;  %v4893_v17 = vcombine.low %v1201_v7, %v1209_v25  ;;  %v1258_v41 = vld [vmem:[%s7764_s10 + $0x3d8] sm:$0xff] }
 0x6ee   :  { %v5878_v14 = vpop.eup %5877  ;;  %v6928_v20 = vadd.f32 %v6836_v10, %v1114_v5  ;;  %v1102_v21 = vmul.f32 %v5876_v8, %v6721_v51  ;;  %v1226_v51 = vld [vmem:[%s7764_s10 + $0x2d8] sm:$0xff]  ;;  %v4927_v53 = vcombine.low %v1234_v62, %v1242_v60  ;;  %v1155_v8 = vld [vmem:[%s7764_s10 + $0xa0] sm:$0xff] }
 0x6ef   :  { %2136 = vmatpush1.bf16.msra.mxu1 %v4845_v43  ;;  %2209 = vmatpush1.bf16.msra.mxu0 %v4847_v42  ;;  %v6946_v28 = vadd.f32 %v6836_v10, %v1113_v12  ;;  %v1101_v29 = vmul.f32 %v5878_v14, %v6715_v33  ;;  %v4912_v59 = vcombine.high %v1218_v27, %v1226_v51  ;;  %v1241_v33 = vld [vmem:[%s7764_s10 + $0x350] sm:$0xff]  ;;  %v1164_v12 = vld [vmem:[%s7764_s10 + $0xe8] sm:$0xff] }
 0x6f0   :  { %2137 = vmatprep.subr.bf16.mxu1 %v4862_v45  ;;  %2210 = vmatprep.subr.bf16.mxu0 %v4864_v50  ;;  %v1116_v56 = vmul.f32 %v6829_v13, %v1102_v21  ;;  %v4911_v35 = vcombine.low %v1218_v27, %v1226_v51  ;;  %v4926_v47 = vcombine.high %v1233_v61, %v1241_v33  ;;  %v1249_v42 = vld [vmem:[%s7764_s10 + $0x390] sm:$0xff]  ;;  %v1250_v45 = vld [vmem:[%s7764_s10 + $0x398] sm:$0xff]  ;;  %v1171_v21 = vld [vmem:[%s7764_s10 + $0x120] sm:$0xff] }
 0x6f1   :  { %v6951_v40 = vpack.c.bf16 %v6928_v20, %v6946_v28  ;;  %v1115_v16 = vmul.f32 %v6829_v13, %v1101_v29  ;;  %v4928_v43 = vcombine.high %v1234_v62, %v1242_v60  ;;  %v1257_v13 = vld [vmem:[%s7764_s10 + $0x3d0] sm:$0xff]  ;;  %v4925_v52 = vcombine.low %v1233_v61, %v1241_v33 }
 0x6f2   :  { %2030 = vmatmul.mubr.bf16.gmra.mrb[4].mxu1 %v6909_v4  ;;  %2103 = vmatmul.mubr.bf16.gmra.mrb[12].mxu0 %v6909_v4  ;;  %v6970_v46 = vadd.f32 %v6836_v10, %v1116_v56  ;;  %v4942_v32 = vcombine.high %v1249_v42, %v1257_v13  ;;  %v4944_v57 = vcombine.high %v1250_v45, %v1258_v41  ;;  %v1188_v56 = vld [vmem:[%s7764_s10 + $0x1a8] sm:$0xff] }
 0x6f3   :  { %2138 = vmatpush1.bf16.msra.mxu1 %v4861_v58  ;;  %2211 = vmatpush1.bf16.msra.mxu0 %v4863_v2  ;;  %v6987_v50 = vadd.f32 %v6836_v10, %v1115_v16  ;;  %v1139_v58 = vld [vmem:[%s7764_s10 + $0x20] sm:$0xff]  ;;  %v1140_v2 = vld [vmem:[%s7764_s10 + $0x28] sm:$0xff]  ;;  %v4941_v5 = vcombine.low %v1249_v42, %v1257_v13  ;;  %v4849_v27 = vcombine.low %v1155_v8, %v1163_v9 }
 0x6f4   :  { %2139 = vmatprep.subr.bf16.mxu1 %v4878_v3  ;;  %2212 = vmatprep.subr.bf16.mxu0 %v4880_v6  ;;  %v1147_v10 = vld [vmem:[%s7764_s10 + $0x60] sm:$0xff]  ;;  %v1148_v3 = vld [vmem:[%s7764_s10 + $0x68] sm:$0xff]  ;;  %v4943_v6 = vcombine.low %v1250_v45, %v1258_v41  ;;  %v4851_v51 = vcombine.low %v1156_v11, %v1164_v12  ;;  %v4867_v33 = vcombine.low %v1172_v23, %v1180_v26 }
 0x6f5   :  { %2039 = vmatprep.mubr.bf16.mxu1 %v6063_v1  ;;  %2112 = vmatprep.mubr.bf16.mxu0 %v6063_v1  ;;  %v6991_v55 = vpack.c.bf16 %v6970_v46, %v6987_v50  ;;  %v4834_v7 = vcombine.high %v1139_v58, %v1147_v10  ;;  %v4836_v25 = vcombine.high %v1140_v2, %v1148_v3  ;;  %v1203_v16 = vld [vmem:[%s7764_s10 + $0x220] sm:$0xff] }
 0x6f6   :  { %v4833_v14 = vcombine.low %v1139_v58, %v1147_v10  ;;  %v1219_v41 = vld [vmem:[%s7764_s10 + $0x2a0] sm:$0xff] }
 0x6f7   :  { %2140 = vmatpush1.bf16.msra.mxu1 %v4877_v15  ;;  %2213 = vmatpush1.bf16.msra.mxu0 %v4879_v18  ;;  %v4835_v15 = vcombine.low %v1140_v2, %v1148_v3  ;;  %v4850_v18 = vcombine.high %v1155_v8, %v1163_v9  ;;  %v1235_v3 = vld [vmem:[%s7764_s10 + $0x320] sm:$0xff] }
 0x6f8   :  { %2141 = vmatprep.subr.bf16.mxu1 %v4894_v19  ;;  %2214 = vmatprep.subr.bf16.mxu0 %v4896_v22  ;;  %v4852_v19 = vcombine.high %v1156_v11, %v1164_v12  ;;  %v1179_v22 = vld [vmem:[%s7764_s10 + $0x160] sm:$0xff] }
 0x6f9   :  { %v4866_v29 = vcombine.high %v1171_v21, %v1179_v22  ;;  %v4865_v61 = vcombine.low %v1171_v21, %v1179_v22  ;;  %v1251_v12 = vld [vmem:[%s7764_s10 + $0x3a0] sm:$0xff] }
 0x6fa   :  { %2040 = vmatmul.mubr.bf16.gmra.mrb[8].mxu1 %v6951_v40  ;;  %2113 = vmatmul.mubr.bf16.gmra.mrb[16].mxu0 %v6951_v40 }
 0x6fb   :  { %2142 = vmatpush1.bf16.msra.mxu1 %v4893_v17  ;;  %2215 = vmatpush1.bf16.msra.mxu0 %v4895_v30  ;;  %v4868_v17 = vcombine.high %v1172_v23, %v1180_v26  ;;  %v1187_v30 = vld [vmem:[%s7764_s10 + $0x1a0] sm:$0xff]  ;;  %v1141_v26 = vld [vmem:[%s7764_s10 + $0x30] sm:$0xff] }
 0x6fc   :  { %2143 = vmatprep.subr.bf16.mxu1 %v4910_v44  ;;  %2216 = vmatprep.subr.bf16.mxu0 %v4912_v59  ;;  %v1195_v44 = vld [vmem:[%s7764_s10 + $0x1e0] sm:$0xff]  ;;  %v1196_v59 = vld [vmem:[%s7764_s10 + $0x1e8] sm:$0xff] }
 0x6fd   :  { %2049 = vmatprep.mubr.bf16.mxu1 %v6063_v1  ;;  %2122 = vmatprep.mubr.bf16.mxu0 %v6063_v1  ;;  %v4882_v62 = vcombine.high %v1187_v30, %v1195_v44  ;;  %v4884_v60 = vcombine.high %v1188_v56, %v1196_v59  ;;  %v4883_v42 = vcombine.low %v1188_v56, %v1196_v59  ;;  %v1157_v59 = vld [vmem:[%s7764_s10 + $0xb0] sm:$0xff] }
 0x6ff   :  { %2144 = vmatpush1.bf16.msra.mxu1 %v4909_v24  ;;  %2217 = vmatpush1.bf16.msra.mxu0 %v4911_v35  ;;  %v1211_v24 = vld [vmem:[%s7764_s10 + $0x260] sm:$0xff]  ;;  %v1204_v35 = vld [vmem:[%s7764_s10 + $0x228] sm:$0xff] }
 0x700   :  { %2145 = vmatprep.subr.bf16.mxu1 %v4926_v47  ;;  %2218 = vmatprep.subr.bf16.mxu0 %v4928_v43  ;;  %v1212_v47 = vld [vmem:[%s7764_s10 + $0x268] sm:$0xff]  ;;  %v4881_v43 = vcombine.low %v1187_v30, %v1195_v44  ;;  %v4898_v13 = vcombine.high %v1203_v16, %v1211_v24 }
 0x701   :  { %v4900_v45 = vcombine.high %v1204_v35, %v1212_v47  ;;  %v4899_v58 = vcombine.low %v1204_v35, %v1212_v47  ;;  %v1173_v47 = vld [vmem:[%s7764_s10 + $0x130] sm:$0xff] }
 0x702   :  { %2050 = vmatmul.mubr.bf16.gmra.mrb[12].mxu1 %v6991_v55  ;;  %2123 = vmatmul.mubr.bf16.gmra.mrb[20].mxu0 %v6991_v55 }
 0x703   :  { %2146 = vmatpush1.bf16.msra.mxu1 %v4925_v52  ;;  %2219 = vmatpush1.bf16.msra.mxu0 %v4927_v53  ;;  %v1227_v52 = vld [vmem:[%s7764_s10 + $0x2e0] sm:$0xff]  ;;  %v1220_v53 = vld [vmem:[%s7764_s10 + $0x2a8] sm:$0xff] }
 0x704   :  { %2147 = vmatprep.subr.bf16.mxu1 %v4942_v32  ;;  %2220 = vmatprep.subr.bf16.mxu0 %v4944_v57  ;;  %v1228_v32 = vld [vmem:[%s7764_s10 + $0x2e8] sm:$0xff]  ;;  %v4897_v57 = vcombine.low %v1203_v16, %v1211_v24  ;;  %v4914_v10 = vcombine.high %v1219_v41, %v1227_v52 }
 0x705   :  { %2165 = vmatprep.mubr.bf16.mxu1 %v6063_v1  ;;  %2238 = vmatprep.mubr.bf16.mxu0 %v6063_v1  ;;  %v4916_v2 = vcombine.high %v1220_v53, %v1228_v32  ;;  %v4915_v8 = vcombine.low %v1220_v53, %v1228_v32  ;;  %v1189_v32 = vld [vmem:[%s7764_s10 + $0x1b0] sm:$0xff] }
 0x707   :  { %2148 = vmatpush1.bf16.msra.mxu1 %v4941_v5  ;;  %2221 = vmatpush1.bf16.msra.mxu0 %v4943_v6  ;;  %v1243_v5 = vld [vmem:[%s7764_s10 + $0x360] sm:$0xff]  ;;  %v1236_v6 = vld [vmem:[%s7764_s10 + $0x328] sm:$0xff] }
 0x708   :  { %2279 = vmatprep.subr.bf16.mxu1 %v4834_v7  ;;  %2352 = vmatprep.subr.bf16.mxu0 %v4836_v25  ;;  %v1244_v7 = vld [vmem:[%s7764_s10 + $0x368] sm:$0xff]  ;;  %v4913_v25 = vcombine.low %v1219_v41, %v1227_v52  ;;  %v4930_v9 = vcombine.high %v1235_v3, %v1243_v5 }
 0x709   :  { %v4932_v11 = vcombine.high %v1236_v6, %v1244_v7  ;;  %v4931_v21 = vcombine.low %v1236_v6, %v1244_v7  ;;  %v1205_v7 = vld [vmem:[%s7764_s10 + $0x230] sm:$0xff] }
 0x70a   :  { %2166 = vmatmul.mubr.bf16.vlgmr.msra.gmra.mrb[16].mxu1 %v6861_v54  ;;  %2239 = vmatmul.mubr.bf16.vlgmr.msra.gmra.mrb[24].mxu0 %v6861_v54 }
 0x70b   :  { %2280 = vmatpush1.bf16.msra.mxu1 %v4833_v14  ;;  %2353 = vmatpush1.bf16.msra.mxu0 %v4835_v15  ;;  %v1259_v14 = vld [vmem:[%s7764_s10 + $0x3e0] sm:$0xff]  ;;  %v1252_v15 = vld [vmem:[%s7764_s10 + $0x3a8] sm:$0xff] }
 0x70c   :  { %2281 = vmatprep.subr.bf16.mxu1 %v4850_v18  ;;  %2354 = vmatprep.subr.bf16.mxu0 %v4852_v19  ;;  %v1260_v18 = vld [vmem:[%s7764_s10 + $0x3e8] sm:$0xff]  ;;  %v4929_v19 = vcombine.low %v1235_v3, %v1243_v5  ;;  %v4946_v22 = vcombine.high %v1251_v12, %v1259_v14 }
 0x70d   :  { %2175 = vmatprep.mubr.bf16.mxu1 %v6063_v1  ;;  %2248 = vmatprep.mubr.bf16.mxu0 %v6063_v1  ;;  %v4948_v23 = vcombine.high %v1252_v15, %v1260_v18  ;;  %v4947_v30 = vcombine.low %v1252_v15, %v1260_v18  ;;  %v1221_v18 = vld [vmem:[%s7764_s10 + $0x2b0] sm:$0xff] }
 0x70f   :  { %2282 = vmatpush1.bf16.msra.mxu1 %v4849_v27  ;;  %2355 = vmatpush1.bf16.msra.mxu0 %v4851_v51  ;;  %v1149_v27 = vld [vmem:[%s7764_s10 + $0x70] sm:$0xff]  ;;  %v1142_v51 = vld [vmem:[%s7764_s10 + $0x38] sm:$0xff] }
 0x710   :  { %2283 = vmatprep.subr.bf16.mxu1 %v4866_v29  ;;  %2356 = vmatprep.subr.bf16.mxu0 %v4868_v17  ;;  %v1150_v29 = vld [vmem:[%s7764_s10 + $0x78] sm:$0xff]  ;;  %v4945_v17 = vcombine.low %v1251_v12, %v1259_v14  ;;  %v4838_v44 = vcombine.high %v1141_v26, %v1149_v27 }
 0x711   :  { %v4840_v56 = vcombine.high %v1142_v51, %v1150_v29  ;;  %v4839_v16 = vcombine.low %v1142_v51, %v1150_v29  ;;  %v1237_v29 = vld [vmem:[%s7764_s10 + $0x330] sm:$0xff] }
 0x712   :  { %2176 = vmatmul.mubr.bf16.gmra.mrb[20].mxu1 %v6909_v4  ;;  %2249 = vmatmul.mubr.bf16.gmra.mrb[28].mxu0 %v6909_v4 }
 0x713   :  { %2284 = vmatpush1.bf16.msra.mxu1 %v4865_v61  ;;  %2357 = vmatpush1.bf16.msra.mxu0 %v4867_v33  ;;  %v1165_v61 = vld [vmem:[%s7764_s10 + $0xf0] sm:$0xff]  ;;  %v1158_v33 = vld [vmem:[%s7764_s10 + $0xb8] sm:$0xff] }
 0x714   :  { %2285 = vmatprep.subr.bf16.mxu1 %v4882_v62  ;;  %2358 = vmatprep.subr.bf16.mxu0 %v4884_v60  ;;  %v1166_v62 = vld [vmem:[%s7764_s10 + $0xf8] sm:$0xff]  ;;  %v4837_v60 = vcombine.low %v1141_v26, %v1149_v27  ;;  %v4854_v24 = vcombine.high %v1157_v59, %v1165_v61 }
 0x715   :  { %2185 = vmatprep.mubr.bf16.mxu1 %v6063_v1  ;;  %2258 = vmatprep.mubr.bf16.mxu0 %v6063_v1  ;;  %v4856_v35 = vcombine.high %v1158_v33, %v1166_v62  ;;  %v4855_v41 = vcombine.low %v1158_v33, %v1166_v62  ;;  %v1253_v62 = vld [vmem:[%s7764_s10 + $0x3b0] sm:$0xff] }
 0x717   :  { %2286 = vmatpush1.bf16.msra.mxu1 %v4881_v43  ;;  %2359 = vmatpush1.bf16.msra.mxu0 %v4883_v42  ;;  %v1181_v43 = vld [vmem:[%s7764_s10 + $0x170] sm:$0xff]  ;;  %v1174_v42 = vld [vmem:[%s7764_s10 + $0x138] sm:$0xff] }
 0x718   :  { %2287 = vmatprep.subr.bf16.mxu1 %v4898_v13  ;;  %2360 = vmatprep.subr.bf16.mxu0 %v4900_v45  ;;  %v1182_v13 = vld [vmem:[%s7764_s10 + $0x178] sm:$0xff]  ;;  %v4853_v45 = vcombine.low %v1157_v59, %v1165_v61  ;;  %v4870_v52 = vcombine.high %v1173_v47, %v1181_v43 }
 0x719   :  { %v4872_v53 = vcombine.high %v1174_v42, %v1182_v13  ;;  %v4871_v3 = vcombine.low %v1174_v42, %v1182_v13 }
 0x71a   :  { %2186 = vmatmul.mubr.bf16.gmra.mrb[24].mxu1 %v6951_v40  ;;  %2259 = vmatmul.mubr.bf16.gmra.mrb[32].mxu0 %v6951_v40 }
 0x71b   :  { %2288 = vmatpush1.bf16.msra.mxu1 %v4897_v57  ;;  %2361 = vmatpush1.bf16.msra.mxu0 %v4899_v58  ;;  %v1197_v57 = vld [vmem:[%s7764_s10 + $0x1f0] sm:$0xff]  ;;  %v1190_v58 = vld [vmem:[%s7764_s10 + $0x1b8] sm:$0xff] }
 0x71c   :  { %2289 = vmatprep.subr.bf16.mxu1 %v4914_v10  ;;  %2362 = vmatprep.subr.bf16.mxu0 %v4916_v2  ;;  %v1198_v10 = vld [vmem:[%s7764_s10 + $0x1f8] sm:$0xff]  ;;  %v4869_v2 = vcombine.low %v1173_v47, %v1181_v43  ;;  %v4886_v5 = vcombine.high %v1189_v32, %v1197_v57 }
 0x71d   :  { %2195 = vmatprep.mubr.bf16.mxu1 %v6063_v1  ;;  %2268 = vmatprep.mubr.bf16.mxu0 %v6063_v1  ;;  %v4888_v6 = vcombine.high %v1190_v58, %v1198_v10  ;;  %v4887_v12 = vcombine.low %v1190_v58, %v1198_v10  ;;  %v5741_v58 = vld [vmem:[#allocation11 + $0xc8] sm:$0xff]  }
 0x71e   :  { %v5740_v10 = vld [vmem:[#allocation11 + $0x8] sm:$0xff]  }
 0x71f   :  { %2290 = vmatpush1.bf16.msra.mxu1 %v4913_v25  ;;  %2363 = vmatpush1.bf16.msra.mxu0 %v4915_v8  ;;  %v1213_v25 = vld [vmem:[%s7764_s10 + $0x270] sm:$0xff]  ;;  %v1206_v8 = vld [vmem:[%s7764_s10 + $0x238] sm:$0xff] }
 0x720   :  { %2291 = vmatprep.subr.bf16.mxu1 %v4930_v9  ;;  %2364 = vmatprep.subr.bf16.mxu0 %v4932_v11  ;;  %v1214_v9 = vld [vmem:[%s7764_s10 + $0x278] sm:$0xff]  ;;  %v4885_v11 = vcombine.low %v1189_v32, %v1197_v57  ;;  %v4902_v14 = vcombine.high %v1205_v7, %v1213_v25  ;;  %v5738_v32 = vld [vmem:[#allocation11 + $0x80] sm:$0xff]  }
 0x721   :  { %v4904_v15 = vcombine.high %v1206_v8, %v1214_v9  ;;  %v4903_v26 = vcombine.low %v1206_v8, %v1214_v9  ;;  %v5739_v57 = vld [vmem:[#allocation11 + $0x48] sm:$0xff]   ;;  %v5748_v8 = vld [vmem:[#allocation11 + $0x18] sm:$0xff]  }
 0x722   :  { %2196 = vmatmul.mubr.bf16.gmra.mrb[28].mxu1 %v6991_v55  ;;  %2269 = vmatmul.mubr.bf16.gmra.mrb[36].mxu0 %v6991_v55  ;;  %v5750_v9 = vld [vmem:[#allocation11 + $0x98] sm:$0xff]  }
 0x723   :  { %2292 = vmatpush1.bf16.msra.mxu1 %v4929_v19  ;;  %2365 = vmatpush1.bf16.msra.mxu0 %v4931_v21  ;;  %v1229_v19 = vld [vmem:[%s7764_s10 + $0x2f0] sm:$0xff]  ;;  %v1222_v21 = vld [vmem:[%s7764_s10 + $0x2b8] sm:$0xff] }
 0x724   :  { %2293 = vmatprep.subr.bf16.mxu1 %v4946_v22  ;;  %2366 = vmatprep.subr.bf16.mxu0 %v4948_v23  ;;  %v1230_v22 = vld [vmem:[%s7764_s10 + $0x2f8] sm:$0xff]  ;;  %v4901_v23 = vcombine.low %v1205_v7, %v1213_v25  ;;  %v4918_v27 = vcombine.high %v1221_v18, %v1229_v19  ;;  %v5746_v7 = vld [vmem:[#allocation11 + $0x90] sm:$0xff]   ;;  %v5747_v25 = vld [vmem:[#allocation11 + $0x58] sm:$0xff]  }
 0x725   :  { %2311 = vmatprep.mubr.bf16.mxu1 %v6063_v1  ;;  %2384 = vmatprep.mubr.bf16.mxu0 %v6063_v1  ;;  %v4920_v51 = vcombine.high %v1222_v21, %v1230_v22  ;;  %v4919_v59 = vcombine.low %v1222_v21, %v1230_v22  ;;  %v5758_v21 = vld [vmem:[#allocation11 + $0xa8] sm:$0xff]   ;;  %v5759_v22 = vld [vmem:[#allocation11 + $0x70] sm:$0xff]  }
 0x727   :  { %2294 = vmatpush1.bf16.msra.mxu1 %v4945_v17  ;;  %2367 = vmatpush1.bf16.msra.mxu0 %v4947_v30  ;;  %v1245_v17 = vld [vmem:[%s7764_s10 + $0x370] sm:$0xff]  ;;  %v1238_v30 = vld [vmem:[%s7764_s10 + $0x338] sm:$0xff] }
 0x728   :  { %2425 = vmatprep.subr.bf16.mxu1 %v4838_v44  ;;  %2498 = vmatprep.subr.bf16.mxu0 %v4840_v56  ;;  %v1246_v44 = vld [vmem:[%s7764_s10 + $0x378] sm:$0xff]  ;;  %v4917_v56 = vcombine.low %v1221_v18, %v1229_v19  ;;  %v4934_v61 = vcombine.high %v1237_v29, %v1245_v17 }
 0x729   :  { %v4936_v33 = vcombine.high %v1238_v30, %v1246_v44  ;;  %v4935_v47 = vcombine.low %v1238_v30, %v1246_v44  ;;  %v5755_v18 = vld [vmem:[#allocation11 + $0x68] sm:$0xff]   ;;  %v5767_v30 = vld [vmem:[#allocation11 + $0x140] sm:$0xff]  }
 0x72a   :  { %2312 = vmatmul.mubr.bf16.vlgmr.msra.gmra.mrb[32].mxu1 %v6861_v54  ;;  %2385 = vmatmul.mubr.bf16.vlgmr.msra.gmra.mrb[40].mxu0 %v6861_v54  ;;  %v5756_v19 = vld [vmem:[#allocation11 + $0x28] sm:$0xff]   ;;  %v5769_v44 = vld [vmem:[#allocation11 + $0x1c0] sm:$0xff]  }
 0x72b   :  { %2426 = vmatpush1.bf16.msra.mxu1 %v4837_v60  ;;  %2499 = vmatpush1.bf16.msra.mxu0 %v4839_v16  ;;  %v1261_v60 = vld [vmem:[%s7764_s10 + $0x3f0] sm:$0xff]  ;;  %v1254_v16 = vld [vmem:[%s7764_s10 + $0x3b8] sm:$0xff] }
 0x72c   :  { %2427 = vmatprep.subr.bf16.mxu1 %v4854_v24  ;;  %2500 = vmatprep.subr.bf16.mxu0 %v4856_v35  ;;  %v1262_v24 = vld [vmem:[%s7764_s10 + $0x3f8] sm:$0xff]  ;;  %v4933_v35 = vcombine.low %v1237_v29, %v1245_v17  ;;  %v4950_v43 = vcombine.high %v1253_v62, %v1261_v60  ;;  %v4949_v13 = vcombine.low %v1253_v62, %v1261_v60  ;;  %v5764_v29 = vld [vmem:[#allocation11 + $0x38] sm:$0xff]  }
 0x72d   :  { %2321 = vmatprep.mubr.bf16.mxu1 %v6063_v1  ;;  %2394 = vmatprep.mubr.bf16.mxu0 %v6063_v1  ;;  %v4952_v42 = vcombine.high %v1254_v16, %v1262_v24  ;;  %v5766_v17 = vld [vmem:[#allocation11 + $0xb8] sm:$0xff]  }
 0x72f   :  { %2428 = vmatpush1.bf16.msra.mxu1 %v4853_v45  ;;  %2501 = vmatpush1.bf16.msra.mxu0 %v4855_v41  ;;  %v4951_v45 = vcombine.low %v1254_v16, %v1262_v24  ;;  %v5735_v41 = vld [vmem:[#allocation11 + $0x40] sm:$0xff]  }
 0x730   :  { %2429 = vmatprep.subr.bf16.mxu1 %v4870_v52  ;;  %2502 = vmatprep.subr.bf16.mxu0 %v4872_v53  ;;  %v5737_v52 = vld [vmem:[#allocation11 + $0xc0] sm:$0xff]  }
 0x731   :  { %v5736_v53 = vld [vmem:[#allocation11] sm:$0xff]  }
 0x732   :  { %2322 = vmatmul.mubr.bf16.gmra.mrb[36].mxu1 %v6909_v4  ;;  %2395 = vmatmul.mubr.bf16.gmra.mrb[44].mxu0 %v6909_v4 }
 0x733   :  { %2430 = vmatpush1.bf16.msra.mxu1 %v4869_v2  ;;  %2503 = vmatpush1.bf16.msra.mxu0 %v4871_v3  ;;  %v5742_v2 = vld [vmem:[#allocation11 + $0x88] sm:$0xff]   ;;  %v5743_v3 = vld [vmem:[#allocation11 + $0x50] sm:$0xff]  }
 0x734   :  { %2431 = vmatprep.subr.bf16.mxu1 %v4886_v5  ;;  %2504 = vmatprep.subr.bf16.mxu0 %v4888_v6  ;;  %v5745_v5 = vld [vmem:[#allocation11 + $0xd0] sm:$0xff]  }
 0x735   :  { %2331 = vmatprep.mubr.bf16.mxu1 %v6063_v1  ;;  %2404 = vmatprep.mubr.bf16.mxu0 %v6063_v1  ;;  %v5744_v6 = vld [vmem:[#allocation11 + $0x10] sm:$0xff]  }
 0x737   :  { %2432 = vmatpush1.bf16.msra.mxu1 %v4885_v11  ;;  %2505 = vmatpush1.bf16.msra.mxu0 %v4887_v12  ;;  %v5751_v11 = vld [vmem:[#allocation11 + $0x60] sm:$0xff]  }
 0x738   :  { %2433 = vmatprep.subr.bf16.mxu1 %v4902_v14  ;;  %2506 = vmatprep.subr.bf16.mxu0 %v4904_v15  ;;  %v5753_v12 = vld [vmem:[#allocation11 + $0xe0] sm:$0xff]  }
 0x739   :  { %v5752_v14 = vld [vmem:[#allocation11 + $0x20] sm:$0xff]  }
 0x73a   :  { %2332 = vmatmul.mubr.bf16.gmra.mrb[40].mxu1 %v6951_v40  ;;  %2405 = vmatmul.mubr.bf16.gmra.mrb[48].mxu0 %v6951_v40  ;;  %v5754_v15 = vld [vmem:[#allocation11 + $0xa0] sm:$0xff]  }
 0x73b   :  { %2434 = vmatpush1.bf16.msra.mxu1 %v4901_v23  ;;  %2507 = vmatpush1.bf16.msra.mxu0 %v4903_v26  ;;  %v5761_v23 = vld [vmem:[#allocation11 + $0xf0] sm:$0xff]  }
 0x73c   :  { %2435 = vmatprep.subr.bf16.mxu1 %v4918_v27  ;;  %2508 = vmatprep.subr.bf16.mxu0 %v4920_v51  ;;  %v5760_v26 = vld [vmem:[#allocation11 + $0x30] sm:$0xff]   ;;  %v5763_v51 = vld [vmem:[#allocation11 + $0x78] sm:$0xff]  }
 0x73d   :  { %2341 = vmatprep.mubr.bf16.mxu1 %v6063_v1  ;;  %2414 = vmatprep.mubr.bf16.mxu0 %v6063_v1  ;;  %v5762_v27 = vld [vmem:[#allocation11 + $0xb0] sm:$0xff]  }
 0x73f   :  { %2436 = vmatpush1.bf16.msra.mxu1 %v4917_v56  ;;  %2509 = vmatpush1.bf16.msra.mxu0 %v4919_v59  ;;  %v7235_v56 = vld [vmem:[#allocation10] sm:$0xff] }
 0x740   :  { %2437 = vmatprep.subr.bf16.mxu1 %v4934_v61  ;;  %2510 = vmatprep.subr.bf16.mxu0 %v4936_v33  ;;  %v7239_v59 = vrot.slane %v7235_v56, %v6444_v34  ;;  %v7247_v61 = vrot.slane %v7235_v56, %v6453_v37  ;;  %v7251_v33 = vrot.slane %v7235_v56, %v6456_v38 }
 0x742   :  { %2342 = vmatmul.mubr.bf16.gmra.mrb[44].mxu1 %v6991_v55  ;;  %2415 = vmatmul.mubr.bf16.gmra.mrb[52].mxu0 %v6991_v55 }
 0x743   :  { %2438 = vmatpush1.bf16.msra.mxu1 %v4933_v35  ;;  %2511 = vmatpush1.bf16.msra.mxu0 %v4935_v47 }
 0x744   :  { %2439 = vmatprep.subr.bf16.mxu1 %v4950_v43  ;;  %2512 = vmatprep.subr.bf16.mxu0 %v4952_v42 }
 0x745   :  { %2457 = vmatprep.mubr.bf16.mxu1 %v6063_v1  ;;  %2530 = vmatprep.mubr.bf16.mxu0 %v6063_v1 }
 0x747   :  { %2440 = vmatpush1.bf16.msra.mxu1 %v4949_v13  ;;  %2513 = vmatpush1.bf16.msra.mxu0 %v4951_v45 }
 0x748   :  { %5114 = vmatprep.subr.bf16.mxu1 %v5735_v41  ;;  %5154 = vmatprep.subr.bf16.mxu0 %v5737_v52 }
 0x74a   :  { %2458 = vmatmul.mubr.bf16.vlgmr.msra.gmra.mrb[48].mxu1 %v6861_v54  ;;  %2531 = vmatmul.mubr.bf16.vlgmr.msra.gmra.mrb[56].mxu0 %v6861_v54  ;;  %v5749_v54 = vld [vmem:[#allocation11 + $0xd8] sm:$0xff]  }
 0x74b   :  { %2467 = vmatprep.mubr.bf16.mxu1 %v6063_v1  ;;  %2540 = vmatprep.mubr.bf16.mxu0 %v6063_v1 }
 0x74c   :  { %5115 = vmatpush3.bf16.msra.mxu1 %v5736_v53  ;;  %5155 = vmatpush3.bf16.msra.mxu0 %v5738_v32 }
 0x74d   :  { %5116 = vmatprep.subr.bf16.mxu1 %v5739_v57  ;;  %5156 = vmatprep.subr.bf16.mxu0 %v5741_v58 }
 0x750   :  { %5117 = vmatpush3.bf16.msra.mxu1 %v5740_v10  ;;  %5157 = vmatpush3.bf16.msra.mxu0 %v5742_v2 }
 0x751   :  { %5118 = vmatprep.subr.bf16.mxu1 %v5743_v3  ;;  %5158 = vmatprep.subr.bf16.mxu0 %v5745_v5 }
 0x752   :  { %2468 = vmatmul.mubr.bf16.gmra.mrb[52].mxu1 %v6909_v4  ;;  %2541 = vmatmul.mubr.bf16.gmra.mrb[60].mxu0 %v6909_v4  ;;  %v5757_v4 = vld [vmem:[#allocation11 + $0xe8] sm:$0xff]  }
 0x753   :  { %2477 = vmatprep.mubr.bf16.mxu1 %v6063_v1  ;;  %2550 = vmatprep.mubr.bf16.mxu0 %v6063_v1 }
 0x754   :  { %5119 = vmatpush3.bf16.msra.mxu1 %v5744_v6  ;;  %5159 = vmatpush3.bf16.msra.mxu0 %v5746_v7 }
 0x755   :  { %5120 = vmatprep.subr.bf16.mxu1 %v5747_v25  ;;  %5160 = vmatprep.subr.bf16.mxu0 %v5749_v54 }
 0x758   :  { %5121 = vmatpush3.bf16.msra.mxu1 %v5748_v8  ;;  %5161 = vmatpush3.bf16.msra.mxu0 %v5750_v9 }
 0x759   :  { %5122 = vmatprep.subr.bf16.mxu1 %v5751_v11  ;;  %5162 = vmatprep.subr.bf16.mxu0 %v5753_v12 }
 0x75a   :  { %2478 = vmatmul.mubr.bf16.gmra.mrb[56].mxu1 %v6951_v40  ;;  %2551 = vmatmul.mubr.bf16.gmra.mrb[64].mxu0 %v6951_v40  ;;  %v5765_v40 = vld [vmem:[#allocation11 + $0xf8] sm:$0xff]  }
 0x75b   :  { %2487 = vmatprep.mubr.bf16.mxu1 %v6063_v1  ;;  %2560 = vmatprep.mubr.bf16.mxu0 %v6063_v1 }
 0x75c   :  { %5123 = vmatpush3.bf16.msra.mxu1 %v5752_v14  ;;  %5163 = vmatpush3.bf16.msra.mxu0 %v5754_v15 }
 0x75d   :  { %5124 = vmatprep.subr.bf16.mxu1 %v5755_v18  ;;  %5164 = vmatprep.subr.bf16.mxu0 %v5757_v4  ;;  %v5768_v18 = vld [vmem:[#allocation11 + $0x100] sm:$0xff]  }
 0x75e   :  { %v5770_v4 = vld [vmem:[#allocation11 + $0x180] sm:$0xff]  }
 0x760   :  { %5125 = vmatpush3.bf16.msra.mxu1 %v5756_v19  ;;  %5165 = vmatpush3.bf16.msra.mxu0 %v5758_v21 }
 0x761   :  { %5126 = vmatprep.subr.bf16.mxu1 %v5759_v22  ;;  %5166 = vmatprep.subr.bf16.mxu0 %v5761_v23 }
 0x762   :  { %2488 = vmatmul.mubr.bf16.gmra.mrb[60].mxu1 %v6991_v55  ;;  %2561 = vmatmul.mubr.bf16.gmra.mrb[68].mxu0 %v6991_v55  ;;  %v7243_v55 = vrot.slane %v7235_v56, %v6450_v36 }
 0x764   :  { %5127 = vmatpush3.bf16.msra.mxu1 %v5760_v26  ;;  %5167 = vmatpush3.bf16.msra.mxu0 %v5762_v27  ;;  %v5771_v26 = vld [vmem:[#allocation11 + $0x148] sm:$0xff]  }
 0x765   :  { %5128 = vmatprep.subr.bf16.mxu1 %v5763_v51  ;;  %5168 = vmatprep.subr.bf16.mxu0 %v5765_v40  ;;  %v5773_v27 = vld [vmem:[#allocation11 + $0x1c8] sm:$0xff]  }
 0x768   :  { %5129 = vmatpush3.bf16.msra.mxu1 %v5764_v29  ;;  %5169 = vmatpush3.bf16.msra.mxu0 %v5766_v17 }
 0x769   :  { %5194 = vmatprep.subr.bf16.mxu1 %v5767_v30  ;;  %5234 = vmatprep.subr.bf16.mxu0 %v5769_v44 }
 0x7bd   :  { %v2021_v62 = vpop.f32.mrb[0].mxu1  ;;  %v2094_v60 = vpop.f32.mrb[8].mxu0 }
 0x7be   :  { %v2022_v16 = vadd.f32 %v2021_v62, %v7239_v59  ;;  %v2095_v24 = vadd.f32 %v2094_v60, %v7243_v55  ;;  %v2023_v35 = vpop.f32.mrb[1].mxu1  ;;  %v2096_v47 = vpop.f32.mrb[9].mxu0 }
 0x7bf   :  { %v2024_v43 = vadd.f32 %v2023_v35, %v7247_v61  ;;  %v2097_v42 = vadd.f32 %v2096_v47, %v7251_v33  ;;  %v2025_v13 = vpop.f32.mrb[2].mxu1  ;;  %v2098_v45 = vpop.f32.mrb[10].mxu0  ;;  %v5772_v35 = vld [vmem:[#allocation11 + $0x108] sm:$0xff]  }
 0x7c0   :  { %v2026_v41 = vadd.f32 %v2025_v13, %v7239_v59  ;;  %v2099_v52 = vadd.f32 %v2098_v45, %v7243_v55  ;;  %v2027_v53 = vpop.f32.mrb[3].mxu1  ;;  %v2100_v32 = vpop.f32.mrb[11].mxu0  ;;  %v2571_v10 = vmax.f32 %v2022_v16, 0.0  ;;  %v2573_v2 = vmax.f32 %v2095_v24, 0.0  ;;  %v5774_v47 = vld [vmem:[#allocation11 + $0x188] sm:$0xff]  }
 0x7c1   :  { %v2028_v57 = vadd.f32 %v2027_v53, %v7247_v61  ;;  %v2101_v58 = vadd.f32 %v2100_v32, %v7251_v33  ;;  %v2572_v6 = vmax.f32 %v2024_v43, 0.0  ;;  %v2574_v7 = vmax.f32 %v2097_v42, 0.0 }
 0x7c2   :  { %v2587_v3 = vmax.f32 %v2026_v41, 0.0  ;;  %v2589_v5 = vmax.f32 %v2099_v52, 0.0  ;;  %v5775_v41 = vld [vmem:[#allocation11 + $0x150] sm:$0xff]  }
 0x7c3   :  { %v2588_v25 = vmax.f32 %v2028_v57, 0.0  ;;  %v2590_v54 = vmax.f32 %v2101_v58, 0.0  ;;  %v5777_v52 = vld [vmem:[#allocation11 + $0x1d0] sm:$0xff]  }
 0x7c4   :  { %v2699_v8 = vpack.c.bf16 %v2587_v3, %v2571_v10  ;;  %v2701_v9 = vpack.c.bf16 %v2589_v5, %v2573_v2 }
 0x7c5   :  { %v2700_v11 = vpack.c.bf16 %v2588_v25, %v2572_v6  ;;  %v2702_v12 = vpack.c.bf16 %v2590_v54, %v2574_v7  ;;  %v2031_v14 = vpop.f32.mrb[4].mxu1  ;;  %v2104_v15 = vpop.f32.mrb[12].mxu0  ;;  %v5776_v25 = vld [vmem:[#allocation11 + $0x110] sm:$0xff]  }
 0x7c6   :  { %v2032_v19 = vadd.f32 %v2031_v14, %v7239_v59  ;;  %v2105_v21 = vadd.f32 %v2104_v15, %v7243_v55  ;;  %v2033_v22 = vpop.f32.mrb[5].mxu1  ;;  %v2106_v23 = vpop.f32.mrb[13].mxu0  ;;  %v5778_v54 = vld [vmem:[#allocation11 + $0x190] sm:$0xff]   ;;  %v5779_v14 = vld [vmem:[#allocation11 + $0x158] sm:$0xff]  }
 0x7c7   :  { %v2034_v51 = vadd.f32 %v2033_v22, %v7247_v61  ;;  %v2107_v40 = vadd.f32 %v2106_v23, %v7251_v33  ;;  %v2035_v29 = vpop.f32.mrb[6].mxu1  ;;  %v2108_v17 = vpop.f32.mrb[14].mxu0  ;;  %3826 = vmatprep.mubr.bf16.mxu1 %v2700_v11  ;;  %3891 = vmatprep.mubr.bf16.mxu0 %v2702_v12  ;;  %v5781_v15 = vld [vmem:[#allocation11 + $0x1d8] sm:$0xff]  }
 0x7c8   :  { %v2036_v30 = vadd.f32 %v2035_v29, %v7239_v59  ;;  %v2109_v44 = vadd.f32 %v2108_v17, %v7243_v55  ;;  %v2037_v62 = vpop.f32.mrb[7].mxu1  ;;  %v2110_v60 = vpop.f32.mrb[15].mxu0  ;;  %3827 = vmatmul.mubr.bf16.vlgmr.msra.gmra.mrb[64].mxu1 %v2699_v8  ;;  %3892 = vmatmul.mubr.bf16.vlgmr.msra.gmra.mrb[72].mxu0 %v2701_v9  ;;  %v2603_v43 = vmax.f32 %v2032_v19, 0.0  ;;  %v2605_v42 = vmax.f32 %v2105_v21, 0.0  ;;  %v5780_v29 = vld [vmem:[#allocation11 + $0x118] sm:$0xff]  }
 0x7c9   :  { %v2038_v16 = vadd.f32 %v2037_v62, %v7247_v61  ;;  %v2111_v24 = vadd.f32 %v2110_v60, %v7251_v33  ;;  %5195 = vmatpush3.bf16.msra.mxu1 %v5768_v18  ;;  %5235 = vmatpush3.bf16.msra.mxu0 %v5770_v4  ;;  %v2604_v53 = vmax.f32 %v2034_v51, 0.0  ;;  %v2606_v32 = vmax.f32 %v2107_v40, 0.0  ;;  %v5782_v17 = vld [vmem:[#allocation11 + $0x198] sm:$0xff]  }
 0x7ca   :  { %v2619_v13 = vmax.f32 %v2036_v30, 0.0  ;;  %v2621_v45 = vmax.f32 %v2109_v44, 0.0  ;;  %5196 = vmatprep.subr.bf16.mxu1 %v5771_v26  ;;  %5236 = vmatprep.subr.bf16.mxu0 %v5773_v27  ;;  %v1285_v30 = vsub.s32 4, %v6441_v63  ;;  %v1293_v44 = vsub.s32 6, %v6441_v63 }
 0x7cb   :  { %v2620_v57 = vmax.f32 %v2038_v16, 0.0  ;;  %v2622_v58 = vmax.f32 %v2111_v24, 0.0 }
 0x7cc   :  { %v2715_v10 = vpack.c.bf16 %v2619_v13, %v2603_v43  ;;  %v2717_v2 = vpack.c.bf16 %v2621_v45, %v2605_v42 }
 0x7cd   :  { %v2716_v3 = vpack.c.bf16 %v2620_v57, %v2604_v53  ;;  %v2718_v5 = vpack.c.bf16 %v2622_v58, %v2606_v32  ;;  %5197 = vmatpush3.bf16.msra.mxu1 %v5772_v35  ;;  %v2041_v6 = vpop.f32.mrb[8].mxu1  ;;  %v2114_v7 = vpop.f32.mrb[16].mxu0  ;;  %5237 = vmatpush3.bf16.msra.mxu0 %v5774_v47  ;;  %v5783_v35 = vld [vmem:[#allocation11 + $0x160] sm:$0xff]   ;;  %v1289_v53 = vsub.s32 5, %v6441_v63 }
 0x7ce   :  { %v2042_v8 = vadd.f32 %v2041_v6, %v7239_v59  ;;  %v2115_v9 = vadd.f32 %v2114_v7, %v7243_v55  ;;  %v2043_v11 = vpop.f32.mrb[9].mxu1  ;;  %v2116_v12 = vpop.f32.mrb[17].mxu0  ;;  %5198 = vmatprep.subr.bf16.mxu1 %v5775_v41  ;;  %5238 = vmatprep.subr.bf16.mxu0 %v5777_v52  ;;  %v5785_v47 = vld [vmem:[#allocation11 + $0x1e0] sm:$0xff]  }
 0x7cf   :  { %v2044_v18 = vadd.f32 %v2043_v11, %v7247_v61  ;;  %v2117_v4 = vadd.f32 %v2116_v12, %v7251_v33  ;;  %v2045_v19 = vpop.f32.mrb[10].mxu1  ;;  %v2118_v21 = vpop.f32.mrb[18].mxu0  ;;  %3834 = vmatprep.mubr.bf16.mxu1 %v2716_v3  ;;  %3899 = vmatprep.mubr.bf16.mxu0 %v2718_v5  ;;  %v5786_v3 = vld [vmem:[#allocation11 + $0x1a0] sm:$0xff]   ;;  %v1297_v5 = vsub.s32 7, %v6441_v63  ;;  %v7286_v11 = vrot.slane %v7235_v56, %v1285_v30 }
 0x7d0   :  { %v2046_v22 = vadd.f32 %v2045_v19, %v7239_v59  ;;  %v2119_v23 = vadd.f32 %v2118_v21, %v7243_v55  ;;  %v2047_v26 = vpop.f32.mrb[11].mxu1  ;;  %v2120_v27 = vpop.f32.mrb[19].mxu0  ;;  %3835 = vmatmul.mubr.bf16.gmra.mrb[68].mxu1 %v2715_v10  ;;  %3900 = vmatmul.mubr.bf16.gmra.mrb[76].mxu0 %v2717_v2  ;;  %v2635_v62 = vmax.f32 %v2042_v8, 0.0  ;;  %v2637_v60 = vmax.f32 %v2115_v9, 0.0  ;;  %v5784_v2 = vld [vmem:[#allocation11 + $0x120] sm:$0xff]   ;;  %v5787_v8 = vld [vmem:[#allocation11 + $0x168] sm:$0xff]  }
 0x7d1   :  { %v2048_v51 = vadd.f32 %v2047_v26, %v7247_v61  ;;  %v2121_v40 = vadd.f32 %v2120_v27, %v7251_v33  ;;  %5199 = vmatpush3.bf16.msra.mxu1 %v5776_v25  ;;  %5239 = vmatpush3.bf16.msra.mxu0 %v5778_v54  ;;  %v2636_v43 = vmax.f32 %v2044_v18, 0.0  ;;  %v2638_v42 = vmax.f32 %v2117_v4, 0.0  ;;  %v5789_v9 = vld [vmem:[#allocation11 + $0x1e8] sm:$0xff]  }
 0x7d2   :  { %v2651_v16 = vmax.f32 %v2046_v22, 0.0  ;;  %v2653_v24 = vmax.f32 %v2119_v23, 0.0  ;;  %5200 = vmatprep.subr.bf16.mxu1 %v5779_v14  ;;  %5240 = vmatprep.subr.bf16.mxu0 %v5781_v15  ;;  %v7293_v4 = vrot.slane %v7235_v56, %v1293_v44  ;;  %v7300_v26 = vrot.slane %v7235_v56, %v1289_v53 }
 0x7d3   :  { %v2652_v13 = vmax.f32 %v2048_v51, 0.0  ;;  %v2654_v45 = vmax.f32 %v2121_v40, 0.0  ;;  %v5788_v40 = vld [vmem:[#allocation11 + $0x128] sm:$0xff]  }
 0x7d4   :  { %v2731_v41 = vpack.c.bf16 %v2651_v16, %v2635_v62  ;;  %v2733_v52 = vpack.c.bf16 %v2653_v24, %v2637_v60  ;;  %v5791_v16 = vld [vmem:[#allocation11 + $0x170] sm:$0xff]  }
 0x7d5   :  { %v2732_v32 = vpack.c.bf16 %v2652_v13, %v2636_v43  ;;  %v2734_v57 = vpack.c.bf16 %v2654_v45, %v2638_v42  ;;  %5201 = vmatpush3.bf16.msra.mxu1 %v5780_v29  ;;  %v2051_v58 = vpop.f32.mrb[12].mxu1  ;;  %v2124_v10 = vpop.f32.mrb[20].mxu0  ;;  %5241 = vmatpush3.bf16.msra.mxu0 %v5782_v17  ;;  %v5790_v29 = vld [vmem:[#allocation11 + $0x1a8] sm:$0xff]   ;;  %v5793_v24 = vld [vmem:[#allocation11 + $0x1f0] sm:$0xff]  }
 0x7d6   :  { %v2052_v6 = vadd.f32 %v2051_v58, %v7239_v59  ;;  %v2125_v7 = vadd.f32 %v2124_v10, %v7243_v55  ;;  %v2053_v25 = vpop.f32.mrb[13].mxu1  ;;  %v2126_v54 = vpop.f32.mrb[21].mxu0  ;;  %5202 = vmatprep.subr.bf16.mxu1 %v5783_v35  ;;  %5242 = vmatprep.subr.bf16.mxu0 %v5785_v47 }
 0x7d7   :  { %v2054_v12 = vadd.f32 %v2053_v25, %v7247_v61  ;;  %v2127_v14 = vadd.f32 %v2126_v54, %v7251_v33  ;;  %v2055_v15 = vpop.f32.mrb[14].mxu1  ;;  %v2128_v18 = vpop.f32.mrb[22].mxu0  ;;  %3842 = vmatprep.mubr.bf16.mxu1 %v2732_v32  ;;  %3907 = vmatprep.mubr.bf16.mxu0 %v2734_v57  ;;  %v5794_v32 = vld [vmem:[#allocation11 + $0x1b0] sm:$0xff]  }
 0x7d8   :  { %v2056_v19 = vadd.f32 %v2055_v15, %v7239_v59  ;;  %v2129_v21 = vadd.f32 %v2128_v18, %v7243_v55  ;;  %v2057_v22 = vpop.f32.mrb[15].mxu1  ;;  %v2130_v23 = vpop.f32.mrb[23].mxu0  ;;  %3843 = vmatmul.mubr.bf16.gmra.mrb[72].mxu1 %v2731_v41  ;;  %3908 = vmatmul.mubr.bf16.gmra.mrb[80].mxu0 %v2733_v52  ;;  %v7307_v59 = vrot.slane %v7235_v56, %v1297_v5  ;;  %v2667_v55 = vmax.f32 %v2052_v6, 0.0  ;;  %v5792_v52 = vld [vmem:[#allocation11 + $0x130] sm:$0xff]   ;;  %v5797_v6 = vld [vmem:[#allocation11 + $0x1f8] sm:$0xff]  }
 0x7d9   :  { %v2058_v27 = vadd.f32 %v2057_v22, %v7247_v61  ;;  %v2131_v51 = vadd.f32 %v2130_v23, %v7251_v33  ;;  %5203 = vmatpush3.bf16.msra.mxu1 %v5784_v2  ;;  %5243 = vmatpush3.bf16.msra.mxu0 %v5786_v3  ;;  %v2669_v17 = vmax.f32 %v2125_v7, 0.0  ;;  %v2668_v61 = vmax.f32 %v2054_v12, 0.0  ;;  %v5795_v3 = vld [vmem:[#allocation11 + $0x178] sm:$0xff]  }
 0x7da   :  { %v2683_v62 = vmax.f32 %v2056_v19, 0.0  ;;  %v2685_v60 = vmax.f32 %v2129_v21, 0.0  ;;  %5204 = vmatprep.subr.bf16.mxu1 %v5787_v8  ;;  %5244 = vmatprep.subr.bf16.mxu0 %v5789_v9  ;;  %v2670_v35 = vmax.f32 %v2127_v14, 0.0  ;;  %v5796_v21 = vld [vmem:[#allocation11 + $0x138] sm:$0xff]  }
 0x7db   :  { %v2684_v33 = vmax.f32 %v2058_v27, 0.0  ;;  %v2686_v47 = vmax.f32 %v2131_v51, 0.0  ;;  %v5798_v22 = vld [vmem:[#allocation11 + $0x1b8] sm:$0xff]  }
 0x7dc   :  { %v2747_v43 = vpack.c.bf16 %v2683_v62, %v2667_v55  ;;  %v2749_v42 = vpack.c.bf16 %v2685_v60, %v2669_v17  ;;  %v5801_v55 = vld [vmem:[#allocation11 + $0x2c0] sm:$0xff]  }
 0x7dd   :  { %v2748_v13 = vpack.c.bf16 %v2684_v33, %v2668_v61  ;;  %v2750_v45 = vpack.c.bf16 %v2686_v47, %v2670_v35  ;;  %5205 = vmatpush3.bf16.msra.mxu1 %v5788_v40  ;;  %v2167_v41 = vpop.f32.mrb[16].mxu1  ;;  %v2240_v56 = vpop.f32.mrb[24].mxu0  ;;  %5245 = vmatpush3.bf16.msra.mxu0 %v5790_v29  ;;  %v5799_v29 = vld [vmem:[#allocation11 + $0x240] sm:$0xff]  }
 0x7de   :  { %v2168_v57 = vadd.f32 %v2167_v41, %v7286_v11  ;;  %v2241_v58 = vadd.f32 %v2240_v56, %v7293_v4  ;;  %v2169_v10 = vpop.f32.mrb[17].mxu1  ;;  %v2242_v2 = vpop.f32.mrb[25].mxu0  ;;  %5206 = vmatprep.subr.bf16.mxu1 %v5791_v16  ;;  %5246 = vmatprep.subr.bf16.mxu0 %v5793_v24 }
 0x7df   :  { %v2170_v7 = vadd.f32 %v2169_v10, %v7300_v26  ;;  %v2243_v25 = vadd.f32 %v2242_v2, %v7307_v59  ;;  %v2171_v54 = vpop.f32.mrb[18].mxu1  ;;  %v2244_v8 = vpop.f32.mrb[26].mxu0  ;;  %3850 = vmatprep.mubr.bf16.mxu1 %v2748_v13  ;;  %3915 = vmatprep.mubr.bf16.mxu0 %v2750_v45  ;;  %v5802_v13 = vld [vmem:[#allocation11 + $0x280] sm:$0xff]  }
 0x7e0   :  { %v2172_v9 = vadd.f32 %v2171_v54, %v7286_v11  ;;  %v2245_v12 = vadd.f32 %v2244_v8, %v7293_v4  ;;  %v2173_v14 = vpop.f32.mrb[19].mxu1  ;;  %v2246_v15 = vpop.f32.mrb[27].mxu0  ;;  %3851 = vmatmul.mubr.bf16.gmra.mrb[76].mxu1 %v2747_v43  ;;  %3916 = vmatmul.mubr.bf16.gmra.mrb[84].mxu0 %v2749_v42  ;;  %v2575_v23 = vmax.f32 %v2168_v57, 0.0  ;;  %v2577_v27 = vmax.f32 %v2241_v58, 0.0  ;;  %v5800_v42 = vld [vmem:[#allocation11 + $0x200] sm:$0xff]   ;;  %v5805_v57 = vld [vmem:[#allocation11 + $0x2c8] sm:$0xff]  }
 0x7e1   :  { %v2174_v18 = vadd.f32 %v2173_v14, %v7300_v26  ;;  %v2247_v19 = vadd.f32 %v2246_v15, %v7307_v59  ;;  %5207 = vmatpush3.bf16.msra.mxu1 %v5792_v52  ;;  %5247 = vmatpush3.bf16.msra.mxu0 %v5794_v32  ;;  %v2576_v17 = vmax.f32 %v2170_v7, 0.0  ;;  %v2578_v62 = vmax.f32 %v2243_v25, 0.0  ;;  %v5803_v32 = vld [vmem:[#allocation11 + $0x248] sm:$0xff]  }
 0x7e2   :  { %v2591_v51 = vmax.f32 %v2172_v9, 0.0  ;;  %v2593_v40 = vmax.f32 %v2245_v12, 0.0  ;;  %5208 = vmatprep.subr.bf16.mxu1 %v5795_v3  ;;  %5248 = vmatprep.subr.bf16.mxu0 %v5797_v6  ;;  %v5804_v12 = vld [vmem:[#allocation11 + $0x208] sm:$0xff]  }
 0x7e3   :  { %v2592_v60 = vmax.f32 %v2174_v18, 0.0  ;;  %v2594_v16 = vmax.f32 %v2247_v19, 0.0  ;;  %v5806_v14 = vld [vmem:[#allocation11 + $0x288] sm:$0xff]  }
 0x7e4   :  { %v2703_v24 = vpack.c.bf16 %v2591_v51, %v2575_v23  ;;  %v2705_v61 = vpack.c.bf16 %v2593_v40, %v2577_v27  ;;  %v5809_v23 = vld [vmem:[#allocation11 + $0x2d0] sm:$0xff]  }
 0x7e5   :  { %v2704_v35 = vpack.c.bf16 %v2592_v60, %v2576_v17  ;;  %v2706_v33 = vpack.c.bf16 %v2594_v16, %v2578_v62  ;;  %5209 = vmatpush3.bf16.msra.mxu1 %v5796_v21  ;;  %v2177_v47 = vpop.f32.mrb[20].mxu1  ;;  %v2250_v43 = vpop.f32.mrb[28].mxu0  ;;  %5249 = vmatpush3.bf16.msra.mxu0 %v5798_v22  ;;  %v5807_v22 = vld [vmem:[#allocation11 + $0x250] sm:$0xff]  }
 0x7e6   :  { %v2178_v45 = vadd.f32 %v2177_v47, %v7286_v11  ;;  %v2251_v41 = vadd.f32 %v2250_v43, %v7293_v4  ;;  %v2179_v56 = vpop.f32.mrb[21].mxu1  ;;  %v2252_v52 = vpop.f32.mrb[29].mxu0  ;;  %5274 = vmatprep.subr.bf16.mxu1 %v5799_v29  ;;  %5314 = vmatprep.subr.bf16.mxu0 %v5801_v55 }
 0x7e7   :  { %v2180_v58 = vadd.f32 %v2179_v56, %v7300_v26  ;;  %v2253_v10 = vadd.f32 %v2252_v52, %v7307_v59  ;;  %v2181_v2 = vpop.f32.mrb[22].mxu1  ;;  %v2254_v3 = vpop.f32.mrb[30].mxu0  ;;  %3956 = vmatprep.mubr.bf16.mxu1 %v2704_v35  ;;  %4021 = vmatprep.mubr.bf16.mxu0 %v2706_v33  ;;  %v5810_v35 = vld [vmem:[#allocation11 + $0x290] sm:$0xff]  }
 0x7e8   :  { %v2182_v6 = vadd.f32 %v2181_v2, %v7286_v11  ;;  %v2255_v7 = vadd.f32 %v2254_v3, %v7293_v4  ;;  %v2183_v25 = vpop.f32.mrb[23].mxu1  ;;  %v2256_v54 = vpop.f32.mrb[31].mxu0  ;;  %3957 = vmatmul.mubr.bf16.vlgmr.msra.gmra.mrb[80].mxu1 %v2703_v24  ;;  %4022 = vmatmul.mubr.bf16.vlgmr.msra.gmra.mrb[88].mxu0 %v2705_v61  ;;  %v2607_v15 = vmax.f32 %v2178_v45, 0.0  ;;  %v2609_v18 = vmax.f32 %v2251_v41, 0.0  ;;  %v5808_v61 = vld [vmem:[#allocation11 + $0x210] sm:$0xff]   ;;  %v5813_v45 = vld [vmem:[#allocation11 + $0x2d8] sm:$0xff]  }
 0x7e9   :  { %v2184_v8 = vadd.f32 %v2183_v25, %v7300_v26  ;;  %v2257_v9 = vadd.f32 %v2256_v54, %v7307_v59  ;;  %5275 = vmatpush3.bf16.msra.mxu1 %v5800_v42  ;;  %5315 = vmatpush3.bf16.msra.mxu0 %v5802_v13  ;;  %v2608_v27 = vmax.f32 %v2180_v58, 0.0  ;;  %v2610_v51 = vmax.f32 %v2253_v10, 0.0  ;;  %v5811_v13 = vld [vmem:[#allocation11 + $0x258] sm:$0xff]  }
 0x7ea   :  { %v2623_v19 = vmax.f32 %v2182_v6, 0.0  ;;  %v2625_v21 = vmax.f32 %v2255_v7, 0.0  ;;  %5276 = vmatprep.subr.bf16.mxu1 %v5803_v32  ;;  %5316 = vmatprep.subr.bf16.mxu0 %v5805_v57  ;;  %v5812_v7 = vld [vmem:[#allocation11 + $0x218] sm:$0xff]  }
 0x7eb   :  { %v2624_v40 = vmax.f32 %v2184_v8, 0.0  ;;  %v2626_v29 = vmax.f32 %v2257_v9, 0.0  ;;  %v5814_v25 = vld [vmem:[#allocation11 + $0x298] sm:$0xff]  }
 0x7ec   :  { %v2719_v55 = vpack.c.bf16 %v2623_v19, %v2607_v15  ;;  %v2721_v17 = vpack.c.bf16 %v2625_v21, %v2609_v18  ;;  %v5817_v15 = vld [vmem:[#allocation11 + $0x2e0] sm:$0xff]  }
 0x7ed   :  { %v2720_v62 = vpack.c.bf16 %v2624_v40, %v2608_v27  ;;  %v2722_v60 = vpack.c.bf16 %v2626_v29, %v2610_v51  ;;  %5277 = vmatpush3.bf16.msra.mxu1 %v5804_v12  ;;  %v2187_v16 = vpop.f32.mrb[24].mxu1  ;;  %v2260_v24 = vpop.f32.mrb[32].mxu0  ;;  %5317 = vmatpush3.bf16.msra.mxu0 %v5806_v14  ;;  %v5815_v14 = vld [vmem:[#allocation11 + $0x260] sm:$0xff]  }
 0x7ee   :  { %v2188_v33 = vadd.f32 %v2187_v16, %v7286_v11  ;;  %v2261_v47 = vadd.f32 %v2260_v24, %v7293_v4  ;;  %v2189_v43 = vpop.f32.mrb[25].mxu1  ;;  %v2262_v42 = vpop.f32.mrb[33].mxu0  ;;  %5278 = vmatprep.subr.bf16.mxu1 %v5807_v22  ;;  %5318 = vmatprep.subr.bf16.mxu0 %v5809_v23  ;;  %v7333_v23 = vld [vmem:[#allocation10 + $0x8] sm:$0xff] }
 0x7ef   :  { %v2190_v41 = vadd.f32 %v2189_v43, %v7300_v26  ;;  %v2263_v56 = vadd.f32 %v2262_v42, %v7307_v59  ;;  %v2191_v52 = vpop.f32.mrb[26].mxu1  ;;  %v2264_v32 = vpop.f32.mrb[34].mxu0  ;;  %3964 = vmatprep.mubr.bf16.mxu1 %v2720_v62  ;;  %4029 = vmatprep.mubr.bf16.mxu0 %v2722_v60  ;;  %v5816_v62 = vld [vmem:[#allocation11 + $0x220] sm:$0xff]   ;;  %v7339_v43 = vrot.slane %v7333_v23, %v6444_v34 }
 0x7f0   :  { %v2192_v57 = vadd.f32 %v2191_v52, %v7286_v11  ;;  %v2265_v58 = vadd.f32 %v2264_v32, %v7293_v4  ;;  %v2193_v10 = vpop.f32.mrb[27].mxu1  ;;  %v2266_v2 = vpop.f32.mrb[35].mxu0  ;;  %3965 = vmatmul.mubr.bf16.gmra.mrb[84].mxu1 %v2719_v55  ;;  %4030 = vmatmul.mubr.bf16.gmra.mrb[92].mxu0 %v2721_v17  ;;  %v2639_v54 = vmax.f32 %v2188_v33, 0.0  ;;  %v2641_v8 = vmax.f32 %v2261_v47, 0.0  ;;  %v5818_v60 = vld [vmem:[#allocation11 + $0x2a0] sm:$0xff]   ;;  %v5819_v33 = vld [vmem:[#allocation11 + $0x268] sm:$0xff]  }
 0x7f1   :  { %v2194_v3 = vadd.f32 %v2193_v10, %v7300_v26  ;;  %v2267_v6 = vadd.f32 %v2266_v2, %v7307_v59  ;;  %5279 = vmatpush3.bf16.msra.mxu1 %v5808_v61  ;;  %5319 = vmatpush3.bf16.msra.mxu0 %v5810_v35  ;;  %v2640_v18 = vmax.f32 %v2190_v41, 0.0  ;;  %v2642_v19 = vmax.f32 %v2263_v56, 0.0  ;;  %v5821_v47 = vld [vmem:[#allocation11 + $0x2e8] sm:$0xff]  }
 0x7f2   :  { %v2655_v9 = vmax.f32 %v2192_v57, 0.0  ;;  %v2657_v12 = vmax.f32 %v2265_v58, 0.0  ;;  %5280 = vmatprep.subr.bf16.mxu1 %v5811_v13  ;;  %5320 = vmatprep.subr.bf16.mxu0 %v5813_v45  ;;  %v7345_v56 = vrot.slane %v7333_v23, %v6450_v36  ;;  %v7351_v34 = vrot.slane %v7333_v23, %v6453_v37  ;;  %v5820_v36 = vld [vmem:[#allocation11 + $0x228] sm:$0xff]   ;;  %v5823_v37 = vld [vmem:[#allocation11 + $0x270] sm:$0xff]  }
 0x7f3   :  { %v2656_v21 = vmax.f32 %v2194_v3, 0.0  ;;  %v2658_v22 = vmax.f32 %v2267_v6, 0.0  ;;  %v5822_v3 = vld [vmem:[#allocation11 + $0x2a8] sm:$0xff]  }
 0x7f4   :  { %v2735_v27 = vpack.c.bf16 %v2655_v9, %v2639_v54  ;;  %v2737_v51 = vpack.c.bf16 %v2657_v12, %v2641_v8  ;;  %v5825_v54 = vld [vmem:[#allocation11 + $0x2f0] sm:$0xff]  }
 0x7f5   :  { %v2736_v40 = vpack.c.bf16 %v2656_v21, %v2640_v18  ;;  %v2738_v29 = vpack.c.bf16 %v2658_v22, %v2642_v19  ;;  %5281 = vmatpush3.bf16.msra.mxu1 %v5812_v7  ;;  %v2197_v55 = vpop.f32.mrb[28].mxu1  ;;  %v2270_v17 = vpop.f32.mrb[36].mxu0  ;;  %5321 = vmatpush3.bf16.msra.mxu0 %v5814_v25  ;;  %v5824_v21 = vld [vmem:[#allocation11 + $0x230] sm:$0xff]  }
 0x7f6   :  { %v2198_v16 = vadd.f32 %v2197_v55, %v7286_v11  ;;  %v2271_v24 = vadd.f32 %v2270_v17, %v7293_v4  ;;  %v2199_v61 = vpop.f32.mrb[29].mxu1  ;;  %v2272_v35 = vpop.f32.mrb[37].mxu0  ;;  %5282 = vmatprep.subr.bf16.mxu1 %v5815_v14  ;;  %5322 = vmatprep.subr.bf16.mxu0 %v5817_v15  ;;  %v5826_v22 = vld [vmem:[#allocation11 + $0x2b0] sm:$0xff]   ;;  %v5827_v55 = vld [vmem:[#allocation11 + $0x278] sm:$0xff]  }
 0x7f7   :  { %v2200_v42 = vadd.f32 %v2199_v61, %v7300_v26  ;;  %v2273_v13 = vadd.f32 %v2272_v35, %v7307_v59  ;;  %v2201_v45 = vpop.f32.mrb[30].mxu1  ;;  %v2274_v41 = vpop.f32.mrb[38].mxu0  ;;  %3972 = vmatprep.mubr.bf16.mxu1 %v2736_v40  ;;  %4037 = vmatprep.mubr.bf16.mxu0 %v2738_v29  ;;  %v5829_v17 = vld [vmem:[#allocation11 + $0x2f8] sm:$0xff]  }
 0x7f8   :  { %v2202_v52 = vadd.f32 %v2201_v45, %v7286_v11  ;;  %v2275_v32 = vadd.f32 %v2274_v41, %v7293_v4  ;;  %v2203_v57 = vpop.f32.mrb[31].mxu1  ;;  %v2276_v58 = vpop.f32.mrb[39].mxu0  ;;  %3973 = vmatmul.mubr.bf16.gmra.mrb[88].mxu1 %v2735_v27  ;;  %4038 = vmatmul.mubr.bf16.gmra.mrb[96].mxu0 %v2737_v51  ;;  %v7357_v11 = vrot.slane %v7333_v23, %v6456_v38  ;;  %v2671_v4 = vmax.f32 %v2198_v16, 0.0  ;;  %v5828_v45 = vld [vmem:[#allocation11 + $0x238] sm:$0xff]  }
 0x7f9   :  { %v2204_v10 = vadd.f32 %v2203_v57, %v7300_v26  ;;  %v2277_v2 = vadd.f32 %v2276_v58, %v7307_v59  ;;  %5283 = vmatpush3.bf16.msra.mxu1 %v5816_v62  ;;  %5323 = vmatpush3.bf16.msra.mxu0 %v5818_v60  ;;  %v2673_v6 = vmax.f32 %v2271_v24, 0.0  ;;  %v2672_v8 = vmax.f32 %v2200_v42, 0.0  ;;  %v5830_v41 = vld [vmem:[#allocation11 + $0x2b8] sm:$0xff]  }
 0x7fa   :  { %v2687_v7 = vmax.f32 %v2202_v52, 0.0  ;;  %v2689_v25 = vmax.f32 %v2275_v32, 0.0  ;;  %5284 = vmatprep.subr.bf16.mxu1 %v5819_v33  ;;  %5324 = vmatprep.subr.bf16.mxu0 %v5821_v47  ;;  %v2674_v26 = vmax.f32 %v2273_v13, 0.0 }
 0x7fb   :  { %v2688_v9 = vmax.f32 %v2204_v10, 0.0  ;;  %v2690_v59 = vmax.f32 %v2277_v2, 0.0  ;;  %v5831_v10 = vld [vmem:[#allocation11 + $0x340] sm:$0xff]  }
 0x7fc   :  { %v2751_v12 = vpack.c.bf16 %v2687_v7, %v2671_v4  ;;  %v2753_v14 = vpack.c.bf16 %v2689_v25, %v2673_v6  ;;  %v5833_v2 = vld [vmem:[#allocation11 + $0x3c0] sm:$0xff]  }
 0x7fd   :  { %v2752_v15 = vpack.c.bf16 %v2688_v9, %v2672_v8  ;;  %v2754_v18 = vpack.c.bf16 %v2690_v59, %v2674_v26  ;;  %5285 = vmatpush3.bf16.msra.mxu1 %v5820_v36  ;;  %v2313_v19 = vpop.f32.mrb[32].mxu1  ;;  %v2386_v38 = vpop.f32.mrb[40].mxu0  ;;  %5325 = vmatpush3.bf16.msra.mxu0 %v5822_v3  ;;  %v5832_v9 = vld [vmem:[#allocation11 + $0x300] sm:$0xff]  }
 0x7fe   :  { %v2314_v27 = vadd.f32 %v2313_v19, %v7339_v43  ;;  %v2387_v51 = vadd.f32 %v2386_v38, %v7345_v56  ;;  %v2315_v40 = vpop.f32.mrb[33].mxu1  ;;  %v2388_v29 = vpop.f32.mrb[41].mxu0  ;;  %5286 = vmatprep.subr.bf16.mxu1 %v5823_v37  ;;  %5326 = vmatprep.subr.bf16.mxu0 %v5825_v54  ;;  %v5834_v59 = vld [vmem:[#allocation11 + $0x380] sm:$0xff]   ;;  %v5835_v19 = vld [vmem:[#allocation11 + $0x348] sm:$0xff]  }
 0x7ff   :  { %v2316_v62 = vadd.f32 %v2315_v40, %v7351_v34  ;;  %v2389_v60 = vadd.f32 %v2388_v29, %v7357_v11  ;;  %v2317_v16 = vpop.f32.mrb[34].mxu1  ;;  %v2390_v24 = vpop.f32.mrb[42].mxu0  ;;  %3980 = vmatprep.mubr.bf16.mxu1 %v2752_v15  ;;  %4045 = vmatprep.mubr.bf16.mxu0 %v2754_v18  ;;  %v5837_v38 = vld [vmem:[#allocation11 + $0x3c8] sm:$0xff]  }
 0x800   :  { %v2318_v61 = vadd.f32 %v2317_v16, %v7339_v43  ;;  %v2391_v35 = vadd.f32 %v2390_v24, %v7345_v56  ;;  %v2319_v33 = vpop.f32.mrb[35].mxu1  ;;  %v2392_v47 = vpop.f32.mrb[43].mxu0  ;;  %3981 = vmatmul.mubr.bf16.gmra.mrb[92].mxu1 %v2751_v12  ;;  %4046 = vmatmul.mubr.bf16.gmra.mrb[100].mxu0 %v2753_v14  ;;  %v2579_v52 = vmax.f32 %v2314_v27, 0.0  ;;  %v2581_v32 = vmax.f32 %v2387_v51, 0.0  ;;  %v5836_v16 = vld [vmem:[#allocation11 + $0x308] sm:$0xff]  }
 0x801   :  { %v2320_v42 = vadd.f32 %v2319_v33, %v7351_v34  ;;  %v2393_v13 = vadd.f32 %v2392_v47, %v7357_v11  ;;  %5287 = vmatpush3.bf16.msra.mxu1 %v5824_v21  ;;  %5327 = vmatpush3.bf16.msra.mxu0 %v5826_v22  ;;  %v2580_v36 = vmax.f32 %v2316_v62, 0.0  ;;  %v2582_v3 = vmax.f32 %v2389_v60, 0.0  ;;  %v5838_v24 = vld [vmem:[#allocation11 + $0x388] sm:$0xff]  }
 0x802   :  { %v2595_v57 = vmax.f32 %v2318_v61, 0.0  ;;  %v2597_v58 = vmax.f32 %v2391_v35, 0.0  ;;  %5288 = vmatprep.subr.bf16.mxu1 %v5827_v55  ;;  %5328 = vmatprep.subr.bf16.mxu0 %v5829_v17 }
 0x803   :  { %v2596_v4 = vmax.f32 %v2320_v42, 0.0  ;;  %v2598_v6 = vmax.f32 %v2393_v13, 0.0  ;;  %v5839_v42 = vld [vmem:[#allocation11 + $0x350] sm:$0xff]  }
 0x804   :  { %v2707_v7 = vpack.c.bf16 %v2595_v57, %v2579_v52  ;;  %v2709_v25 = vpack.c.bf16 %v2597_v58, %v2581_v32  ;;  %v5841_v13 = vld [vmem:[#allocation11 + $0x3d0] sm:$0xff]  }
 0x805   :  { %v2708_v37 = vpack.c.bf16 %v2596_v4, %v2580_v36  ;;  %v2710_v54 = vpack.c.bf16 %v2598_v6, %v2582_v3  ;;  %5289 = vmatpush3.bf16.msra.mxu1 %v5828_v45  ;;  %v2323_v8 = vpop.f32.mrb[36].mxu1  ;;  %v2396_v26 = vpop.f32.mrb[44].mxu0  ;;  %5329 = vmatpush3.bf16.msra.mxu0 %v5830_v41  ;;  %v5840_v4 = vld [vmem:[#allocation11 + $0x310] sm:$0xff]  }
 0x806   :  { %v2324_v12 = vadd.f32 %v2323_v8, %v7339_v43  ;;  %v2397_v14 = vadd.f32 %v2396_v26, %v7345_v56  ;;  %v2325_v15 = vpop.f32.mrb[37].mxu1  ;;  %v2398_v18 = vpop.f32.mrb[45].mxu0  ;;  %5354 = vmatprep.subr.bf16.mxu1 %v5831_v10  ;;  %5394 = vmatprep.subr.bf16.mxu0 %v5833_v2  ;;  %v5842_v6 = vld [vmem:[#allocation11 + $0x390] sm:$0xff]   ;;  %v5843_v8 = vld [vmem:[#allocation11 + $0x358] sm:$0xff]  }
 0x807   :  { %v2326_v21 = vadd.f32 %v2325_v15, %v7351_v34  ;;  %v2399_v22 = vadd.f32 %v2398_v18, %v7357_v11  ;;  %v2327_v27 = vpop.f32.mrb[38].mxu1  ;;  %v2400_v51 = vpop.f32.mrb[46].mxu0  ;;  %4086 = vmatprep.mubr.bf16.mxu1 %v2708_v37  ;;  %4151 = vmatprep.mubr.bf16.mxu0 %v2710_v54  ;;  %v5845_v26 = vld [vmem:[#allocation11 + $0x3d8] sm:$0xff]  }
 0x808   :  { %v2328_v40 = vadd.f32 %v2327_v27, %v7339_v43  ;;  %v2401_v29 = vadd.f32 %v2400_v51, %v7345_v56  ;;  %v2329_v55 = vpop.f32.mrb[39].mxu1  ;;  %v2402_v17 = vpop.f32.mrb[47].mxu0  ;;  %4087 = vmatmul.mubr.bf16.vlgmr.msra.gmra.mrb[96].mxu1 %v2707_v7  ;;  %4152 = vmatmul.mubr.bf16.vlgmr.msra.gmra.mrb[104].mxu0 %v2709_v25  ;;  %v2611_v61 = vmax.f32 %v2324_v12, 0.0  ;;  %v2613_v35 = vmax.f32 %v2397_v14, 0.0  ;;  %v5844_v27 = vld [vmem:[#allocation11 + $0x318] sm:$0xff]  }
 0x809   :  { %v2330_v62 = vadd.f32 %v2329_v55, %v7351_v34  ;;  %v2403_v60 = vadd.f32 %v2402_v17, %v7357_v11  ;;  %5355 = vmatpush3.bf16.msra.mxu1 %v5832_v9  ;;  %5395 = vmatpush3.bf16.msra.mxu0 %v5834_v59  ;;  %v2612_v45 = vmax.f32 %v2326_v21, 0.0  ;;  %v2614_v41 = vmax.f32 %v2399_v22, 0.0  ;;  %v5846_v51 = vld [vmem:[#allocation11 + $0x398] sm:$0xff]  }
 0x80a   :  { %v2627_v33 = vmax.f32 %v2328_v40, 0.0  ;;  %v2629_v47 = vmax.f32 %v2401_v29, 0.0  ;;  %5356 = vmatprep.subr.bf16.mxu1 %v5835_v19  ;;  %5396 = vmatprep.subr.bf16.mxu0 %v5837_v38 }
 0x80b   :  { %v2628_v52 = vmax.f32 %v2330_v62, 0.0  ;;  %v2630_v32 = vmax.f32 %v2403_v60, 0.0  ;;  %v5847_v62 = vld [vmem:[#allocation11 + $0x360] sm:$0xff]  }
 0x80c   :  { %v2723_v57 = vpack.c.bf16 %v2627_v33, %v2611_v61  ;;  %v2725_v58 = vpack.c.bf16 %v2629_v47, %v2613_v35  ;;  %v5849_v60 = vld [vmem:[#allocation11 + $0x3e0] sm:$0xff]  }
 0x80d   :  { %v2724_v10 = vpack.c.bf16 %v2628_v52, %v2612_v45  ;;  %v2726_v2 = vpack.c.bf16 %v2630_v32, %v2614_v41  ;;  %5357 = vmatpush3.bf16.msra.mxu1 %v5836_v16  ;;  %v2333_v36 = vpop.f32.mrb[40].mxu1  ;;  %v2406_v3 = vpop.f32.mrb[48].mxu0  ;;  %5397 = vmatpush3.bf16.msra.mxu0 %v5838_v24  ;;  %v5848_v52 = vld [vmem:[#allocation11 + $0x320] sm:$0xff]  }
 0x80e   :  { %v2334_v7 = vadd.f32 %v2333_v36, %v7339_v43  ;;  %v2407_v25 = vadd.f32 %v2406_v3, %v7345_v56  ;;  %v2335_v37 = vpop.f32.mrb[41].mxu1  ;;  %v2408_v54 = vpop.f32.mrb[49].mxu0  ;;  %5358 = vmatprep.subr.bf16.mxu1 %v5839_v42  ;;  %5398 = vmatprep.subr.bf16.mxu0 %v5841_v13  ;;  %v5850_v32 = vld [vmem:[#allocation11 + $0x3a0] sm:$0xff]   ;;  %v5851_v36 = vld [vmem:[#allocation11 + $0x368] sm:$0xff]  }
 0x80f   :  { %v2336_v9 = vadd.f32 %v2335_v37, %v7351_v34  ;;  %v2409_v59 = vadd.f32 %v2408_v54, %v7357_v11  ;;  %v2337_v12 = vpop.f32.mrb[42].mxu1  ;;  %v2410_v14 = vpop.f32.mrb[50].mxu0  ;;  %4094 = vmatprep.mubr.bf16.mxu1 %v2724_v10  ;;  %4159 = vmatprep.mubr.bf16.mxu0 %v2726_v2  ;;  %v5853_v3 = vld [vmem:[#allocation11 + $0x3e8] sm:$0xff]   ;;  %v7395_v54 = vrot.slane %v7333_v23, %v1293_v44 }
 0x810   :  { %v2338_v15 = vadd.f32 %v2337_v12, %v7339_v43  ;;  %v2411_v18 = vadd.f32 %v2410_v14, %v7345_v56  ;;  %v2339_v19 = vpop.f32.mrb[43].mxu1  ;;  %v2412_v38 = vpop.f32.mrb[51].mxu0  ;;  %4095 = vmatmul.mubr.bf16.gmra.mrb[100].mxu1 %v2723_v57  ;;  %4160 = vmatmul.mubr.bf16.gmra.mrb[108].mxu0 %v2725_v58  ;;  %v2643_v40 = vmax.f32 %v2334_v7, 0.0  ;;  %v2645_v29 = vmax.f32 %v2407_v25, 0.0  ;;  %v5852_v44 = vld [vmem:[#allocation11 + $0x328] sm:$0xff]  }
 0x811   :  { %v2340_v21 = vadd.f32 %v2339_v19, %v7351_v34  ;;  %v2413_v22 = vadd.f32 %v2412_v38, %v7357_v11  ;;  %5359 = vmatpush3.bf16.msra.mxu1 %v5840_v4  ;;  %5399 = vmatpush3.bf16.msra.mxu0 %v5842_v6  ;;  %v2644_v16 = vmax.f32 %v2336_v9, 0.0  ;;  %v2646_v24 = vmax.f32 %v2409_v59, 0.0 }
 0x812   :  { %v2659_v55 = vmax.f32 %v2338_v15, 0.0  ;;  %v2661_v17 = vmax.f32 %v2411_v18, 0.0  ;;  %5360 = vmatprep.subr.bf16.mxu1 %v5843_v8  ;;  %5400 = vmatprep.subr.bf16.mxu0 %v5845_v26  ;;  %v7388_v4 = vrot.slane %v7333_v23, %v1285_v30  ;;  %v7402_v59 = vrot.slane %v7333_v23, %v1289_v53  ;;  %v5854_v15 = vld [vmem:[#allocation11 + $0x3a8] sm:$0xff]   ;;  %v5855_v53 = vld [vmem:[#allocation11 + $0x370] sm:$0xff]  }
 0x813   :  { %v2660_v61 = vmax.f32 %v2340_v21, 0.0  ;;  %v2662_v35 = vmax.f32 %v2413_v22, 0.0  ;;  %v5857_v21 = vld [vmem:[#allocation11 + $0x3f0] sm:$0xff]  }
 0x814   :  { %v2739_v33 = vpack.c.bf16 %v2659_v55, %v2643_v40  ;;  %v2741_v47 = vpack.c.bf16 %v2661_v17, %v2645_v29  ;;  %v5858_v17 = vld [vmem:[#allocation11 + $0x3b0] sm:$0xff]  }
 0x815   :  { %v2740_v42 = vpack.c.bf16 %v2660_v61, %v2644_v16  ;;  %v2742_v13 = vpack.c.bf16 %v2662_v35, %v2646_v24  ;;  %5361 = vmatpush3.bf16.msra.mxu1 %v5844_v27  ;;  %v2343_v45 = vpop.f32.mrb[44].mxu1  ;;  %v2416_v41 = vpop.f32.mrb[52].mxu0  ;;  %5401 = vmatpush3.bf16.msra.mxu0 %v5846_v51  ;;  %v5859_v61 = vld [vmem:[#allocation11 + $0x378] sm:$0xff]  }
 0x816   :  { %v2344_v57 = vadd.f32 %v2343_v45, %v7339_v43  ;;  %v2417_v58 = vadd.f32 %v2416_v41, %v7345_v56  ;;  %v2345_v10 = vpop.f32.mrb[45].mxu1  ;;  %v2418_v2 = vpop.f32.mrb[53].mxu0  ;;  %5362 = vmatprep.subr.bf16.mxu1 %v5847_v62  ;;  %5402 = vmatprep.subr.bf16.mxu0 %v5849_v60  ;;  %v5861_v35 = vld [vmem:[#allocation11 + $0x3f8] sm:$0xff]  }
 0x817   :  { %v2346_v6 = vadd.f32 %v2345_v10, %v7351_v34  ;;  %v2419_v7 = vadd.f32 %v2418_v2, %v7357_v11  ;;  %v2347_v25 = vpop.f32.mrb[46].mxu1  ;;  %v2420_v37 = vpop.f32.mrb[54].mxu0  ;;  %4102 = vmatprep.mubr.bf16.mxu1 %v2740_v42  ;;  %4167 = vmatprep.mubr.bf16.mxu0 %v2742_v13  ;;  %v5860_v10 = vld [vmem:[#allocation11 + $0x338] sm:$0xff]  }
 0x818   :  { %v2348_v8 = vadd.f32 %v2347_v25, %v7339_v43  ;;  %v2421_v26 = vadd.f32 %v2420_v37, %v7345_v56  ;;  %v2349_v9 = vpop.f32.mrb[47].mxu1  ;;  %v2422_v30 = vpop.f32.mrb[55].mxu0  ;;  %4103 = vmatmul.mubr.bf16.gmra.mrb[104].mxu1 %v2739_v33  ;;  %4168 = vmatmul.mubr.bf16.gmra.mrb[112].mxu0 %v2741_v47  ;;  %v7409_v43 = vrot.slane %v7333_v23, %v1297_v5  ;;  %v2675_v56 = vmax.f32 %v2344_v57, 0.0  ;;  %v5856_v23 = vld [vmem:[#allocation11 + $0x330] sm:$0xff]   ;;  %v5862_v2 = vld [vmem:[#allocation11 + $0x3b8] sm:$0xff]  }
 0x819   :  { %v2350_v12 = vadd.f32 %v2349_v9, %v7351_v34  ;;  %v2423_v14 = vadd.f32 %v2422_v30, %v7357_v11  ;;  %5363 = vmatpush3.bf16.msra.mxu1 %v5848_v52  ;;  %5403 = vmatpush3.bf16.msra.mxu0 %v5850_v32  ;;  %v2677_v18 = vmax.f32 %v2417_v58, 0.0  ;;  %v2676_v34 = vmax.f32 %v2346_v6, 0.0 }
 0x81a   :  { %v2691_v19 = vmax.f32 %v2348_v8, 0.0  ;;  %v2693_v38 = vmax.f32 %v2421_v26, 0.0  ;;  %5364 = vmatprep.subr.bf16.mxu1 %v5851_v36  ;;  %5404 = vmatprep.subr.bf16.mxu0 %v5853_v3  ;;  %v2678_v22 = vmax.f32 %v2419_v7, 0.0 }
 0x81b   :  { %v2692_v11 = vmax.f32 %v2350_v12, 0.0  ;;  %v2694_v27 = vmax.f32 %v2423_v14, 0.0 }
 0x81c   :  { %v2755_v51 = vpack.c.bf16 %v2691_v19, %v2675_v56  ;;  %v2757_v40 = vpack.c.bf16 %v2693_v38, %v2677_v18 }
 0x81d   :  { %v2756_v29 = vpack.c.bf16 %v2692_v11, %v2676_v34  ;;  %v2758_v55 = vpack.c.bf16 %v2694_v27, %v2678_v22  ;;  %5365 = vmatpush3.bf16.msra.mxu1 %v5852_v44  ;;  %v2459_v63 = vpop.f32.mrb[48].mxu1  ;;  %v2532_v5 = vpop.f32.mrb[56].mxu0  ;;  %5405 = vmatpush3.bf16.msra.mxu0 %v5854_v15 }
 0x81e   :  { %v2460_v62 = vadd.f32 %v2459_v63, %v7388_v4  ;;  %v2533_v60 = vadd.f32 %v2532_v5, %v7395_v54  ;;  %v2461_v16 = vpop.f32.mrb[49].mxu1  ;;  %v2534_v24 = vpop.f32.mrb[57].mxu0  ;;  %5366 = vmatprep.subr.bf16.mxu1 %v5855_v53  ;;  %5406 = vmatprep.subr.bf16.mxu0 %v5857_v21 }
 0x81f   :  { %v2462_v33 = vadd.f32 %v2461_v16, %v7402_v59  ;;  %v2535_v47 = vadd.f32 %v2534_v24, %v7409_v43  ;;  %v2463_v42 = vpop.f32.mrb[50].mxu1  ;;  %v2536_v13 = vpop.f32.mrb[58].mxu0  ;;  %4110 = vmatprep.mubr.bf16.mxu1 %v2756_v29  ;;  %4175 = vmatprep.mubr.bf16.mxu0 %v2758_v55 }
 0x820   :  { %v2464_v45 = vadd.f32 %v2463_v42, %v7388_v4  ;;  %v2537_v41 = vadd.f32 %v2536_v13, %v7395_v54  ;;  %v2465_v52 = vpop.f32.mrb[51].mxu1  ;;  %v2538_v32 = vpop.f32.mrb[59].mxu0  ;;  %4111 = vmatmul.mubr.bf16.gmra.mrb[108].mxu1 %v2755_v51  ;;  %4176 = vmatmul.mubr.bf16.gmra.mrb[116].mxu0 %v2757_v40  ;;  %v2583_v36 = vmax.f32 %v2460_v62, 0.0  ;;  %v2585_v3 = vmax.f32 %v2533_v60, 0.0 }
 0x821   :  { %v2466_v57 = vadd.f32 %v2465_v52, %v7402_v59  ;;  %v2539_v58 = vadd.f32 %v2538_v32, %v7409_v43  ;;  %5367 = vmatpush3.bf16.msra.mxu1 %v5856_v23  ;;  %5407 = vmatpush3.bf16.msra.mxu0 %v5858_v17  ;;  %v2584_v25 = vmax.f32 %v2462_v33, 0.0  ;;  %v2586_v37 = vmax.f32 %v2535_v47, 0.0 }
 0x822   :  { %v2599_v6 = vmax.f32 %v2464_v45, 0.0  ;;  %v2601_v7 = vmax.f32 %v2537_v41, 0.0  ;;  %5368 = vmatprep.subr.bf16.mxu1 %v5859_v61  ;;  %5408 = vmatprep.subr.bf16.mxu0 %v5861_v35 }
 0x823   :  { %v2600_v8 = vmax.f32 %v2466_v57, 0.0  ;;  %v2602_v26 = vmax.f32 %v2539_v58, 0.0 }
 0x824   :  { %v2711_v9 = vpack.c.bf16 %v2599_v6, %v2583_v36  ;;  %v2713_v30 = vpack.c.bf16 %v2601_v7, %v2585_v3 }
 0x825   :  { %v2712_v12 = vpack.c.bf16 %v2600_v8, %v2584_v25  ;;  %v2714_v14 = vpack.c.bf16 %v2602_v26, %v2586_v37  ;;  %5369 = vmatpush3.bf16.msra.mxu1 %v5860_v10  ;;  %v2469_v44 = vpop.f32.mrb[52].mxu1  ;;  %v2542_v15 = vpop.f32.mrb[60].mxu0  ;;  %5409 = vmatpush3.bf16.msra.mxu0 %v5862_v2 }
 0x826   :  { %v2470_v56 = vadd.f32 %v2469_v44, %v7388_v4  ;;  %v2543_v18 = vadd.f32 %v2542_v15, %v7395_v54  ;;  %v2471_v19 = vpop.f32.mrb[53].mxu1  ;;  %v2544_v38 = vpop.f32.mrb[61].mxu0 }
 0x827   :  { %v2472_v53 = vadd.f32 %v2471_v19, %v7402_v59  ;;  %v2545_v21 = vadd.f32 %v2544_v38, %v7409_v43  ;;  %v2473_v34 = vpop.f32.mrb[54].mxu1  ;;  %v2546_v22 = vpop.f32.mrb[62].mxu0  ;;  %4216 = vmatprep.mubr.bf16.mxu1 %v2712_v12  ;;  %4281 = vmatprep.mubr.bf16.mxu0 %v2714_v14 }
 0x828   :  { %v2474_v11 = vadd.f32 %v2473_v34, %v7388_v4  ;;  %v2547_v27 = vadd.f32 %v2546_v22, %v7395_v54  ;;  %v2475_v51 = vpop.f32.mrb[55].mxu1  ;;  %v2548_v40 = vpop.f32.mrb[63].mxu0  ;;  %4217 = vmatmul.mubr.bf16.vlgmr.msra.gmra.mrb[112].mxu1 %v2711_v9  ;;  %4282 = vmatmul.mubr.bf16.vlgmr.msra.gmra.mrb[120].mxu0 %v2713_v30  ;;  %v2615_v63 = vmax.f32 %v2470_v56, 0.0  ;;  %v2617_v5 = vmax.f32 %v2543_v18, 0.0 }
 0x829   :  { %v2476_v29 = vadd.f32 %v2475_v51, %v7402_v59  ;;  %v2549_v55 = vadd.f32 %v2548_v40, %v7409_v43  ;;  %v2616_v62 = vmax.f32 %v2472_v53, 0.0  ;;  %v2618_v60 = vmax.f32 %v2545_v21, 0.0 }
 0x82a   :  { %v2631_v23 = vmax.f32 %v2474_v11, 0.0  ;;  %v2633_v17 = vmax.f32 %v2547_v27, 0.0 }
 0x82b   :  { %v2632_v16 = vmax.f32 %v2476_v29, 0.0  ;;  %v2634_v24 = vmax.f32 %v2549_v55, 0.0 }
 0x82c   :  { %v2727_v61 = vpack.c.bf16 %v2631_v23, %v2615_v63  ;;  %v2729_v35 = vpack.c.bf16 %v2633_v17, %v2617_v5 }
 0x82d   :  { %v2728_v33 = vpack.c.bf16 %v2632_v16, %v2616_v62  ;;  %v2730_v47 = vpack.c.bf16 %v2634_v24, %v2618_v60  ;;  %v2479_v42 = vpop.f32.mrb[56].mxu1  ;;  %v2552_v13 = vpop.f32.mrb[64].mxu0 }
 0x82e   :  { %v2480_v45 = vadd.f32 %v2479_v42, %v7388_v4  ;;  %v2553_v41 = vadd.f32 %v2552_v13, %v7395_v54  ;;  %v2481_v52 = vpop.f32.mrb[57].mxu1  ;;  %v2554_v32 = vpop.f32.mrb[65].mxu0 }
 0x82f   :  { %v2482_v57 = vadd.f32 %v2481_v52, %v7402_v59  ;;  %v2555_v58 = vadd.f32 %v2554_v32, %v7409_v43  ;;  %v2483_v10 = vpop.f32.mrb[58].mxu1  ;;  %v2556_v2 = vpop.f32.mrb[66].mxu0  ;;  %4224 = vmatprep.mubr.bf16.mxu1 %v2728_v33  ;;  %4289 = vmatprep.mubr.bf16.mxu0 %v2730_v47 }
 0x830   :  { %v2484_v36 = vadd.f32 %v2483_v10, %v7388_v4  ;;  %v2557_v3 = vadd.f32 %v2556_v2, %v7395_v54  ;;  %v2485_v6 = vpop.f32.mrb[59].mxu1  ;;  %v2558_v7 = vpop.f32.mrb[67].mxu0  ;;  %4225 = vmatmul.mubr.bf16.gmra.mrb[116].mxu1 %v2727_v61  ;;  %4290 = vmatmul.mubr.bf16.gmra.mrb[124].mxu0 %v2729_v35  ;;  %v2647_v8 = vmax.f32 %v2480_v45, 0.0  ;;  %v2649_v26 = vmax.f32 %v2553_v41, 0.0 }
 0x831   :  { %v2486_v25 = vadd.f32 %v2485_v6, %v7402_v59  ;;  %v2559_v37 = vadd.f32 %v2558_v7, %v7409_v43  ;;  %v2648_v12 = vmax.f32 %v2482_v57, 0.0  ;;  %v2650_v14 = vmax.f32 %v2555_v58, 0.0 }
 0x832   :  { %v2663_v9 = vmax.f32 %v2484_v36, 0.0  ;;  %v2665_v30 = vmax.f32 %v2557_v3, 0.0 }
 0x833   :  { %v2664_v44 = vmax.f32 %v2486_v25, 0.0  ;;  %v2666_v15 = vmax.f32 %v2559_v37, 0.0 }
 0x834   :  { %v2743_v56 = vpack.c.bf16 %v2663_v9, %v2647_v8  ;;  %v2745_v18 = vpack.c.bf16 %v2665_v30, %v2649_v26 }
 0x835   :  { %v2744_v19 = vpack.c.bf16 %v2664_v44, %v2648_v12  ;;  %v2746_v38 = vpack.c.bf16 %v2666_v15, %v2650_v14  ;;  %v2489_v53 = vpop.f32.mrb[60].mxu1  ;;  %v2562_v21 = vpop.f32.mrb[68].mxu0 }
 0x836   :  { %v2490_v34 = vadd.f32 %v2489_v53, %v7388_v4  ;;  %v2563_v22 = vadd.f32 %v2562_v21, %v7395_v54  ;;  %v2491_v11 = vpop.f32.mrb[61].mxu1  ;;  %v2564_v27 = vpop.f32.mrb[69].mxu0 }
 0x837   :  { %v2492_v51 = vadd.f32 %v2491_v11, %v7402_v59  ;;  %v2565_v40 = vadd.f32 %v2564_v27, %v7409_v43  ;;  %v2493_v29 = vpop.f32.mrb[62].mxu1  ;;  %v2566_v55 = vpop.f32.mrb[70].mxu0  ;;  %4232 = vmatprep.mubr.bf16.mxu1 %v2744_v19  ;;  %4297 = vmatprep.mubr.bf16.mxu0 %v2746_v38 }
 0x838   :  { %v2494_v63 = vadd.f32 %v2493_v29, %v7388_v4  ;;  %v2567_v5 = vadd.f32 %v2566_v55, %v7395_v54  ;;  %v2495_v23 = vpop.f32.mrb[63].mxu1  ;;  %v2568_v17 = vpop.f32.mrb[71].mxu0  ;;  %4233 = vmatmul.mubr.bf16.gmra.mrb[120].mxu1 %v2743_v56  ;;  %4298 = vmatmul.mubr.bf16.gmra.mrb[128].mxu0 %v2745_v18  ;;  %v2679_v16 = vmax.f32 %v2490_v34, 0.0  ;;  %v2681_v24 = vmax.f32 %v2563_v22, 0.0 }
 0x839   :  { %v2496_v62 = vadd.f32 %v2495_v23, %v7402_v59  ;;  %v2569_v60 = vadd.f32 %v2568_v17, %v7409_v43  ;;  %v2680_v33 = vmax.f32 %v2492_v51, 0.0  ;;  %v2682_v47 = vmax.f32 %v2565_v40, 0.0  ;;  %v4953_v43 = vld [vmem:[%s7767_s13] ss:$0 sm:$0xff] }
 0x83a   :  { %v2695_v61 = vmax.f32 %v2494_v63, 0.0  ;;  %v2697_v35 = vmax.f32 %v2567_v5, 0.0 }
 0x83b   :  { %v2696_v42 = vmax.f32 %v2496_v62, 0.0  ;;  %v2698_v13 = vmax.f32 %v2569_v60, 0.0 }
 0x83c   :  { %v2759_v45 = vpack.c.bf16 %v2695_v61, %v2679_v16  ;;  %v2761_v4 = vpack.c.bf16 %v2697_v35, %v2681_v24 }
 0x83d   :  { %v2760_v41 = vpack.c.bf16 %v2696_v42, %v2680_v33  ;;  %v2762_v54 = vpack.c.bf16 %v2698_v13, %v2682_v47 }
 0x83f   :  { %4240 = vmatprep.mubr.bf16.mxu1 %v2760_v41  ;;  %4305 = vmatprep.mubr.bf16.mxu0 %v2762_v54 }
 0x840   :  { %4241 = vmatmul.mubr.bf16.gmra.mrb[124].mxu1 %v2759_v45  ;;  %4306 = vmatmul.mubr.bf16.gmra.mrb[132].mxu0 %v2761_v4 }
 0x841   :  { %5536 = vmatprep.mubr.msk.f32.mxu1 %vm6067_vm1, %v6062_v0 }
 0x89b   :  { %v5130_v52 = vpop.f32.mrb[64].mxu1  ;;  %v5170_v59 = vpop.f32.mrb[72].mxu0 }
 0x89c   :  { %v5131_v32 = vpop.f32.mrb[65].mxu1  ;;  %v5171_v57 = vpop.f32.mrb[73].mxu0 }
 0x89d   :  { %v5132_v58 = vadd.f32 %v5131_v32, %v5130_v52  ;;  %v5172_v10 = vadd.f32 %v5171_v57, %v5170_v59  ;;  %v5133_v2 = vpop.f32.mrb[66].mxu1  ;;  %v5173_v36 = vpop.f32.mrb[74].mxu0 }
 0x89e   :  { %v5134_v3 = vpop.f32.mrb[67].mxu1  ;;  %v5174_v6 = vpop.f32.mrb[75].mxu0 }
 0x89f   :  { %v3829_v7 = vadd.f32 %v5132_v58, %v4953_v43  ;;  %v5135_v25 = vadd.f32 %v5134_v3, %v5133_v2  ;;  %v5175_v37 = vadd.f32 %v5174_v6, %v5173_v36 }
 0x8a1   :  { %v3894_v8 = vadd.f32 %v5172_v10, %v3829_v7  ;;  %v3832_v26 = vadd.f32 %v5135_v25, %v4953_v43 }
 0x8a3   :  { %v7446_v9 = vadd.f32 %v5175_v37, %v3832_v26  ;;  %v5136_v30 = vpop.f32.mrb[68].mxu1  ;;  %v5176_v12 = vpop.f32.mrb[76].mxu0 }
 0x8a4   :  { %v5137_v14 = vpop.f32.mrb[69].mxu1  ;;  %v5177_v44 = vpop.f32.mrb[77].mxu0 }
 0x8a5   :  { %v5138_v15 = vadd.f32 %v5137_v14, %v5136_v30  ;;  %v5178_v56 = vadd.f32 %v5177_v44, %v5176_v12  ;;  %v5139_v18 = vpop.f32.mrb[70].mxu1  ;;  %v5179_v19 = vpop.f32.mrb[78].mxu0 }
 0x8a6   :  { %v5140_v38 = vpop.f32.mrb[71].mxu1  ;;  %v5180_v53 = vpop.f32.mrb[79].mxu0 }
 0x8a7   :  { %v3837_v21 = vadd.f32 %v5138_v15, %v4953_v43  ;;  %v5141_v34 = vadd.f32 %v5140_v38, %v5139_v18  ;;  %v5181_v22 = vadd.f32 %v5180_v53, %v5179_v19 }
 0x8a9   :  { %v3902_v11 = vadd.f32 %v5178_v56, %v3837_v21  ;;  %v3840_v27 = vadd.f32 %v5141_v34, %v4953_v43 }
 0x8ab   :  { %v7448_v51 = vadd.f32 %v5181_v22, %v3840_v27  ;;  %v5142_v40 = vpop.f32.mrb[72].mxu1  ;;  %v5182_v29 = vpop.f32.mrb[80].mxu0 }
 0x8ac   :  { %v5143_v55 = vpop.f32.mrb[73].mxu1  ;;  %v5183_v63 = vpop.f32.mrb[81].mxu0 }
 0x8ad   :  { %v5144_v5 = vadd.f32 %v5143_v55, %v5142_v40  ;;  %v5184_v23 = vadd.f32 %v5183_v63, %v5182_v29  ;;  %v5145_v17 = vpop.f32.mrb[74].mxu1  ;;  %v5185_v62 = vpop.f32.mrb[82].mxu0 }
 0x8ae   :  { %v5146_v60 = vpop.f32.mrb[75].mxu1  ;;  %v5186_v16 = vpop.f32.mrb[83].mxu0 }
 0x8af   :  { %v3845_v24 = vadd.f32 %v5144_v5, %v4953_v43  ;;  %v5147_v61 = vadd.f32 %v5146_v60, %v5145_v17  ;;  %v5187_v35 = vadd.f32 %v5186_v16, %v5185_v62 }
 0x8b1   :  { %v3910_v33 = vadd.f32 %v5184_v23, %v3845_v24  ;;  %v3848_v47 = vadd.f32 %v5147_v61, %v4953_v43 }
 0x8b3   :  { %v7450_v42 = vadd.f32 %v5187_v35, %v3848_v47  ;;  %v5148_v13 = vpop.f32.mrb[76].mxu1  ;;  %v5188_v45 = vpop.f32.mrb[84].mxu0 }
 0x8b4   :  { %v5149_v4 = vpop.f32.mrb[77].mxu1  ;;  %v5189_v41 = vpop.f32.mrb[85].mxu0 }
 0x8b5   :  { %v5150_v54 = vadd.f32 %v5149_v4, %v5148_v13  ;;  %v5190_v52 = vadd.f32 %v5189_v41, %v5188_v45  ;;  %v5151_v59 = vpop.f32.mrb[78].mxu1  ;;  %v5191_v32 = vpop.f32.mrb[86].mxu0 }
 0x8b6   :  { %v5152_v57 = vpop.f32.mrb[79].mxu1  ;;  %v5192_v58 = vpop.f32.mrb[87].mxu0 }
 0x8b7   :  { %v3853_v10 = vadd.f32 %v5150_v54, %v4953_v43  ;;  %v5153_v2 = vadd.f32 %v5152_v57, %v5151_v59  ;;  %v5193_v36 = vadd.f32 %v5192_v58, %v5191_v32 }
 0x8b9   :  { %v3918_v3 = vadd.f32 %v5190_v52, %v3853_v10  ;;  %v3856_v6 = vadd.f32 %v5153_v2, %v4953_v43 }
 0x8bb   :  { %v7452_v7 = vadd.f32 %v5193_v36, %v3856_v6  ;;  %v5210_v25 = vpop.f32.mrb[80].mxu1  ;;  %v5250_v37 = vpop.f32.mrb[88].mxu0 }
 0x8bc   :  { %v5211_v26 = vpop.f32.mrb[81].mxu1  ;;  %v5251_v30 = vpop.f32.mrb[89].mxu0 }
 0x8bd   :  { %v5212_v12 = vadd.f32 %v5211_v26, %v5210_v25  ;;  %v5252_v14 = vadd.f32 %v5251_v30, %v5250_v37  ;;  %v5213_v44 = vpop.f32.mrb[82].mxu1  ;;  %v5253_v15 = vpop.f32.mrb[90].mxu0 }
 0x8be   :  { %v5214_v56 = vpop.f32.mrb[83].mxu1  ;;  %v5254_v18 = vpop.f32.mrb[91].mxu0 }
 0x8bf   :  { %v3959_v19 = vadd.f32 %v5212_v12, %v3894_v8  ;;  %v5215_v38 = vadd.f32 %v5214_v56, %v5213_v44  ;;  %v5255_v53 = vadd.f32 %v5254_v18, %v5253_v15 }
 0x8c1   :  { %v4024_v21 = vadd.f32 %v5252_v14, %v3959_v19  ;;  %v3962_v34 = vadd.f32 %v5215_v38, %v7446_v9 }
 0x8c3   :  { %v7455_v22 = vadd.f32 %v5255_v53, %v3962_v34  ;;  %v5216_v43 = vpop.f32.mrb[84].mxu1  ;;  %v5256_v27 = vpop.f32.mrb[92].mxu0 }
 0x8c4   :  { %v5217_v40 = vpop.f32.mrb[85].mxu1  ;;  %v5257_v29 = vpop.f32.mrb[93].mxu0 }
 0x8c5   :  { %v5218_v55 = vadd.f32 %v5217_v40, %v5216_v43  ;;  %v5258_v63 = vadd.f32 %v5257_v29, %v5256_v27  ;;  %v5219_v5 = vpop.f32.mrb[86].mxu1  ;;  %v5259_v23 = vpop.f32.mrb[94].mxu0 }
 0x8c6   :  { %v5220_v17 = vpop.f32.mrb[87].mxu1  ;;  %v5260_v62 = vpop.f32.mrb[95].mxu0 }
 0x8c7   :  { %v3967_v60 = vadd.f32 %v5218_v55, %v3902_v11  ;;  %v5221_v16 = vadd.f32 %v5220_v17, %v5219_v5  ;;  %v5261_v8 = vadd.f32 %v5260_v62, %v5259_v23 }
 0x8c9   :  { %v4032_v24 = vadd.f32 %v5258_v63, %v3967_v60  ;;  %v3970_v61 = vadd.f32 %v5221_v16, %v7448_v51 }
 0x8cb   :  { %v7458_v35 = vadd.f32 %v5261_v8, %v3970_v61  ;;  %v5222_v9 = vpop.f32.mrb[88].mxu1  ;;  %v5262_v47 = vpop.f32.mrb[96].mxu0 }
 0x8cc   :  { %v5223_v13 = vpop.f32.mrb[89].mxu1  ;;  %v5263_v45 = vpop.f32.mrb[97].mxu0 }
 0x8cd   :  { %v5224_v4 = vadd.f32 %v5223_v13, %v5222_v9  ;;  %v5264_v41 = vadd.f32 %v5263_v45, %v5262_v47  ;;  %v5225_v54 = vpop.f32.mrb[90].mxu1  ;;  %v5265_v52 = vpop.f32.mrb[98].mxu0 }
 0x8ce   :  { %v5226_v59 = vpop.f32.mrb[91].mxu1  ;;  %v5266_v32 = vpop.f32.mrb[99].mxu0 }
 0x8cf   :  { %v3975_v57 = vadd.f32 %v5224_v4, %v3910_v33  ;;  %v5227_v58 = vadd.f32 %v5226_v59, %v5225_v54  ;;  %v5267_v11 = vadd.f32 %v5266_v32, %v5265_v52 }
 0x8d1   :  { %v4040_v10 = vadd.f32 %v5264_v41, %v3975_v57  ;;  %v3978_v2 = vadd.f32 %v5227_v58, %v7450_v42 }
 0x8d3   :  { %v7461_v36 = vadd.f32 %v5267_v11, %v3978_v2  ;;  %v5228_v51 = vpop.f32.mrb[92].mxu1  ;;  %v5268_v6 = vpop.f32.mrb[100].mxu0 }
 0x8d4   :  { %v5229_v25 = vpop.f32.mrb[93].mxu1  ;;  %v5269_v37 = vpop.f32.mrb[101].mxu0 }
 0x8d5   :  { %v5230_v26 = vadd.f32 %v5229_v25, %v5228_v51  ;;  %v5270_v30 = vadd.f32 %v5269_v37, %v5268_v6  ;;  %v5231_v12 = vpop.f32.mrb[94].mxu1  ;;  %v5271_v14 = vpop.f32.mrb[102].mxu0 }
 0x8d6   :  { %v5232_v44 = vpop.f32.mrb[95].mxu1  ;;  %v5272_v15 = vpop.f32.mrb[103].mxu0 }
 0x8d7   :  { %v3983_v56 = vadd.f32 %v5230_v26, %v3918_v3  ;;  %v5233_v18 = vadd.f32 %v5232_v44, %v5231_v12  ;;  %v5273_v33 = vadd.f32 %v5272_v15, %v5271_v14 }
 0x8d9   :  { %v4048_v19 = vadd.f32 %v5270_v30, %v3983_v56  ;;  %v3986_v38 = vadd.f32 %v5233_v18, %v7452_v7 }
 0x8db   :  { %v7464_v53 = vadd.f32 %v5273_v33, %v3986_v38  ;;  %v5290_v42 = vpop.f32.mrb[96].mxu1  ;;  %v5330_v34 = vpop.f32.mrb[104].mxu0 }
 0x8dc   :  { %v5291_v43 = vpop.f32.mrb[97].mxu1  ;;  %v5331_v27 = vpop.f32.mrb[105].mxu0 }
 0x8dd   :  { %v5292_v40 = vadd.f32 %v5291_v43, %v5290_v42  ;;  %v5332_v29 = vadd.f32 %v5331_v27, %v5330_v34  ;;  %v5293_v55 = vpop.f32.mrb[98].mxu1  ;;  %v5333_v63 = vpop.f32.mrb[106].mxu0 }
 0x8de   :  { %v5294_v5 = vpop.f32.mrb[99].mxu1  ;;  %v5334_v23 = vpop.f32.mrb[107].mxu0 }
 0x8df   :  { %v4089_v17 = vadd.f32 %v5292_v40, %v4024_v21  ;;  %v5295_v62 = vadd.f32 %v5294_v5, %v5293_v55  ;;  %v5335_v3 = vadd.f32 %v5334_v23, %v5333_v63 }
 0x8e1   :  { %v4154_v60 = vadd.f32 %v5332_v29, %v4089_v17  ;;  %v4092_v16 = vadd.f32 %v5295_v62, %v7455_v22 }
 0x8e3   :  { %v7467_v8 = vadd.f32 %v5335_v3, %v4092_v16  ;;  %v5296_v7 = vpop.f32.mrb[100].mxu1  ;;  %v5336_v61 = vpop.f32.mrb[108].mxu0 }
 0x8e4   :  { %v5297_v9 = vpop.f32.mrb[101].mxu1  ;;  %v5337_v47 = vpop.f32.mrb[109].mxu0 }
 0x8e5   :  { %v5298_v13 = vadd.f32 %v5297_v9, %v5296_v7  ;;  %v5338_v45 = vadd.f32 %v5337_v47, %v5336_v61  ;;  %v5299_v4 = vpop.f32.mrb[102].mxu1  ;;  %v5339_v41 = vpop.f32.mrb[110].mxu0 }
 0x8e6   :  { %v5300_v54 = vpop.f32.mrb[103].mxu1  ;;  %v5340_v52 = vpop.f32.mrb[111].mxu0 }
 0x8e7   :  { %v4097_v59 = vadd.f32 %v5298_v13, %v4032_v24  ;;  %v5301_v32 = vadd.f32 %v5300_v54, %v5299_v4  ;;  %v5341_v21 = vadd.f32 %v5340_v52, %v5339_v41 }
 0x8e9   :  { %v7469_v57 = vadd.f32 %v5338_v45, %v4097_v59  ;;  %v4100_v58 = vadd.f32 %v5301_v32, %v7458_v35 }
 0x8eb   :  { %v7472_v22 = vadd.f32 %v5341_v21, %v4100_v58  ;;  %v5302_v11 = vpop.f32.mrb[104].mxu1  ;;  %v5342_v2 = vpop.f32.mrb[112].mxu0 }
 0x8ec   :  { %v5303_v51 = vpop.f32.mrb[105].mxu1  ;;  %v5343_v6 = vpop.f32.mrb[113].mxu0 }
 0x8ed   :  { %v5304_v25 = vadd.f32 %v5303_v51, %v5302_v11  ;;  %v5344_v37 = vadd.f32 %v5343_v6, %v5342_v2  ;;  %v5305_v26 = vpop.f32.mrb[106].mxu1  ;;  %v5345_v30 = vpop.f32.mrb[114].mxu0 }
 0x8ee   :  { %v5306_v12 = vpop.f32.mrb[107].mxu1  ;;  %v5346_v14 = vpop.f32.mrb[115].mxu0 }
 0x8ef   :  { %v4105_v44 = vadd.f32 %v5304_v25, %v4040_v10  ;;  %v5307_v24 = vadd.f32 %v5306_v12, %v5305_v26  ;;  %v5347_v15 = vadd.f32 %v5346_v14, %v5345_v30 }
 0x8f1   :  { %v7474_v56 = vadd.f32 %v5344_v37, %v4105_v44  ;;  %v4108_v18 = vadd.f32 %v5307_v24, %v7461_v36 }
 0x8f3   :  { %v7477_v35 = vadd.f32 %v5347_v15, %v4108_v18  ;;  %v5308_v33 = vpop.f32.mrb[108].mxu1  ;;  %v5348_v38 = vpop.f32.mrb[116].mxu0 }
 0x8f4   :  { %v5309_v42 = vpop.f32.mrb[109].mxu1  ;;  %v5349_v34 = vpop.f32.mrb[117].mxu0 }
 0x8f5   :  { %v5310_v43 = vadd.f32 %v5309_v42, %v5308_v33  ;;  %v5350_v27 = vadd.f32 %v5349_v34, %v5348_v38  ;;  %v5311_v40 = vpop.f32.mrb[110].mxu1  ;;  %v5351_v29 = vpop.f32.mrb[118].mxu0 }
 0x8f6   :  { %v5312_v55 = vpop.f32.mrb[111].mxu1  ;;  %v5352_v63 = vpop.f32.mrb[119].mxu0 }
 0x8f7   :  { %v4113_v5 = vadd.f32 %v5310_v43, %v4048_v19  ;;  %v5313_v10 = vadd.f32 %v5312_v55, %v5311_v40  ;;  %v5353_v23 = vadd.f32 %v5352_v63, %v5351_v29 }
 0x8f9   :  { %v7479_v17 = vadd.f32 %v5350_v27, %v4113_v5  ;;  %v4116_v62 = vadd.f32 %v5313_v10, %v7464_v53 }
 0x8fb   :  { %v7482_v36 = vadd.f32 %v5353_v23, %v4116_v62  ;;  %v5370_v3 = vpop.f32.mrb[112].mxu1  ;;  %v5410_v16 = vpop.f32.mrb[120].mxu0 }
 0x8fc   :  { %v5371_v7 = vpop.f32.mrb[113].mxu1  ;;  %v5411_v61 = vpop.f32.mrb[121].mxu0 }
 0x8fd   :  { %v5372_v9 = vadd.f32 %v5371_v7, %v5370_v3  ;;  %v5412_v47 = vadd.f32 %v5411_v61, %v5410_v16  ;;  %v5373_v13 = vpop.f32.mrb[114].mxu1  ;;  %v5413_v45 = vpop.f32.mrb[122].mxu0 }
 0x8fe   :  { %v5374_v4 = vpop.f32.mrb[115].mxu1  ;;  %v5414_v41 = vpop.f32.mrb[123].mxu0 }
 0x8ff   :  { %v4219_v54 = vadd.f32 %v5372_v9, %v4154_v60  ;;  %v5375_v19 = vadd.f32 %v5374_v4, %v5373_v13  ;;  %v5415_v52 = vadd.f32 %v5414_v41, %v5413_v45 }
 0x901   :  { %v4284_v59 = vadd.f32 %v5412_v47, %v4219_v54  ;;  %v4222_v32 = vadd.f32 %v5375_v19, %v7467_v8 }
 0x903   :  { %v4287_v21 = vadd.f32 %v5415_v52, %v4222_v32  ;;  %v5376_v53 = vpop.f32.mrb[116].mxu1  ;;  %v5416_v58 = vpop.f32.mrb[124].mxu0  ;;  %v7486_v11 = vadd.f32 %v4284_v59, %v6852_v31 }
 0x904   :  { %v5377_v2 = vpop.f32.mrb[117].mxu1  ;;  %v5417_v51 = vpop.f32.mrb[125].mxu0 }
 0x905   :  { %v5378_v6 = vadd.f32 %v5377_v2, %v5376_v53  ;;  %v5418_v25 = vadd.f32 %v5417_v51, %v5416_v58  ;;  %v5379_v37 = vpop.f32.mrb[118].mxu1  ;;  %v5419_v26 = vpop.f32.mrb[126].mxu0  ;;  %4324 = vadd.xlane.f32.xlu0 %v7486_v11  ;;  %v7490_v60 = vadd.f32 %v4287_v21, %v6855_v39  ;;  %v7540_v21 = vld [vmem:[%s7791_s1 + $0x20] sm:$0xff]  ;;  %v7550_v51 = vld [vmem:[%s7791_s1 + $0x28] sm:$0xff] }
 0x906   :  { %v5380_v30 = vpop.f32.mrb[119].mxu1  ;;  %v5420_v12 = vpop.f32.mrb[127].mxu0  ;;  %vm4452_vm11 = vcmp.gt.f32.partialorder %v7540_v21, 0.0  ;;  %vm4453_vm12 = vcmp.gt.f32.partialorder %v7550_v51, 0.0 }
 0x907   :  { %v4227_v8 = vadd.f32 %v5378_v6, %v7469_v57  ;;  %v5381_v14 = vadd.f32 %v5380_v30, %v5379_v37  ;;  %v5421_v44 = vadd.f32 %v5420_v12, %v5419_v26  ;;  %4326 = vadd.xlane.f32.xlu1 %v7490_v60  ;;  %v7555_v6 = vld [vmem:[%s7791_s1 + $0x30] sm:$0xff]  ;;  %v4516_v37 = vsel %vm4511_vm6, %v7540_v21, -inf }
 0x908   :  { %v4518_v26 = vsel %vm4511_vm6, %v7550_v51, -inf  ;;  %v4520_v30 = vsel %vm4511_vm6, %v7555_v6, -inf  ;;  %vm4454_vm13 = vcmp.gt.f32.partialorder %v7555_v6, 0.0  ;;  %v4538_v51 = vld [vmem:[%s7770_s16 + $0x20] sm:$0xff]  ;;  %v4539_v6 = vld [vmem:[%s7770_s16 + $0x28] sm:$0xff] }
 0x909   :  { %v4292_v31 = vadd.f32 %v5418_v25, %v4227_v8  ;;  %v4230_v24 = vadd.f32 %v5381_v14, %v7472_v22  ;;  %v7560_v25 = vld [vmem:[%s7791_s1 + $0x38] sm:$0xff] }
 0x90a   :  { %v4522_v12 = vsel %vm4511_vm6, %v7560_v25, -inf  ;;  %vm4455_vm14 = vcmp.gt.f32.partialorder %v7560_v25, 0.0  ;;  %v5597_v25 = vpack.c.bf16 %v4539_v6, %v4538_v51 }
 0x90b   :  { %v4295_v15 = vadd.f32 %v5421_v44, %v4230_v24  ;;  %v5382_v18 = vpop.f32.mrb[120].mxu1  ;;  %v5422_v33 = vpop.f32.mrb[128].mxu0  ;;  %v7496_v38 = vadd.f32 %v4292_v31, %v6904_v48 }
 0x90c   :  { %v5383_v42 = vpop.f32.mrb[121].mxu1  ;;  %v5423_v39 = vpop.f32.mrb[129].mxu0 }
 0x90d   :  { %v5384_v34 = vadd.f32 %v5383_v42, %v5382_v18  ;;  %v5424_v43 = vadd.f32 %v5423_v39, %v5422_v33  ;;  %v5385_v27 = vpop.f32.mrb[122].mxu1  ;;  %v5425_v40 = vpop.f32.mrb[130].mxu0  ;;  %4328 = vadd.xlane.f32.xlu0 %v7496_v38  ;;  %v7500_v57 = vadd.f32 %v4295_v15, %v6886_v49 }
 0x90e   :  { %v5386_v29 = vpop.f32.mrb[123].mxu1  ;;  %v5426_v55 = vpop.f32.mrb[131].mxu0 }
 0x90f   :  { %v4235_v22 = vadd.f32 %v5384_v34, %v7474_v56  ;;  %v5387_v63 = vadd.f32 %v5386_v29, %v5385_v27  ;;  %v5427_v5 = vadd.f32 %v5426_v55, %v5425_v40  ;;  %4330 = vadd.xlane.f32.xlu1 %v7500_v57 }
 0x911   :  { %v4300_v48 = vadd.f32 %v5424_v43, %v4235_v22  ;;  %v4238_v10 = vadd.f32 %v5387_v63, %v7477_v35 }
 0x913   :  { %v4303_v23 = vadd.f32 %v5427_v5, %v4238_v10  ;;  %v5388_v62 = vpop.f32.mrb[124].mxu1  ;;  %v5428_v3 = vpop.f32.mrb[132].mxu0  ;;  %v7506_v16 = vadd.f32 %v4300_v48, %v6946_v28 }
 0x914   :  { %v5389_v7 = vpop.f32.mrb[125].mxu1  ;;  %v5429_v49 = vpop.f32.mrb[133].mxu0 }
 0x915   :  { %v5390_v61 = vadd.f32 %v5389_v7, %v5388_v62  ;;  %v5430_v9 = vadd.f32 %v5429_v49, %v5428_v3  ;;  %v5391_v47 = vpop.f32.mrb[126].mxu1  ;;  %v5431_v13 = vpop.f32.mrb[134].mxu0  ;;  %4332 = vadd.xlane.f32.xlu0 %v7506_v16  ;;  %v7510_v56 = vadd.f32 %v4303_v23, %v6928_v20  ;;  %v4441_v20 = vld [vmem:[%s7791_s1 + $0x8] sm:$0xff] }
 0x916   :  { %v5392_v45 = vpop.f32.mrb[127].mxu1  ;;  %v5432_v4 = vpop.f32.mrb[135].mxu0  ;;  %vm4449_vm7 = vcmp.gt.f32.partialorder %v4441_v20, 0.0 }
 0x917   :  { %v4243_v35 = vadd.f32 %v5390_v61, %v7479_v17  ;;  %v5393_v41 = vadd.f32 %v5392_v45, %v5391_v47  ;;  %v5433_v54 = vadd.f32 %v5432_v4, %v5431_v13  ;;  %4334 = vadd.xlane.f32.xlu1 %v7510_v56  ;;  %v4442_v17 = vld [vmem:[%s7791_s1 + $0x10] sm:$0xff] }
 0x918   :  { %v4514_v53 = vsel %vm4511_vm6, %v4442_v17, -inf  ;;  %vm4450_vm8 = vcmp.gt.f32.partialorder %v4442_v17, 0.0 }
 0x919   :  { %v4308_v28 = vadd.f32 %v5430_v9, %v4243_v35  ;;  %v4246_v19 = vadd.f32 %v5393_v41, %v7482_v36  ;;  %v4513_v36 = vsel %vm4511_vm6, %v4441_v20, -inf  ;;  %v4521_v44 = vmax.f32 %v4514_v53, %v4520_v30  ;;  %v4536_v53 = vld [vmem:[%s7770_s16 + $0x10] sm:$0xff]  ;;  %v4542_v30 = vld [vmem:[%s7770_s16 + $0x40] sm:$0xff] }
 0x91a   :  { %v4519_v14 = vmax.f32 %v4513_v36, %v4518_v26  ;;  %v4458_v45 = vsel %vm4450_vm8, 1, %v6063_v1  ;;  %v4460_v41 = vsel %vm4452_vm11, 1, %v6063_v1  ;;  %v6066_v20 = vmov 0.0|0.0  }
 0x91b   :  { %v4311_v52 = vadd.f32 %v5433_v54, %v4246_v19  ;;  %v4320_v59 = vadd.f32 %v4308_v28, %v6987_v50  ;;  %v7530_v50 = vld [vmem:[%s7791_s1 + $0x18] sm:$0xff]  ;;  %v4461_v54 = vsel %vm4453_vm12, 1, %v6063_v1  ;;  %v4462_v28 = vsel %vm4454_vm13, 1, %v6063_v1  ;;  %5590 = vmatprep.subr.bf16.mxu1 %v6066_v20 }
 0x91c   :  { %v4515_v58 = vsel %vm4511_vm6, %v7530_v50, -inf  ;;  %vm4451_vm9 = vcmp.gt.f32.partialorder %v7530_v50, 0.0  ;;  %v4463_v19 = vsel %vm4455_vm14, 1, %v6063_v1  ;;  %vm4716_vm11 = vcmask 23552  }
 0x91d   :  { %4336 = vadd.xlane.f32.xlu0 %v4320_v59  ;;  %v7517_v32 = vadd.f32 %v4311_v52, %v6970_v46  ;;  %v7535_v46 = vld [vmem:[%s7791_s1] sm:$0xff]  ;;  %v4523_v31 = vmax.f32 %v4515_v58, %v4522_v12  ;;  %v4459_v4 = vsel %vm4451_vm9, 1, %v6063_v1  ;;  %v4537_v58 = vld [vmem:[%s7770_s16 + $0x18] sm:$0xff]  ;;  %v4543_v12 = vld [vmem:[%s7770_s16 + $0x48] sm:$0xff] }
 0x91e   :  { %v4512_v2 = vsel %vm4511_vm6, %v7535_v46, -inf  ;;  %vm4448_vm10 = vcmp.gt.f32.partialorder %v7535_v46, 0.0  ;;  %v4534_v52 = vld [vmem:[%s7770_s16] sm:$0xff] }
 0x91f   :  { %4338 = vadd.xlane.f32.xlu1 %v7517_v32  ;;  %v4517_v8 = vmax.f32 %v4512_v2, %v4516_v37  ;;  %v7572_v15 = vmax.f32 %v4521_v44, %v4523_v31  ;;  %v4456_v35 = vsel %vm4448_vm10, 1, %v6063_v1  ;;  %v4541_v37 = vld [vmem:[%s7770_s16 + $0x38] sm:$0xff] }
 0x920   :  { %v4545_v44 = vld [vmem:[%s7770_s16 + $0x58] sm:$0xff] }
 0x921   :  { %v7570_v24 = vmax.f32 %v4517_v8, %v4519_v14  ;;  %v5603_v8 = vpack.c.bf16 %v4543_v12, %v4542_v30  ;;  %v4544_v14 = vld [vmem:[%s7770_s16 + $0x50] sm:$0xff]  ;;  %v5082_v30 = vld [vmem:[%s7768_s14] ss:$0 sm:$0xff] }
 0x922   :  { %v5606_v31 = vpack.c.bf16 %v4545_v44, %v4544_v14 }
 0x923   :  { %v4526_v18 = vmax.f32 %v7570_v24, %v7572_v15  ;;  %v4546_v24 = vld [vmem:[%s7770_s16 + $0x60] sm:$0xff]  ;;  %v4547_v15 = vld [vmem:[%s7770_s16 + $0x68] sm:$0xff] }
 0x925   :  { %vm4527_vm15 = vcmp.gt.f32.partialorder %v4526_v18, 0.0  ;;  %v5609_v18 = vpack.c.bf16 %v4547_v15, %v4546_v24 }
 0x926   :  { %v4528_v2 = vsel %vm4527_vm15, 1, %v6063_v1 }
 0x992   :  { %v4325_v33 = vpop.xlane.xlu0 %4324 }
 0x993   :  { %v4340_v42 = vmul.f32 0.0078125, %v4325_v33  ;;  %v4548_v33 = vld [vmem:[%s7770_s16 + $0x70] sm:$0xff] }
 0x994   :  { %v4327_v39 = vpop.xlane.xlu1 %4326 }
 0x995   :  { %v7577_v34 = vsub.f32 %v7486_v11, %v4340_v42  ;;  %v4341_v43 = vmul.f32 0.0078125, %v4327_v39  ;;  %v4549_v42 = vld [vmem:[%s7770_s16 + $0x78] sm:$0xff] }
 0x996   :  { %v5612_v39 = vpack.c.bf16 %v4549_v42, %v4548_v33 }
 0x997   :  { %v7580_v27 = vsub.f32 %v7490_v60, %v4341_v43  ;;  %v4356_v40 = vmul.f32 %v7577_v34, %v7577_v34 }
 0x999   :  { %4364 = vadd.xlane.f32.xlu0 %v4356_v40  ;;  %v4357_v29 = vmul.f32 %v7580_v27, %v7580_v27 }
 0x99a   :  { %v4329_v55 = vpop.xlane.xlu0 %4328 }
 0x99b   :  { %v4342_v22 = vmul.f32 0.0078125, %v4329_v55  ;;  %4366 = vadd.xlane.f32.xlu1 %v4357_v29 }
 0x99c   :  { %v4331_v63 = vpop.xlane.xlu1 %4330 }
 0x99d   :  { %v7587_v5 = vsub.f32 %v7496_v38, %v4342_v22  ;;  %v4343_v11 = vmul.f32 0.0078125, %v4331_v63 }
 0x99f   :  { %v7590_v48 = vsub.f32 %v7500_v57, %v4343_v11  ;;  %v4358_v60 = vmul.f32 %v7587_v5, %v7587_v5 }
 0x9a1   :  { %4368 = vadd.xlane.f32.xlu0 %v4358_v60  ;;  %v4359_v10 = vmul.f32 %v7590_v48, %v7590_v48 }
 0x9a2   :  { %v4333_v23 = vpop.xlane.xlu0 %4332 }
 0x9a3   :  { %v4344_v62 = vmul.f32 0.0078125, %v4333_v23  ;;  %4370 = vadd.xlane.f32.xlu1 %v4359_v10 }
 0x9a4   :  { %v4335_v3 = vpop.xlane.xlu1 %4334 }
 0x9a5   :  { %v7597_v7 = vsub.f32 %v7506_v16, %v4344_v62  ;;  %v4345_v38 = vmul.f32 0.0078125, %v4335_v3 }
 0x9a7   :  { %v7600_v49 = vsub.f32 %v7510_v56, %v4345_v38  ;;  %v4360_v57 = vmul.f32 %v7597_v7, %v7597_v7  ;;  %v4457_v56 = vsel %vm4449_vm7, 1, %v6063_v1  ;;  %v4540_v1 = vld [vmem:[%s7770_s16 + $0x30] sm:$0xff] }
 0x9a8   :  { %v5600_v26 = vpack.c.bf16 %v4541_v37, %v4540_v1 }
 0x9a9   :  { %4372 = vadd.xlane.f32.xlu0 %v4360_v57  ;;  %v4361_v61 = vmul.f32 %v7600_v49, %v7600_v49 }
 0x9aa   :  { %v4337_v9 = vpop.xlane.xlu0 %4336 }
 0x9ab   :  { %v4346_v47 = vmul.f32 0.0078125, %v4337_v9  ;;  %4374 = vadd.xlane.f32.xlu1 %v4361_v61 }
 0x9ac   :  { %v4339_v36 = vpop.xlane.xlu1 %4338 }
 0x9ad   :  { %v7606_v13 = vsub.f32 %v4320_v59, %v4346_v47  ;;  %v4535_v59 = vld [vmem:[%s7770_s16 + $0x8] sm:$0xff]  ;;  %v4347_v50 = vmul.f32 0.0078125, %v4339_v36 }
 0x9ae   :  { %v5591_v17 = vpack.c.bf16 %v4535_v59, %v4534_v52 }
 0x9af   :  { %v4362_v16 = vmul.f32 %v7606_v13, %v7606_v13  ;;  %v7633_v46 = vsub.f32 %v7517_v32, %v4347_v50  ;;  %v5594_v32 = vpack.c.bf16 %v4537_v58, %v4536_v53 }
 0x9b0   :  { %5592 = vmatpush3.bf16.msra.mxu1 %v5591_v17 }
 0x9b1   :  { %4376 = vadd.xlane.f32.xlu0 %v4362_v16  ;;  %5593 = vmatprep.subr.bf16.mxu1 %v6066_v20  ;;  %v4363_v21 = vmul.f32 %v7633_v46, %v7633_v46 }
 0x9b4   :  { %5595 = vmatpush3.bf16.msra.mxu1 %v5594_v32 }
 0x9b5   :  { %5596 = vmatprep.subr.bf16.mxu1 %v6066_v20 }
 0x9b8   :  { %5598 = vmatpush3.bf16.msra.mxu1 %v5597_v25 }
 0x9b9   :  { %5599 = vmatprep.subr.bf16.mxu1 %v6066_v20 }
 0x9bc   :  { %4468 = vperm.xlu1 %5734, %v4457_v56   ;;  %5601 = vmatpush3.bf16.msra.mxu1 %v5600_v26 }
 0x9bd   :  { %5602 = vmatprep.subr.bf16.mxu1 %v6066_v20 }
 0x9c0   :  { %4471 = vperm.xlu1 %5734, %v4458_v45   ;;  %5604 = vmatpush3.bf16.msra.mxu1 %v5603_v8 }
 0x9c1   :  { %5605 = vmatprep.subr.bf16.mxu1 %v6066_v20 }
 0x9c4   :  { %4474 = vperm.xlu1 %5734, %v4459_v4   ;;  %5607 = vmatpush3.bf16.msra.mxu1 %v5606_v31 }
 0x9c5   :  { %5608 = vmatprep.subr.bf16.mxu1 %v6066_v20 }
 0x9c7   :  { %4465 = vperm.xlu0 %5733, %v4456_v35  }
 0x9c8   :  { %4477 = vperm.xlu1 %5734, %v4460_v41   ;;  %5610 = vmatpush3.bf16.msra.mxu1 %v5609_v18 }
 0x9c9   :  { %5611 = vmatprep.subr.bf16.mxu1 %v6066_v20 }
 0x9cc   :  { %4480 = vperm.xlu1 %5734, %v4461_v54   ;;  %5613 = vmatpush3.bf16.msra.mxu1 %v5612_v39 }
 0x9cd   :  { %5614 = vmatprep.subr.bf16.mxu1 %v6066_v20 }
 0x9d0   :  { %4483 = vperm.xlu1 %5734, %v4462_v28  }
 0x9d4   :  { %4486 = vperm.xlu1 %5734, %v4463_v19  }
 0x9f8   :  { %4378 = vadd.xlane.f32.xlu1 %v4363_v21 }
 0xa09   :  { %4530 = vperm.xlu1 %5734, %v4528_v2  }
 0xa26   :  { %v4365_v63 = vpop.xlane.xlu0 %4364 }
 0xa27   :  { %v4380_v62 = vmul.f32 0.0078125, %v4365_v63 }
 0xa28   :  { %v4367_v43 = vpop.xlane.xlu1 %4366 }
 0xa29   :  { %v4381_v3 = vmul.f32 0.0078125, %v4367_v43  ;;  %v4388_v47 = vadd.f32 1e-05, %v4380_v62 }
 0xa2b   :  { %v4389_v56 = vadd.f32 1e-05, %v4381_v3  ;;  %5879 = vrsqrt.f32 %v4388_v47 }
 0xa2d   :  { %5881 = vrsqrt.f32 %v4389_v56 }
 0xa2e   :  { %v4369_v60 = vpop.xlane.xlu0 %4368 }
 0xa2f   :  { %v4382_v45 = vmul.f32 0.0078125, %v4369_v60 }
 0xa30   :  { %v4371_v40 = vpop.xlane.xlu1 %4370 }
 0xa31   :  { %v4383_v4 = vmul.f32 0.0078125, %v4371_v40  ;;  %v4390_v19 = vadd.f32 1e-05, %v4382_v45 }
 0xa33   :  { %v4391_v52 = vadd.f32 1e-05, %v4383_v4 }
 0xa35   :  { %v5880_v36 = vpop.eup %5879 }
 0xa36   :  { %v4373_v23 = vpop.xlane.xlu0 %4372  ;;  %v4404_v12 = vmul.f32 %v5880_v36, %v7577_v34  ;;  %v4635_v36 = vld [vmem:[%s7772_s18 + $0x38] sm:$0xff] }
 0xa37   :  { %v4384_v9 = vmul.f32 0.0078125, %v4373_v23  ;;  %v5882_v21 = vpop.eup %5881 }
 0xa38   :  { %v4375_v29 = vpop.xlane.xlu1 %4374  ;;  %v4405_v1 = vmul.f32 %v5882_v21, %v7580_v27  ;;  %v5083_v27 = vld [vmem:[%s7769_s15] ss:$0 sm:$0xff] }
 0xa39   :  { %v4385_v61 = vmul.f32 0.0078125, %v4375_v29  ;;  %v4392_v41 = vadd.f32 1e-05, %v4384_v9  ;;  %v5084_v21 = vld [vmem:[%s7771_s17] ss:$0 sm:$0xff] }
 0xa3a   :  { %v4419_v31 = vmul.f32 %v5082_v30, %v4405_v1 }
 0xa3b   :  { %v4393_v35 = vadd.f32 1e-05, %v4385_v61 }
 0xa3c   :  { %v7692_v55 = vpop.permute.xlu1 %4468  ;;  %v4433_v42 = vadd.f32 %v5083_v27, %v4419_v31 }
 0xa3d   :  { %5883 = vrsqrt.f32 %v4393_v35  ;;  %vm4489_vm3 = vcmp.eq.s32.totalorder %v7692_v55, 1 }
 0xa3e   :  { %v4377_v38 = vpop.xlane.xlu0 %4376  ;;  %5885 = vrsqrt.f32 %v4392_v41  ;;  %v4497_v23 = vsel %vm4489_vm3, %v4433_v42, -inf }
 0xa3f   :  { %v4386_v16 = vmul.f32 0.0078125, %v4377_v38 }
 0xa40   :  { %v7694_v22 = vpop.permute.xlu1 %4471 }
 0xa41   :  { %v4394_v28 = vadd.f32 1e-05, %v4386_v16  ;;  %vm4490_vm8 = vcmp.eq.s32.totalorder %v7694_v22, 1 }
 0xa43   :  { %5887 = vrsqrt.f32 %v4394_v28  ;;  %v4631_v28 = vld [vmem:[%s7772_s18 + $0x18] sm:$0xff] }
 0xa44   :  { %v7696_v11 = vpop.permute.xlu1 %4474  ;;  %5889 = vrsqrt.f32 %v4390_v19 }
 0xa45   :  { %5891 = vrsqrt.f32 %v4391_v52  ;;  %vm4491_vm4 = vcmp.eq.s32.totalorder %v7696_v11, 1  ;;  %v4628_v11 = vld [vmem:[%s7772_s18] sm:$0xff] }
 0xa46   :  { %v4466_v34 = vpop.permute.xlu0 %4465  ;;  %v4632_v52 = vld [vmem:[%s7772_s18 + $0x20] sm:$0xff] }
 0xa47   :  { %v5884_v53 = vpop.eup %5883  ;;  %vm4488_vm5 = vcmp.eq.s32.totalorder %v4466_v34, 1 }
 0xa48   :  { %v7698_v10 = vpop.permute.xlu1 %4477  ;;  %v5886_v2 = vpop.eup %5885  ;;  %v4409_v6 = vmul.f32 %v5884_v53, %v7600_v49 }
 0xa49   :  { %v4408_v37 = vmul.f32 %v5886_v2, %v7597_v7  ;;  %v4418_v7 = vmul.f32 %v5082_v30, %v4404_v12  ;;  %vm4492_vm6 = vcmp.eq.s32.totalorder %v7698_v10, 1  ;;  %v4629_v10 = vld [vmem:[%s7772_s18 + $0x8] sm:$0xff] }
 0xa4a   :  { %v4423_v44 = vmul.f32 %v5082_v30, %v4409_v6  ;;  %v5615_v35 = vpack.c.bf16 %v4629_v10, %v4628_v11 }
 0xa4b   :  { %v4422_v49 = vmul.f32 %v5082_v30, %v4408_v37  ;;  %v4432_v43 = vadd.f32 %v5083_v27, %v4418_v7 }
 0xa4c   :  { %v4481_v57 = vpop.permute.xlu1 %4480  ;;  %v4437_v18 = vadd.f32 %v5083_v27, %v4423_v44 }
 0xa4d   :  { %v5888_v32 = vpop.eup %5887  ;;  %vm4493_vm2 = vcmp.eq.s32.totalorder %v4481_v57, 1  ;;  %v4436_v39 = vadd.f32 %v5083_v27, %v4422_v49  ;;  %v4496_v61 = vsel %vm4488_vm5, %v4432_v43, -inf }
 0xa4e   :  { %v5890_v51 = vpop.eup %5889  ;;  %v4410_v26 = vmul.f32 %v5888_v32, %v7606_v13  ;;  %v4501_v63 = vsel %vm4493_vm2, %v4437_v18, -inf }
 0xa4f   :  { %v5892_v25 = vpop.eup %5891  ;;  %v4406_v8 = vmul.f32 %v5890_v51, %v7587_v5  ;;  %v4500_v62 = vsel %vm4492_vm6, %v4436_v39, -inf }
 0xa50   :  { %v4484_v54 = vpop.permute.xlu1 %4483  ;;  %v4407_v14 = vmul.f32 %v5892_v25, %v7590_v48  ;;  %v4424_v24 = vmul.f32 %v5082_v30, %v4410_v26  ;;  %v4504_v47 = vmax.f32 %v4496_v61, %v4500_v62 }
 0xa51   :  { %v4420_v13 = vmul.f32 %v5082_v30, %v4406_v8  ;;  %vm4494_vm7 = vcmp.eq.s32.totalorder %v4484_v54, 1  ;;  %v4630_v54 = vld [vmem:[%s7772_s18 + $0x10] sm:$0xff] }
 0xa52   :  { %v4421_v15 = vmul.f32 %v5082_v30, %v4407_v14  ;;  %v4438_v5 = vadd.f32 %v5083_v27, %v4424_v24  ;;  %v5618_v19 = vpack.c.bf16 %v4631_v28, %v4630_v54 }
 0xa53   :  { %v4434_v40 = vadd.f32 %v5083_v27, %v4420_v13 }
 0xa54   :  { %v4487_v59 = vpop.permute.xlu1 %4486  ;;  %v4435_v29 = vadd.f32 %v5083_v27, %v4421_v15  ;;  %v4502_v3 = vsel %vm4494_vm7, %v4438_v5, -inf }
 0xa55   :  { %vm4495_vm9 = vcmp.eq.s32.totalorder %v4487_v59, 1  ;;  %v4498_v55 = vsel %vm4490_vm8, %v4434_v40, -inf  ;;  %v4633_v59 = vld [vmem:[%s7772_s18 + $0x28] sm:$0xff] }
 0xa56   :  { %v4499_v57 = vsel %vm4491_vm4, %v4435_v29, -inf  ;;  %v4506_v16 = vmax.f32 %v4498_v55, %v4502_v3 }
 0xa85   :  { %v4379_v17 = vpop.xlane.xlu1 %4378 }
 0xa86   :  { %v4387_v50 = vmul.f32 0.0078125, %v4379_v17  ;;  %v5621_v17 = vpack.c.bf16 %v4633_v59, %v4632_v52 }
 0xa88   :  { %v4395_v58 = vadd.f32 1e-05, %v4387_v50 }
 0xa89   :  { %v4531_v4 = vpop.permute.xlu1 %4530 }
 0xa8a   :  { %5893 = vrsqrt.f32 %v4395_v58  ;;  %vm4532_vm10 = vcmp.eq.s32.totalorder %v4531_v4, 1 }
 0xa94   :  { %v5894_v33 = vpop.eup %5893 }
 0xa95   :  { %v4411_v48 = vmul.f32 %v5894_v33, %v7633_v46  ;;  %v4505_v46 = vmax.f32 %v4497_v23, %v4501_v63 }
 0xa97   :  { %v4425_v60 = vmul.f32 %v5082_v30, %v4411_v48  ;;  %v4508_v45 = vmax.f32 %v4504_v47, %v4505_v46 }
 0xa99   :  { %v4439_v38 = vadd.f32 %v5083_v27, %v4425_v60 }
 0xa9b   :  { %v4503_v9 = vsel %vm4495_vm9, %v4439_v38, -inf }
 0xa9c   :  { %v4507_v56 = vmax.f32 %v4499_v57, %v4503_v9 }
 0xa9e   :  { %v4509_v22 = vmax.f32 %v4506_v16, %v4507_v56 }
 0xaa0   :  { %v4510_v41 = vmax.f32 %v4508_v45, %v4509_v22 }
 0xaa2   :  { %5537 = vmatmul.mubr.msk.f32.vlgmr.msra.gmra.mrb[128].mxu1 %vm4532_vm10, %v4510_v41 }
 0xaa3   :  { %5616 = vmatpush3.bf16.msra.mxu1 %v5615_v35  ;;  %5555 = vmatprep.mubr.msk.f32.mxu1 %vm6067_vm1, %v6062_v0  ;;  %v4634_v0 = vld [vmem:[%s7772_s18 + $0x30] sm:$0xff] }
 0xaa4   :  { %5617 = vmatprep.subr.bf16.mxu1 %v6066_v20  ;;  %v5624_v50 = vpack.c.bf16 %v4635_v36, %v4634_v0 }
 0xaa7   :  { %5619 = vmatpush3.bf16.msra.mxu1 %v5618_v19 }
 0xaa8   :  { %5620 = vmatprep.subr.bf16.mxu1 %v6066_v20 }
 0xaab   :  { %5622 = vmatpush3.bf16.msra.mxu1 %v5621_v17 }
 0xaac   :  { %5623 = vmatprep.subr.bf16.mxu1 %v6066_v20  ;;  %v5086_v20 = vld [vmem:[#allocation13] ss:$0 sm:$0xff] }
 0xaaf   :  { %5625 = vmatpush3.bf16.msra.mxu1 %v5624_v50 }
 0xb75   :  { %v4623_v53 = vpop.f32.mrb[128].mxu1 }
 0xb76   :  { %v4624_v58 = vadd.f32 %v5084_v21, %v4623_v53  ;;  %v5538_v2 = vpop.f32.mrb[129].mxu1 }
 0xb78   :  { %v4627_v32 = vmax.f32 %v4624_v58, 0.0 }
 0xb7a   :  { %5556 = vmatmul.mubr.msk.f32.vlgmr.msra.gmra.mrb[130].mxu1 %vm300_vm0, %v4627_v32 }
 0xc4d   :  { %v4712_v51 = vpop.f32.mrb[130].mxu1 }
 0xc4e   :  { %v4713_v6 = vadd.f32 %v5086_v20, %v4712_v51  ;;  %v5557_v25 = vpop.f32.mrb[131].mxu1 }
 0xc50   :  { %4717 = vst.msk [vmem:[%s7774_s20] sm:$0xff] %vm4716_vm11, %v4713_v6 }
 0xc51   :  { %4722 = vsyncpa [#allocation7], 1 }
 0xc52   :  { %4723 = vsyncpa [#allocation9], 1 }
 0xc53   :  { %4724 = vsyncpa [#allocation12], 1 }

</bundles_post_ra>
